<compile_context>
chip_gen: v5e
topology: v5e:2x2
jax: 0.10.0
libtpu: 0.0.40
codegen_flags: <defaults>
</compile_context>

<pallas_src>
import functools

import jax
import jax.numpy as jnp
from jax.experimental import pallas as pl
from jax.experimental.pallas import tpu as pltpu

KH = KW = 3
C_IN = 2
C_OUT = 8
BN_EPS = 1e-5


def fused_forward_kernel(xf_ref, wconv_ref, shift_ref,
                         b0_ref, b1_ref, b2_ref, b3_ref, b4_ref,
                         w0_hbm, w1_hbm, w2_hbm, w3_hbm, w4_hbm,
                         o_ref,
                         w0_buf, w1_buf, w2_buf, w3_buf, w4_buf, sem,
                         *, img_w, out_h):
    """Fused conv+BN+ReLU+flatten+MLP forward.

    xf_ref    (B, H*W + KW-1)   VMEM  flattened input image (+KW-1 zero pad lanes)
    wconv_ref (C_OUT*KH*KW,)    SMEM  conv weights (channel-dup + BN scale folded)
    shift_ref (C_OUT,)          SMEM  per-channel folded BN/bias shift
    b*_ref    (1, d)            VMEM  linear biases
    w*_hbm                      ANY   linear weights, left in HBM
    o_ref     (B, n_out)        VMEM  final output
    w*_buf                      VMEM  scratch landing buffers for the weights
    sem                         DMA semaphores, shape (5,)
    """
    # Kick off all MLP-weight DMAs immediately so they overlap the conv compute.
    copies = []
    for i, (src, dst) in enumerate(((w0_hbm, w0_buf), (w1_hbm, w1_buf),
                                    (w2_hbm, w2_buf), (w3_hbm, w3_buf),
                                    (w4_hbm, w4_buf))):
        cp = pltpu.make_async_copy(src, dst, sem.at[i])
        cp.start()
        copies.append(cp)

    flat_len = out_h * img_w          # over-computed conv positions per channel
    xf = xf_ref[...]                  # (B, H*W + KW - 1)

    # The 9 taps of the 3x3 conv as static lane slices of the flat image:
    # position s = i*W + j  ->  pixel (i+kh, j+kw) lives at lane s + kh*W + kw.
    taps = [xf[:, kh * img_w + kw: kh * img_w + kw + flat_len]
            for kh in range(KH) for kw in range(KW)]

    # Per-channel conv (+ folded BN scale) + shift + ReLU, kept as lane-dense
    # (B, out_h*W) values.  Columns j >= Wo are out-of-image garbage and are
    # cancelled by zero rows in the re-laid-out W0.
    feats = []
    for co in range(C_OUT):
        acc = taps[0] * wconv_ref[co * KH * KW]
        for t in range(1, KH * KW):
            acc = acc + taps[t] * wconv_ref[co * KH * KW + t]
        feats.append(jnp.maximum(acc + shift_ref[co], 0.0))

    f32 = jnp.float32
    # GridConvNet.head: flatten (C,H,W order) @ W0 + b0, decomposed per conv channel
    # against the kernel-layout W0 of shape (C_OUT, out_h*W, 256).
    copies[0].wait()
    z = b0_ref[...]
    for co in range(C_OUT):
        z = z + jnp.dot(feats[co], w0_buf[co], preferred_element_type=f32)
    # h1 / h2 / h3: Linear + ReLU
    copies[1].wait()
    z = jnp.maximum(jnp.dot(z, w1_buf[...], preferred_element_type=f32) + b1_ref[...], 0.0)
    copies[2].wait()
    z = jnp.maximum(jnp.dot(z, w2_buf[...], preferred_element_type=f32) + b2_ref[...], 0.0)
    copies[3].wait()
    z = jnp.maximum(jnp.dot(z, w3_buf[...], preferred_element_type=f32) + b3_ref[...], 0.0)
    # final head
    copies[4].wait()
    o_ref[...] = jnp.dot(z, w4_buf[...], preferred_element_type=f32) + b4_ref[...]


def init_params(key, h, w, n_out):
    """Deterministic synthetic parameters in the standard (PyTorch-like) layout."""
    ho, wo = h - 2, w - 2
    k = jax.random.split(key, 16)
    s = 0.05
    p = {}
    p["conv_w"] = s * jax.random.normal(k[0], (C_OUT, C_IN, KH, KW), jnp.float32)
    p["conv_b"] = s * jax.random.normal(k[1], (C_OUT,), jnp.float32)
    p["bn_gamma"] = 1.0 + s * jax.random.normal(k[2], (C_OUT,), jnp.float32)
    p["bn_beta"] = s * jax.random.normal(k[3], (C_OUT,), jnp.float32)
    p["bn_mean"] = jnp.zeros((C_OUT,), jnp.float32)
    p["bn_var"] = jnp.ones((C_OUT,), jnp.float32)
    lin_in = C_OUT * ho * wo
    dims = [(lin_in, 256), (256, 128), (128, 128), (128, 128), (128, n_out)]
    for i, (din, dout) in enumerate(dims):
        p[f"W{i}"] = s * jax.random.normal(k[4 + 2 * i], (din, dout), jnp.float32)
        p[f"b{i}"] = s * jax.random.normal(k[5 + 2 * i], (1, dout), jnp.float32)
    return p


def prepare_params(params, h, w):
    """One-time (load-time) weight prep into the kernel-native layout.

    - Folds eval-mode BatchNorm and the duplicated input channel into the conv
      weights, leaving only a per-channel shift for the kernel.
    - Re-lays-out W0 to (C_OUT, Ho*W, 256): rows indexed by s = i*W + j, with
      zero rows at j >= Wo so the kernel's over-computed feature columns
      contribute exactly 0.
    """
    ho, wo = h - KH + 1, w - KW + 1
    scale = params["bn_gamma"] / jnp.sqrt(params["bn_var"] + BN_EPS)
    shift = params["bn_beta"] + (params["conv_b"] - params["bn_mean"]) * scale
    w_eff = (params["conv_w"][:, 0] + params["conv_w"][:, 1]) * scale[:, None, None]

    d0 = params["W0"].shape[1]
    w0r = params["W0"].reshape(C_OUT, ho, wo, d0)
    w0k = jnp.pad(w0r, ((0, 0), (0, 0), (0, w - wo), (0, 0))).reshape(C_OUT, ho * w, d0)

    kp = {"conv_w_flat": w_eff.reshape(-1), "shift": shift, "W0k": w0k}
    for i in range(5):
        if i > 0:
            kp[f"W{i}"] = params[f"W{i}"]
        kp[f"b{i}"] = params[f"b{i}"]
    return jax.tree_util.tree_map(jnp.asarray, kp)


@jax.jit
def goal_cond_grid_convnet(x1, x2, kp):
    """Forward pass. x1 is accepted but unused, exactly like the PyTorch module."""
    del x1
    B, _, H, W = x2.shape
    Ho = H - KH + 1
    flat_len = Ho * W
    n_out = kp["W4"].shape[1]
    d0 = kp["W0k"].shape[2]

    # Flatten the (single, duplicated) input channel; pad KW-1 lanes so every
    # conv tap is an in-bounds static lane slice.
    xf = x2.reshape(B, H * W).astype(jnp.float32)
    xf = jnp.pad(xf, ((0, 0), (0, KW - 1)))

    vmem = pl.BlockSpec(memory_space=pltpu.MemorySpace.VMEM)
    smem = pl.BlockSpec(memory_space=pltpu.MemorySpace.SMEM)
    hbm = pl.BlockSpec(memory_space=pl.ANY)

    kernel = functools.partial(fused_forward_kernel, img_w=W, out_h=Ho)

    return pl.pallas_call(
        kernel,
        out_shape=jax.ShapeDtypeStruct((B, n_out), jnp.float32),
        in_specs=[vmem, smem, smem,
                  vmem, vmem, vmem, vmem, vmem,
                  hbm, hbm, hbm, hbm, hbm],
        out_specs=vmem,
        scratch_shapes=[
            pltpu.VMEM((C_OUT, flat_len, d0), jnp.float32),
            pltpu.VMEM(kp["W1"].shape, jnp.float32),
            pltpu.VMEM(kp["W2"].shape, jnp.float32),
            pltpu.VMEM(kp["W3"].shape, jnp.float32),
            pltpu.VMEM(kp["W4"].shape, jnp.float32),
            pltpu.SemaphoreType.DMA((5,)),
        ],
    )(xf, kp["conv_w_flat"], kp["shift"],
      kp["b0"], kp["b1"], kp["b2"], kp["b3"], kp["b4"],
      kp["W0k"], kp["W1"], kp["W2"], kp["W3"], kp["W4"])


def reference_forward(x1, x2, params):
    """Pure-JAX reference (standard-layout params) for correctness checking."""
    del x1
    x = jnp.concatenate([x2, x2], axis=1).astype(jnp.float32)
    y = jax.lax.conv_general_dilated(
        x, params["conv_w"], window_strides=(1, 1), padding="VALID",
        dimension_numbers=("NCHW", "OIHW", "NCHW"))
    y = y + params["conv_b"][None, :, None, None]
    y = (y - params["bn_mean"][None, :, None, None]) / jnp.sqrt(
        params["bn_var"][None, :, None, None] + BN_EPS)
    y = y * params["bn_gamma"][None, :, None, None] + params["bn_beta"][None, :, None, None]
    y = jnp.maximum(y, 0.0)
    z = y.reshape(y.shape[0], -1)
    z = z @ params["W0"] + params["b0"]
    z = jnp.maximum(z @ params["W1"] + params["b1"], 0.0)
    z = jnp.maximum(z @ params["W2"] + params["b2"], 0.0)
    z = jnp.maximum(z @ params["W3"] + params["b3"], 0.0)
    return z @ params["W4"] + params["b4"]


if __name__ == "__main__":
    B, H, W, N_OUT = 2, 16, 16, 8
    key = jax.random.PRNGKey(0)
    kparam_key, k1, k2 = jax.random.split(key, 3)
    params = init_params(kparam_key, H, W, N_OUT)
    kparams = prepare_params(params, H, W)   # one-time, load-time weight prep

    x1 = jax.random.normal(k1, (B, 1, H, W), jnp.float32)  # unused by forward
    x2 = jax.random.normal(k2, (B, 1, H, W), jnp.float32)

    out = goal_cond_grid_convnet(x1, x2, kparams)
    out = jax.block_until_ready(out)

    ref = reference_forward(x1, x2, params)
    assert out.shape == (B, N_OUT), out.shape
    assert jnp.allclose(out, ref, rtol=2e-3, atol=2e-3), (out, ref)

    print("KERNEL_OK")
</pallas_src>

<mosaic_0001>
module attributes {stable_mosaic.version = 11 : i64} {
  func.func @fused_forward_kernel(%arg0: memref<2x258xf32, #tpu.memory_space<vmem>>, %arg1: memref<72xf32, #tpu.memory_space<smem>>, %arg2: memref<8xf32, #tpu.memory_space<smem>>, %arg3: memref<1x256xf32, #tpu.memory_space<vmem>>, %arg4: memref<1x128xf32, #tpu.memory_space<vmem>>, %arg5: memref<1x128xf32, #tpu.memory_space<vmem>>, %arg6: memref<1x128xf32, #tpu.memory_space<vmem>>, %arg7: memref<1x8xf32, #tpu.memory_space<vmem>>, %arg8: memref<8x224x256xf32, #tpu.memory_space<any>>, %arg9: memref<256x128xf32, #tpu.memory_space<any>>, %arg10: memref<128x128xf32, #tpu.memory_space<any>>, %arg11: memref<128x128xf32, #tpu.memory_space<any>>, %arg12: memref<128x8xf32, #tpu.memory_space<any>>, %arg13: memref<2x8xf32, #tpu.memory_space<vmem>>, %arg14: memref<8x224x256xf32, #tpu.memory_space<vmem>>, %arg15: memref<256x128xf32, #tpu.memory_space<vmem>>, %arg16: memref<128x128xf32, #tpu.memory_space<vmem>>, %arg17: memref<128x128xf32, #tpu.memory_space<vmem>>, %arg18: memref<128x8xf32, #tpu.memory_space<vmem>>, %arg19: memref<5x!tpu.dma_semaphore, #tpu.memory_space<semaphore_mem>>) attributes {dimension_semantics = [], scalar_prefetch = 0 : i64, scratch_operands = 6 : i64, tpu.core_type = #tpu.core_type<tc>} {
    %c0_i32 = arith.constant 0 : i32
    %0 = tpu.memref_slice %arg19[%c0_i32] : memref<5x!tpu.dma_semaphore, #tpu.memory_space<semaphore_mem>> -> memref<1x!tpu.dma_semaphore, #tpu.memory_space<semaphore_mem>>
    %1 = tpu.memref_squeeze %0 : memref<1x!tpu.dma_semaphore, #tpu.memory_space<semaphore_mem>> -> memref<!tpu.dma_semaphore, #tpu.memory_space<semaphore_mem>>
    tpu.enqueue_dma source(%arg8 : memref<8x224x256xf32, #tpu.memory_space<any>>) target(%arg14 : memref<8x224x256xf32, #tpu.memory_space<vmem>>) target_semaphore(%1 : memref<!tpu.dma_semaphore, #tpu.memory_space<semaphore_mem>>)
    %c1_i32 = arith.constant 1 : i32
    %2 = tpu.memref_slice %arg19[%c1_i32] : memref<5x!tpu.dma_semaphore, #tpu.memory_space<semaphore_mem>> -> memref<1x!tpu.dma_semaphore, #tpu.memory_space<semaphore_mem>>
    %3 = tpu.memref_squeeze %2 : memref<1x!tpu.dma_semaphore, #tpu.memory_space<semaphore_mem>> -> memref<!tpu.dma_semaphore, #tpu.memory_space<semaphore_mem>>
    tpu.enqueue_dma source(%arg9 : memref<256x128xf32, #tpu.memory_space<any>>) target(%arg15 : memref<256x128xf32, #tpu.memory_space<vmem>>) target_semaphore(%3 : memref<!tpu.dma_semaphore, #tpu.memory_space<semaphore_mem>>)
    %c2_i32 = arith.constant 2 : i32
    %4 = tpu.memref_slice %arg19[%c2_i32] : memref<5x!tpu.dma_semaphore, #tpu.memory_space<semaphore_mem>> -> memref<1x!tpu.dma_semaphore, #tpu.memory_space<semaphore_mem>>
    %5 = tpu.memref_squeeze %4 : memref<1x!tpu.dma_semaphore, #tpu.memory_space<semaphore_mem>> -> memref<!tpu.dma_semaphore, #tpu.memory_space<semaphore_mem>>
    tpu.enqueue_dma source(%arg10 : memref<128x128xf32, #tpu.memory_space<any>>) target(%arg16 : memref<128x128xf32, #tpu.memory_space<vmem>>) target_semaphore(%5 : memref<!tpu.dma_semaphore, #tpu.memory_space<semaphore_mem>>)
    %c3_i32 = arith.constant 3 : i32
    %6 = tpu.memref_slice %arg19[%c3_i32] : memref<5x!tpu.dma_semaphore, #tpu.memory_space<semaphore_mem>> -> memref<1x!tpu.dma_semaphore, #tpu.memory_space<semaphore_mem>>
    %7 = tpu.memref_squeeze %6 : memref<1x!tpu.dma_semaphore, #tpu.memory_space<semaphore_mem>> -> memref<!tpu.dma_semaphore, #tpu.memory_space<semaphore_mem>>
    tpu.enqueue_dma source(%arg11 : memref<128x128xf32, #tpu.memory_space<any>>) target(%arg17 : memref<128x128xf32, #tpu.memory_space<vmem>>) target_semaphore(%7 : memref<!tpu.dma_semaphore, #tpu.memory_space<semaphore_mem>>)
    %c4_i32 = arith.constant 4 : i32
    %8 = tpu.memref_slice %arg19[%c4_i32] : memref<5x!tpu.dma_semaphore, #tpu.memory_space<semaphore_mem>> -> memref<1x!tpu.dma_semaphore, #tpu.memory_space<semaphore_mem>>
    %9 = tpu.memref_squeeze %8 : memref<1x!tpu.dma_semaphore, #tpu.memory_space<semaphore_mem>> -> memref<!tpu.dma_semaphore, #tpu.memory_space<semaphore_mem>>
    tpu.enqueue_dma source(%arg12 : memref<128x8xf32, #tpu.memory_space<any>>) target(%arg18 : memref<128x8xf32, #tpu.memory_space<vmem>>) target_semaphore(%9 : memref<!tpu.dma_semaphore, #tpu.memory_space<semaphore_mem>>)
    %c0 = arith.constant 0 : index
    %c0_0 = arith.constant 0 : index
    %10 = vector.load %arg0[%c0, %c0_0] : memref<2x258xf32, #tpu.memory_space<vmem>>, vector<2x258xf32>
    %11 = vector.extract_strided_slice %10 {offsets = [0, 0], sizes = [2, 224], strides = [1, 1]} : vector<2x258xf32> to vector<2x224xf32>
    %12 = vector.extract_strided_slice %10 {offsets = [0, 1], sizes = [2, 224], strides = [1, 1]} : vector<2x258xf32> to vector<2x224xf32>
    %13 = vector.extract_strided_slice %10 {offsets = [0, 2], sizes = [2, 224], strides = [1, 1]} : vector<2x258xf32> to vector<2x224xf32>
    %14 = vector.extract_strided_slice %10 {offsets = [0, 16], sizes = [2, 224], strides = [1, 1]} : vector<2x258xf32> to vector<2x224xf32>
    %15 = vector.extract_strided_slice %10 {offsets = [0, 17], sizes = [2, 224], strides = [1, 1]} : vector<2x258xf32> to vector<2x224xf32>
    %16 = vector.extract_strided_slice %10 {offsets = [0, 18], sizes = [2, 224], strides = [1, 1]} : vector<2x258xf32> to vector<2x224xf32>
    %17 = vector.extract_strided_slice %10 {offsets = [0, 32], sizes = [2, 224], strides = [1, 1]} : vector<2x258xf32> to vector<2x224xf32>
    %18 = vector.extract_strided_slice %10 {offsets = [0, 33], sizes = [2, 224], strides = [1, 1]} : vector<2x258xf32> to vector<2x224xf32>
    %19 = vector.extract_strided_slice %10 {offsets = [0, 34], sizes = [2, 224], strides = [1, 1]} : vector<2x258xf32> to vector<2x224xf32>
    %c0_1 = arith.constant 0 : index
    %20 = memref.load %arg1[%c0_1] : memref<72xf32, #tpu.memory_space<smem>>
    %21 = vector.broadcast %20 : f32 to vector<2x224xf32>
    %22 = arith.mulf %11, %21 : vector<2x224xf32>
    %c1 = arith.constant 1 : index
    %23 = memref.load %arg1[%c1] : memref<72xf32, #tpu.memory_space<smem>>
    %24 = vector.broadcast %23 : f32 to vector<2x224xf32>
    %25 = arith.mulf %12, %24 : vector<2x224xf32>
    %26 = arith.addf %22, %25 : vector<2x224xf32>
    %c2 = arith.constant 2 : index
    %27 = memref.load %arg1[%c2] : memref<72xf32, #tpu.memory_space<smem>>
    %28 = vector.broadcast %27 : f32 to vector<2x224xf32>
    %29 = arith.mulf %13, %28 : vector<2x224xf32>
    %30 = arith.addf %26, %29 : vector<2x224xf32>
    %c3 = arith.constant 3 : index
    %31 = memref.load %arg1[%c3] : memref<72xf32, #tpu.memory_space<smem>>
    %32 = vector.broadcast %31 : f32 to vector<2x224xf32>
    %33 = arith.mulf %14, %32 : vector<2x224xf32>
    %34 = arith.addf %30, %33 : vector<2x224xf32>
    %c4 = arith.constant 4 : index
    %35 = memref.load %arg1[%c4] : memref<72xf32, #tpu.memory_space<smem>>
    %36 = vector.broadcast %35 : f32 to vector<2x224xf32>
    %37 = arith.mulf %15, %36 : vector<2x224xf32>
    %38 = arith.addf %34, %37 : vector<2x224xf32>
    %c5 = arith.constant 5 : index
    %39 = memref.load %arg1[%c5] : memref<72xf32, #tpu.memory_space<smem>>
    %40 = vector.broadcast %39 : f32 to vector<2x224xf32>
    %41 = arith.mulf %16, %40 : vector<2x224xf32>
    %42 = arith.addf %38, %41 : vector<2x224xf32>
    %c6 = arith.constant 6 : index
    %43 = memref.load %arg1[%c6] : memref<72xf32, #tpu.memory_space<smem>>
    %44 = vector.broadcast %43 : f32 to vector<2x224xf32>
    %45 = arith.mulf %17, %44 : vector<2x224xf32>
    %46 = arith.addf %42, %45 : vector<2x224xf32>
    %c7 = arith.constant 7 : index
    %47 = memref.load %arg1[%c7] : memref<72xf32, #tpu.memory_space<smem>>
    %48 = vector.broadcast %47 : f32 to vector<2x224xf32>
    %49 = arith.mulf %18, %48 : vector<2x224xf32>
    %50 = arith.addf %46, %49 : vector<2x224xf32>
    %c8 = arith.constant 8 : index
    %51 = memref.load %arg1[%c8] : memref<72xf32, #tpu.memory_space<smem>>
    %52 = vector.broadcast %51 : f32 to vector<2x224xf32>
    %53 = arith.mulf %19, %52 : vector<2x224xf32>
    %54 = arith.addf %50, %53 : vector<2x224xf32>
    %c0_2 = arith.constant 0 : index
    %55 = memref.load %arg2[%c0_2] : memref<8xf32, #tpu.memory_space<smem>>
    %56 = vector.broadcast %55 : f32 to vector<2x224xf32>
    %57 = arith.addf %54, %56 : vector<2x224xf32>
    %cst = arith.constant 0.000000e+00 : f32
    %58 = vector.broadcast %cst : f32 to vector<2x224xf32>
    %59 = arith.maximumf %57, %58 : vector<2x224xf32>
    %c9 = arith.constant 9 : index
    %60 = memref.load %arg1[%c9] : memref<72xf32, #tpu.memory_space<smem>>
    %61 = vector.broadcast %60 : f32 to vector<2x224xf32>
    %62 = arith.mulf %11, %61 : vector<2x224xf32>
    %c10 = arith.constant 10 : index
    %63 = memref.load %arg1[%c10] : memref<72xf32, #tpu.memory_space<smem>>
    %64 = vector.broadcast %63 : f32 to vector<2x224xf32>
    %65 = arith.mulf %12, %64 : vector<2x224xf32>
    %66 = arith.addf %62, %65 : vector<2x224xf32>
    %c11 = arith.constant 11 : index
    %67 = memref.load %arg1[%c11] : memref<72xf32, #tpu.memory_space<smem>>
    %68 = vector.broadcast %67 : f32 to vector<2x224xf32>
    %69 = arith.mulf %13, %68 : vector<2x224xf32>
    %70 = arith.addf %66, %69 : vector<2x224xf32>
    %c12 = arith.constant 12 : index
    %71 = memref.load %arg1[%c12] : memref<72xf32, #tpu.memory_space<smem>>
    %72 = vector.broadcast %71 : f32 to vector<2x224xf32>
    %73 = arith.mulf %14, %72 : vector<2x224xf32>
    %74 = arith.addf %70, %73 : vector<2x224xf32>
    %c13 = arith.constant 13 : index
    %75 = memref.load %arg1[%c13] : memref<72xf32, #tpu.memory_space<smem>>
    %76 = vector.broadcast %75 : f32 to vector<2x224xf32>
    %77 = arith.mulf %15, %76 : vector<2x224xf32>
    %78 = arith.addf %74, %77 : vector<2x224xf32>
    %c14 = arith.constant 14 : index
    %79 = memref.load %arg1[%c14] : memref<72xf32, #tpu.memory_space<smem>>
    %80 = vector.broadcast %79 : f32 to vector<2x224xf32>
    %81 = arith.mulf %16, %80 : vector<2x224xf32>
    %82 = arith.addf %78, %81 : vector<2x224xf32>
    %c15 = arith.constant 15 : index
    %83 = memref.load %arg1[%c15] : memref<72xf32, #tpu.memory_space<smem>>
    %84 = vector.broadcast %83 : f32 to vector<2x224xf32>
    %85 = arith.mulf %17, %84 : vector<2x224xf32>
    %86 = arith.addf %82, %85 : vector<2x224xf32>
    %c16 = arith.constant 16 : index
    %87 = memref.load %arg1[%c16] : memref<72xf32, #tpu.memory_space<smem>>
    %88 = vector.broadcast %87 : f32 to vector<2x224xf32>
    %89 = arith.mulf %18, %88 : vector<2x224xf32>
    %90 = arith.addf %86, %89 : vector<2x224xf32>
    %c17 = arith.constant 17 : index
    %91 = memref.load %arg1[%c17] : memref<72xf32, #tpu.memory_space<smem>>
    %92 = vector.broadcast %91 : f32 to vector<2x224xf32>
    %93 = arith.mulf %19, %92 : vector<2x224xf32>
    %94 = arith.addf %90, %93 : vector<2x224xf32>
    %c1_3 = arith.constant 1 : index
    %95 = memref.load %arg2[%c1_3] : memref<8xf32, #tpu.memory_space<smem>>
    %96 = vector.broadcast %95 : f32 to vector<2x224xf32>
    %97 = arith.addf %94, %96 : vector<2x224xf32>
    %cst_4 = arith.constant 0.000000e+00 : f32
    %98 = vector.broadcast %cst_4 : f32 to vector<2x224xf32>
    %99 = arith.maximumf %97, %98 : vector<2x224xf32>
    %c18 = arith.constant 18 : index
    %100 = memref.load %arg1[%c18] : memref<72xf32, #tpu.memory_space<smem>>
    %101 = vector.broadcast %100 : f32 to vector<2x224xf32>
    %102 = arith.mulf %11, %101 : vector<2x224xf32>
    %c19 = arith.constant 19 : index
    %103 = memref.load %arg1[%c19] : memref<72xf32, #tpu.memory_space<smem>>
    %104 = vector.broadcast %103 : f32 to vector<2x224xf32>
    %105 = arith.mulf %12, %104 : vector<2x224xf32>
    %106 = arith.addf %102, %105 : vector<2x224xf32>
    %c20 = arith.constant 20 : index
    %107 = memref.load %arg1[%c20] : memref<72xf32, #tpu.memory_space<smem>>
    %108 = vector.broadcast %107 : f32 to vector<2x224xf32>
    %109 = arith.mulf %13, %108 : vector<2x224xf32>
    %110 = arith.addf %106, %109 : vector<2x224xf32>
    %c21 = arith.constant 21 : index
    %111 = memref.load %arg1[%c21] : memref<72xf32, #tpu.memory_space<smem>>
    %112 = vector.broadcast %111 : f32 to vector<2x224xf32>
    %113 = arith.mulf %14, %112 : vector<2x224xf32>
    %114 = arith.addf %110, %113 : vector<2x224xf32>
    %c22 = arith.constant 22 : index
    %115 = memref.load %arg1[%c22] : memref<72xf32, #tpu.memory_space<smem>>
    %116 = vector.broadcast %115 : f32 to vector<2x224xf32>
    %117 = arith.mulf %15, %116 : vector<2x224xf32>
    %118 = arith.addf %114, %117 : vector<2x224xf32>
    %c23 = arith.constant 23 : index
    %119 = memref.load %arg1[%c23] : memref<72xf32, #tpu.memory_space<smem>>
    %120 = vector.broadcast %119 : f32 to vector<2x224xf32>
    %121 = arith.mulf %16, %120 : vector<2x224xf32>
    %122 = arith.addf %118, %121 : vector<2x224xf32>
    %c24 = arith.constant 24 : index
    %123 = memref.load %arg1[%c24] : memref<72xf32, #tpu.memory_space<smem>>
    %124 = vector.broadcast %123 : f32 to vector<2x224xf32>
    %125 = arith.mulf %17, %124 : vector<2x224xf32>
    %126 = arith.addf %122, %125 : vector<2x224xf32>
    %c25 = arith.constant 25 : index
    %127 = memref.load %arg1[%c25] : memref<72xf32, #tpu.memory_space<smem>>
    %128 = vector.broadcast %127 : f32 to vector<2x224xf32>
    %129 = arith.mulf %18, %128 : vector<2x224xf32>
    %130 = arith.addf %126, %129 : vector<2x224xf32>
    %c26 = arith.constant 26 : index
    %131 = memref.load %arg1[%c26] : memref<72xf32, #tpu.memory_space<smem>>
    %132 = vector.broadcast %131 : f32 to vector<2x224xf32>
    %133 = arith.mulf %19, %132 : vector<2x224xf32>
    %134 = arith.addf %130, %133 : vector<2x224xf32>
    %c2_5 = arith.constant 2 : index
    %135 = memref.load %arg2[%c2_5] : memref<8xf32, #tpu.memory_space<smem>>
    %136 = vector.broadcast %135 : f32 to vector<2x224xf32>
    %137 = arith.addf %134, %136 : vector<2x224xf32>
    %cst_6 = arith.constant 0.000000e+00 : f32
    %138 = vector.broadcast %cst_6 : f32 to vector<2x224xf32>
    %139 = arith.maximumf %137, %138 : vector<2x224xf32>
    %c27 = arith.constant 27 : index
    %140 = memref.load %arg1[%c27] : memref<72xf32, #tpu.memory_space<smem>>
    %141 = vector.broadcast %140 : f32 to vector<2x224xf32>
    %142 = arith.mulf %11, %141 : vector<2x224xf32>
    %c28 = arith.constant 28 : index
    %143 = memref.load %arg1[%c28] : memref<72xf32, #tpu.memory_space<smem>>
    %144 = vector.broadcast %143 : f32 to vector<2x224xf32>
    %145 = arith.mulf %12, %144 : vector<2x224xf32>
    %146 = arith.addf %142, %145 : vector<2x224xf32>
    %c29 = arith.constant 29 : index
    %147 = memref.load %arg1[%c29] : memref<72xf32, #tpu.memory_space<smem>>
    %148 = vector.broadcast %147 : f32 to vector<2x224xf32>
    %149 = arith.mulf %13, %148 : vector<2x224xf32>
    %150 = arith.addf %146, %149 : vector<2x224xf32>
    %c30 = arith.constant 30 : index
    %151 = memref.load %arg1[%c30] : memref<72xf32, #tpu.memory_space<smem>>
    %152 = vector.broadcast %151 : f32 to vector<2x224xf32>
    %153 = arith.mulf %14, %152 : vector<2x224xf32>
    %154 = arith.addf %150, %153 : vector<2x224xf32>
    %c31 = arith.constant 31 : index
    %155 = memref.load %arg1[%c31] : memref<72xf32, #tpu.memory_space<smem>>
    %156 = vector.broadcast %155 : f32 to vector<2x224xf32>
    %157 = arith.mulf %15, %156 : vector<2x224xf32>
    %158 = arith.addf %154, %157 : vector<2x224xf32>
    %c32 = arith.constant 32 : index
    %159 = memref.load %arg1[%c32] : memref<72xf32, #tpu.memory_space<smem>>
    %160 = vector.broadcast %159 : f32 to vector<2x224xf32>
    %161 = arith.mulf %16, %160 : vector<2x224xf32>
    %162 = arith.addf %158, %161 : vector<2x224xf32>
    %c33 = arith.constant 33 : index
    %163 = memref.load %arg1[%c33] : memref<72xf32, #tpu.memory_space<smem>>
    %164 = vector.broadcast %163 : f32 to vector<2x224xf32>
    %165 = arith.mulf %17, %164 : vector<2x224xf32>
    %166 = arith.addf %162, %165 : vector<2x224xf32>
    %c34 = arith.constant 34 : index
    %167 = memref.load %arg1[%c34] : memref<72xf32, #tpu.memory_space<smem>>
    %168 = vector.broadcast %167 : f32 to vector<2x224xf32>
    %169 = arith.mulf %18, %168 : vector<2x224xf32>
    %170 = arith.addf %166, %169 : vector<2x224xf32>
    %c35 = arith.constant 35 : index
    %171 = memref.load %arg1[%c35] : memref<72xf32, #tpu.memory_space<smem>>
    %172 = vector.broadcast %171 : f32 to vector<2x224xf32>
    %173 = arith.mulf %19, %172 : vector<2x224xf32>
    %174 = arith.addf %170, %173 : vector<2x224xf32>
    %c3_7 = arith.constant 3 : index
    %175 = memref.load %arg2[%c3_7] : memref<8xf32, #tpu.memory_space<smem>>
    %176 = vector.broadcast %175 : f32 to vector<2x224xf32>
    %177 = arith.addf %174, %176 : vector<2x224xf32>
    %cst_8 = arith.constant 0.000000e+00 : f32
    %178 = vector.broadcast %cst_8 : f32 to vector<2x224xf32>
    %179 = arith.maximumf %177, %178 : vector<2x224xf32>
    %c36 = arith.constant 36 : index
    %180 = memref.load %arg1[%c36] : memref<72xf32, #tpu.memory_space<smem>>
    %181 = vector.broadcast %180 : f32 to vector<2x224xf32>
    %182 = arith.mulf %11, %181 : vector<2x224xf32>
    %c37 = arith.constant 37 : index
    %183 = memref.load %arg1[%c37] : memref<72xf32, #tpu.memory_space<smem>>
    %184 = vector.broadcast %183 : f32 to vector<2x224xf32>
    %185 = arith.mulf %12, %184 : vector<2x224xf32>
    %186 = arith.addf %182, %185 : vector<2x224xf32>
    %c38 = arith.constant 38 : index
    %187 = memref.load %arg1[%c38] : memref<72xf32, #tpu.memory_space<smem>>
    %188 = vector.broadcast %187 : f32 to vector<2x224xf32>
    %189 = arith.mulf %13, %188 : vector<2x224xf32>
    %190 = arith.addf %186, %189 : vector<2x224xf32>
    %c39 = arith.constant 39 : index
    %191 = memref.load %arg1[%c39] : memref<72xf32, #tpu.memory_space<smem>>
    %192 = vector.broadcast %191 : f32 to vector<2x224xf32>
    %193 = arith.mulf %14, %192 : vector<2x224xf32>
    %194 = arith.addf %190, %193 : vector<2x224xf32>
    %c40 = arith.constant 40 : index
    %195 = memref.load %arg1[%c40] : memref<72xf32, #tpu.memory_space<smem>>
    %196 = vector.broadcast %195 : f32 to vector<2x224xf32>
    %197 = arith.mulf %15, %196 : vector<2x224xf32>
    %198 = arith.addf %194, %197 : vector<2x224xf32>
    %c41 = arith.constant 41 : index
    %199 = memref.load %arg1[%c41] : memref<72xf32, #tpu.memory_space<smem>>
    %200 = vector.broadcast %199 : f32 to vector<2x224xf32>
    %201 = arith.mulf %16, %200 : vector<2x224xf32>
    %202 = arith.addf %198, %201 : vector<2x224xf32>
    %c42 = arith.constant 42 : index
    %203 = memref.load %arg1[%c42] : memref<72xf32, #tpu.memory_space<smem>>
    %204 = vector.broadcast %203 : f32 to vector<2x224xf32>
    %205 = arith.mulf %17, %204 : vector<2x224xf32>
    %206 = arith.addf %202, %205 : vector<2x224xf32>
    %c43 = arith.constant 43 : index
    %207 = memref.load %arg1[%c43] : memref<72xf32, #tpu.memory_space<smem>>
    %208 = vector.broadcast %207 : f32 to vector<2x224xf32>
    %209 = arith.mulf %18, %208 : vector<2x224xf32>
    %210 = arith.addf %206, %209 : vector<2x224xf32>
    %c44 = arith.constant 44 : index
    %211 = memref.load %arg1[%c44] : memref<72xf32, #tpu.memory_space<smem>>
    %212 = vector.broadcast %211 : f32 to vector<2x224xf32>
    %213 = arith.mulf %19, %212 : vector<2x224xf32>
    %214 = arith.addf %210, %213 : vector<2x224xf32>
    %c4_9 = arith.constant 4 : index
    %215 = memref.load %arg2[%c4_9] : memref<8xf32, #tpu.memory_space<smem>>
    %216 = vector.broadcast %215 : f32 to vector<2x224xf32>
    %217 = arith.addf %214, %216 : vector<2x224xf32>
    %cst_10 = arith.constant 0.000000e+00 : f32
    %218 = vector.broadcast %cst_10 : f32 to vector<2x224xf32>
    %219 = arith.maximumf %217, %218 : vector<2x224xf32>
    %c45 = arith.constant 45 : index
    %220 = memref.load %arg1[%c45] : memref<72xf32, #tpu.memory_space<smem>>
    %221 = vector.broadcast %220 : f32 to vector<2x224xf32>
    %222 = arith.mulf %11, %221 : vector<2x224xf32>
    %c46 = arith.constant 46 : index
    %223 = memref.load %arg1[%c46] : memref<72xf32, #tpu.memory_space<smem>>
    %224 = vector.broadcast %223 : f32 to vector<2x224xf32>
    %225 = arith.mulf %12, %224 : vector<2x224xf32>
    %226 = arith.addf %222, %225 : vector<2x224xf32>
    %c47 = arith.constant 47 : index
    %227 = memref.load %arg1[%c47] : memref<72xf32, #tpu.memory_space<smem>>
    %228 = vector.broadcast %227 : f32 to vector<2x224xf32>
    %229 = arith.mulf %13, %228 : vector<2x224xf32>
    %230 = arith.addf %226, %229 : vector<2x224xf32>
    %c48 = arith.constant 48 : index
    %231 = memref.load %arg1[%c48] : memref<72xf32, #tpu.memory_space<smem>>
    %232 = vector.broadcast %231 : f32 to vector<2x224xf32>
    %233 = arith.mulf %14, %232 : vector<2x224xf32>
    %234 = arith.addf %230, %233 : vector<2x224xf32>
    %c49 = arith.constant 49 : index
    %235 = memref.load %arg1[%c49] : memref<72xf32, #tpu.memory_space<smem>>
    %236 = vector.broadcast %235 : f32 to vector<2x224xf32>
    %237 = arith.mulf %15, %236 : vector<2x224xf32>
    %238 = arith.addf %234, %237 : vector<2x224xf32>
    %c50 = arith.constant 50 : index
    %239 = memref.load %arg1[%c50] : memref<72xf32, #tpu.memory_space<smem>>
    %240 = vector.broadcast %239 : f32 to vector<2x224xf32>
    %241 = arith.mulf %16, %240 : vector<2x224xf32>
    %242 = arith.addf %238, %241 : vector<2x224xf32>
    %c51 = arith.constant 51 : index
    %243 = memref.load %arg1[%c51] : memref<72xf32, #tpu.memory_space<smem>>
    %244 = vector.broadcast %243 : f32 to vector<2x224xf32>
    %245 = arith.mulf %17, %244 : vector<2x224xf32>
    %246 = arith.addf %242, %245 : vector<2x224xf32>
    %c52 = arith.constant 52 : index
    %247 = memref.load %arg1[%c52] : memref<72xf32, #tpu.memory_space<smem>>
    %248 = vector.broadcast %247 : f32 to vector<2x224xf32>
    %249 = arith.mulf %18, %248 : vector<2x224xf32>
    %250 = arith.addf %246, %249 : vector<2x224xf32>
    %c53 = arith.constant 53 : index
    %251 = memref.load %arg1[%c53] : memref<72xf32, #tpu.memory_space<smem>>
    %252 = vector.broadcast %251 : f32 to vector<2x224xf32>
    %253 = arith.mulf %19, %252 : vector<2x224xf32>
    %254 = arith.addf %250, %253 : vector<2x224xf32>
    %c5_11 = arith.constant 5 : index
    %255 = memref.load %arg2[%c5_11] : memref<8xf32, #tpu.memory_space<smem>>
    %256 = vector.broadcast %255 : f32 to vector<2x224xf32>
    %257 = arith.addf %254, %256 : vector<2x224xf32>
    %cst_12 = arith.constant 0.000000e+00 : f32
    %258 = vector.broadcast %cst_12 : f32 to vector<2x224xf32>
    %259 = arith.maximumf %257, %258 : vector<2x224xf32>
    %c54 = arith.constant 54 : index
    %260 = memref.load %arg1[%c54] : memref<72xf32, #tpu.memory_space<smem>>
    %261 = vector.broadcast %260 : f32 to vector<2x224xf32>
    %262 = arith.mulf %11, %261 : vector<2x224xf32>
    %c55 = arith.constant 55 : index
    %263 = memref.load %arg1[%c55] : memref<72xf32, #tpu.memory_space<smem>>
    %264 = vector.broadcast %263 : f32 to vector<2x224xf32>
    %265 = arith.mulf %12, %264 : vector<2x224xf32>
    %266 = arith.addf %262, %265 : vector<2x224xf32>
    %c56 = arith.constant 56 : index
    %267 = memref.load %arg1[%c56] : memref<72xf32, #tpu.memory_space<smem>>
    %268 = vector.broadcast %267 : f32 to vector<2x224xf32>
    %269 = arith.mulf %13, %268 : vector<2x224xf32>
    %270 = arith.addf %266, %269 : vector<2x224xf32>
    %c57 = arith.constant 57 : index
    %271 = memref.load %arg1[%c57] : memref<72xf32, #tpu.memory_space<smem>>
    %272 = vector.broadcast %271 : f32 to vector<2x224xf32>
    %273 = arith.mulf %14, %272 : vector<2x224xf32>
    %274 = arith.addf %270, %273 : vector<2x224xf32>
    %c58 = arith.constant 58 : index
    %275 = memref.load %arg1[%c58] : memref<72xf32, #tpu.memory_space<smem>>
    %276 = vector.broadcast %275 : f32 to vector<2x224xf32>
    %277 = arith.mulf %15, %276 : vector<2x224xf32>
    %278 = arith.addf %274, %277 : vector<2x224xf32>
    %c59 = arith.constant 59 : index
    %279 = memref.load %arg1[%c59] : memref<72xf32, #tpu.memory_space<smem>>
    %280 = vector.broadcast %279 : f32 to vector<2x224xf32>
    %281 = arith.mulf %16, %280 : vector<2x224xf32>
    %282 = arith.addf %278, %281 : vector<2x224xf32>
    %c60 = arith.constant 60 : index
    %283 = memref.load %arg1[%c60] : memref<72xf32, #tpu.memory_space<smem>>
    %284 = vector.broadcast %283 : f32 to vector<2x224xf32>
    %285 = arith.mulf %17, %284 : vector<2x224xf32>
    %286 = arith.addf %282, %285 : vector<2x224xf32>
    %c61 = arith.constant 61 : index
    %287 = memref.load %arg1[%c61] : memref<72xf32, #tpu.memory_space<smem>>
    %288 = vector.broadcast %287 : f32 to vector<2x224xf32>
    %289 = arith.mulf %18, %288 : vector<2x224xf32>
    %290 = arith.addf %286, %289 : vector<2x224xf32>
    %c62 = arith.constant 62 : index
    %291 = memref.load %arg1[%c62] : memref<72xf32, #tpu.memory_space<smem>>
    %292 = vector.broadcast %291 : f32 to vector<2x224xf32>
    %293 = arith.mulf %19, %292 : vector<2x224xf32>
    %294 = arith.addf %290, %293 : vector<2x224xf32>
    %c6_13 = arith.constant 6 : index
    %295 = memref.load %arg2[%c6_13] : memref<8xf32, #tpu.memory_space<smem>>
    %296 = vector.broadcast %295 : f32 to vector<2x224xf32>
    %297 = arith.addf %294, %296 : vector<2x224xf32>
    %cst_14 = arith.constant 0.000000e+00 : f32
    %298 = vector.broadcast %cst_14 : f32 to vector<2x224xf32>
    %299 = arith.maximumf %297, %298 : vector<2x224xf32>
    %c63 = arith.constant 63 : index
    %300 = memref.load %arg1[%c63] : memref<72xf32, #tpu.memory_space<smem>>
    %301 = vector.broadcast %300 : f32 to vector<2x224xf32>
    %302 = arith.mulf %11, %301 : vector<2x224xf32>
    %c64 = arith.constant 64 : index
    %303 = memref.load %arg1[%c64] : memref<72xf32, #tpu.memory_space<smem>>
    %304 = vector.broadcast %303 : f32 to vector<2x224xf32>
    %305 = arith.mulf %12, %304 : vector<2x224xf32>
    %306 = arith.addf %302, %305 : vector<2x224xf32>
    %c65 = arith.constant 65 : index
    %307 = memref.load %arg1[%c65] : memref<72xf32, #tpu.memory_space<smem>>
    %308 = vector.broadcast %307 : f32 to vector<2x224xf32>
    %309 = arith.mulf %13, %308 : vector<2x224xf32>
    %310 = arith.addf %306, %309 : vector<2x224xf32>
    %c66 = arith.constant 66 : index
    %311 = memref.load %arg1[%c66] : memref<72xf32, #tpu.memory_space<smem>>
    %312 = vector.broadcast %311 : f32 to vector<2x224xf32>
    %313 = arith.mulf %14, %312 : vector<2x224xf32>
    %314 = arith.addf %310, %313 : vector<2x224xf32>
    %c67 = arith.constant 67 : index
    %315 = memref.load %arg1[%c67] : memref<72xf32, #tpu.memory_space<smem>>
    %316 = vector.broadcast %315 : f32 to vector<2x224xf32>
    %317 = arith.mulf %15, %316 : vector<2x224xf32>
    %318 = arith.addf %314, %317 : vector<2x224xf32>
    %c68 = arith.constant 68 : index
    %319 = memref.load %arg1[%c68] : memref<72xf32, #tpu.memory_space<smem>>
    %320 = vector.broadcast %319 : f32 to vector<2x224xf32>
    %321 = arith.mulf %16, %320 : vector<2x224xf32>
    %322 = arith.addf %318, %321 : vector<2x224xf32>
    %c69 = arith.constant 69 : index
    %323 = memref.load %arg1[%c69] : memref<72xf32, #tpu.memory_space<smem>>
    %324 = vector.broadcast %323 : f32 to vector<2x224xf32>
    %325 = arith.mulf %17, %324 : vector<2x224xf32>
    %326 = arith.addf %322, %325 : vector<2x224xf32>
    %c70 = arith.constant 70 : index
    %327 = memref.load %arg1[%c70] : memref<72xf32, #tpu.memory_space<smem>>
    %328 = vector.broadcast %327 : f32 to vector<2x224xf32>
    %329 = arith.mulf %18, %328 : vector<2x224xf32>
    %330 = arith.addf %326, %329 : vector<2x224xf32>
    %c71 = arith.constant 71 : index
    %331 = memref.load %arg1[%c71] : memref<72xf32, #tpu.memory_space<smem>>
    %332 = vector.broadcast %331 : f32 to vector<2x224xf32>
    %333 = arith.mulf %19, %332 : vector<2x224xf32>
    %334 = arith.addf %330, %333 : vector<2x224xf32>
    %c7_15 = arith.constant 7 : index
    %335 = memref.load %arg2[%c7_15] : memref<8xf32, #tpu.memory_space<smem>>
    %336 = vector.broadcast %335 : f32 to vector<2x224xf32>
    %337 = arith.addf %334, %336 : vector<2x224xf32>
    %cst_16 = arith.constant 0.000000e+00 : f32
    %338 = vector.broadcast %cst_16 : f32 to vector<2x224xf32>
    %339 = arith.maximumf %337, %338 : vector<2x224xf32>
    %c0_i32_17 = arith.constant 0 : i32
    %340 = tpu.memref_slice %arg19[%c0_i32_17] : memref<5x!tpu.dma_semaphore, #tpu.memory_space<semaphore_mem>> -> memref<1x!tpu.dma_semaphore, #tpu.memory_space<semaphore_mem>>
    %341 = tpu.memref_squeeze %340 : memref<1x!tpu.dma_semaphore, #tpu.memory_space<semaphore_mem>> -> memref<!tpu.dma_semaphore, #tpu.memory_space<semaphore_mem>>
    tpu.wait_dma2 semaphore(%341 : memref<!tpu.dma_semaphore, #tpu.memory_space<semaphore_mem>>) src(%arg8 : memref<8x224x256xf32, #tpu.memory_space<any>>) dst(%arg14 : memref<8x224x256xf32, #tpu.memory_space<vmem>>)
    %c0_18 = arith.constant 0 : index
    %c0_19 = arith.constant 0 : index
    %342 = vector.load %arg3[%c0_18, %c0_19] : memref<1x256xf32, #tpu.memory_space<vmem>>, vector<1x256xf32>
    %c0_20 = arith.constant 0 : index
    %c0_21 = arith.constant 0 : index
    %c0_22 = arith.constant 0 : index
    %343 = vector.load %arg14[%c0_20, %c0_21, %c0_22] : memref<8x224x256xf32, #tpu.memory_space<vmem>>, vector<1x224x256xf32>
    %344 = vector.shape_cast %343 : vector<1x224x256xf32> to vector<224x256xf32>
    %cst_23 = arith.constant dense<0.000000e+00> : vector<2x256xf32>
    %345 = tpu.matmul %59, %344, %cst_23 {dimension_numbers = #tpu.dot_dimension_numbers<[1], [0], [0], [1], [0, 0, 1, 1], [], []>} : vector<2x224xf32>, vector<224x256xf32>, vector<2x256xf32> -> vector<2x256xf32>
    %346 = vector.broadcast %342 : vector<1x256xf32> to vector<2x256xf32>
    %347 = arith.addf %346, %345 : vector<2x256xf32>
    %c1_24 = arith.constant 1 : index
    %c0_25 = arith.constant 0 : index
    %c0_26 = arith.constant 0 : index
    %348 = vector.load %arg14[%c1_24, %c0_25, %c0_26] : memref<8x224x256xf32, #tpu.memory_space<vmem>>, vector<1x224x256xf32>
    %349 = vector.shape_cast %348 : vector<1x224x256xf32> to vector<224x256xf32>
    %cst_27 = arith.constant dense<0.000000e+00> : vector<2x256xf32>
    %350 = tpu.matmul %99, %349, %cst_27 {dimension_numbers = #tpu.dot_dimension_numbers<[1], [0], [0], [1], [0, 0, 1, 1], [], []>} : vector<2x224xf32>, vector<224x256xf32>, vector<2x256xf32> -> vector<2x256xf32>
    %351 = arith.addf %347, %350 : vector<2x256xf32>
    %c2_28 = arith.constant 2 : index
    %c0_29 = arith.constant 0 : index
    %c0_30 = arith.constant 0 : index
    %352 = vector.load %arg14[%c2_28, %c0_29, %c0_30] : memref<8x224x256xf32, #tpu.memory_space<vmem>>, vector<1x224x256xf32>
    %353 = vector.shape_cast %352 : vector<1x224x256xf32> to vector<224x256xf32>
    %cst_31 = arith.constant dense<0.000000e+00> : vector<2x256xf32>
    %354 = tpu.matmul %139, %353, %cst_31 {dimension_numbers = #tpu.dot_dimension_numbers<[1], [0], [0], [1], [0, 0, 1, 1], [], []>} : vector<2x224xf32>, vector<224x256xf32>, vector<2x256xf32> -> vector<2x256xf32>
    %355 = arith.addf %351, %354 : vector<2x256xf32>
    %c3_32 = arith.constant 3 : index
    %c0_33 = arith.constant 0 : index
    %c0_34 = arith.constant 0 : index
    %356 = vector.load %arg14[%c3_32, %c0_33, %c0_34] : memref<8x224x256xf32, #tpu.memory_space<vmem>>, vector<1x224x256xf32>
    %357 = vector.shape_cast %356 : vector<1x224x256xf32> to vector<224x256xf32>
    %cst_35 = arith.constant dense<0.000000e+00> : vector<2x256xf32>
    %358 = tpu.matmul %179, %357, %cst_35 {dimension_numbers = #tpu.dot_dimension_numbers<[1], [0], [0], [1], [0, 0, 1, 1], [], []>} : vector<2x224xf32>, vector<224x256xf32>, vector<2x256xf32> -> vector<2x256xf32>
    %359 = arith.addf %355, %358 : vector<2x256xf32>
    %c4_36 = arith.constant 4 : index
    %c0_37 = arith.constant 0 : index
    %c0_38 = arith.constant 0 : index
    %360 = vector.load %arg14[%c4_36, %c0_37, %c0_38] : memref<8x224x256xf32, #tpu.memory_space<vmem>>, vector<1x224x256xf32>
    %361 = vector.shape_cast %360 : vector<1x224x256xf32> to vector<224x256xf32>
    %cst_39 = arith.constant dense<0.000000e+00> : vector<2x256xf32>
    %362 = tpu.matmul %219, %361, %cst_39 {dimension_numbers = #tpu.dot_dimension_numbers<[1], [0], [0], [1], [0, 0, 1, 1], [], []>} : vector<2x224xf32>, vector<224x256xf32>, vector<2x256xf32> -> vector<2x256xf32>
    %363 = arith.addf %359, %362 : vector<2x256xf32>
    %c5_40 = arith.constant 5 : index
    %c0_41 = arith.constant 0 : index
    %c0_42 = arith.constant 0 : index
    %364 = vector.load %arg14[%c5_40, %c0_41, %c0_42] : memref<8x224x256xf32, #tpu.memory_space<vmem>>, vector<1x224x256xf32>
    %365 = vector.shape_cast %364 : vector<1x224x256xf32> to vector<224x256xf32>
    %cst_43 = arith.constant dense<0.000000e+00> : vector<2x256xf32>
    %366 = tpu.matmul %259, %365, %cst_43 {dimension_numbers = #tpu.dot_dimension_numbers<[1], [0], [0], [1], [0, 0, 1, 1], [], []>} : vector<2x224xf32>, vector<224x256xf32>, vector<2x256xf32> -> vector<2x256xf32>
    %367 = arith.addf %363, %366 : vector<2x256xf32>
    %c6_44 = arith.constant 6 : index
    %c0_45 = arith.constant 0 : index
    %c0_46 = arith.constant 0 : index
    %368 = vector.load %arg14[%c6_44, %c0_45, %c0_46] : memref<8x224x256xf32, #tpu.memory_space<vmem>>, vector<1x224x256xf32>
    %369 = vector.shape_cast %368 : vector<1x224x256xf32> to vector<224x256xf32>
    %cst_47 = arith.constant dense<0.000000e+00> : vector<2x256xf32>
    %370 = tpu.matmul %299, %369, %cst_47 {dimension_numbers = #tpu.dot_dimension_numbers<[1], [0], [0], [1], [0, 0, 1, 1], [], []>} : vector<2x224xf32>, vector<224x256xf32>, vector<2x256xf32> -> vector<2x256xf32>
    %371 = arith.addf %367, %370 : vector<2x256xf32>
    %c7_48 = arith.constant 7 : index
    %c0_49 = arith.constant 0 : index
    %c0_50 = arith.constant 0 : index
    %372 = vector.load %arg14[%c7_48, %c0_49, %c0_50] : memref<8x224x256xf32, #tpu.memory_space<vmem>>, vector<1x224x256xf32>
    %373 = vector.shape_cast %372 : vector<1x224x256xf32> to vector<224x256xf32>
    %cst_51 = arith.constant dense<0.000000e+00> : vector<2x256xf32>
    %374 = tpu.matmul %339, %373, %cst_51 {dimension_numbers = #tpu.dot_dimension_numbers<[1], [0], [0], [1], [0, 0, 1, 1], [], []>} : vector<2x224xf32>, vector<224x256xf32>, vector<2x256xf32> -> vector<2x256xf32>
    %375 = arith.addf %371, %374 : vector<2x256xf32>
    %c1_i32_52 = arith.constant 1 : i32
    %376 = tpu.memref_slice %arg19[%c1_i32_52] : memref<5x!tpu.dma_semaphore, #tpu.memory_space<semaphore_mem>> -> memref<1x!tpu.dma_semaphore, #tpu.memory_space<semaphore_mem>>
    %377 = tpu.memref_squeeze %376 : memref<1x!tpu.dma_semaphore, #tpu.memory_space<semaphore_mem>> -> memref<!tpu.dma_semaphore, #tpu.memory_space<semaphore_mem>>
    tpu.wait_dma2 semaphore(%377 : memref<!tpu.dma_semaphore, #tpu.memory_space<semaphore_mem>>) src(%arg9 : memref<256x128xf32, #tpu.memory_space<any>>) dst(%arg15 : memref<256x128xf32, #tpu.memory_space<vmem>>)
    %c0_53 = arith.constant 0 : index
    %c0_54 = arith.constant 0 : index
    %378 = vector.load %arg15[%c0_53, %c0_54] : memref<256x128xf32, #tpu.memory_space<vmem>>, vector<256x128xf32>
    %cst_55 = arith.constant dense<0.000000e+00> : vector<2x128xf32>
    %379 = tpu.matmul %375, %378, %cst_55 {dimension_numbers = #tpu.dot_dimension_numbers<[1], [0], [0], [1], [0, 0, 1, 1], [], []>} : vector<2x256xf32>, vector<256x128xf32>, vector<2x128xf32> -> vector<2x128xf32>
    %c0_56 = arith.constant 0 : index
    %c0_57 = arith.constant 0 : index
    %380 = vector.load %arg4[%c0_56, %c0_57] : memref<1x128xf32, #tpu.memory_space<vmem>>, vector<1x128xf32>
    %381 = vector.broadcast %380 : vector<1x128xf32> to vector<2x128xf32>
    %382 = arith.addf %379, %381 : vector<2x128xf32>
    %cst_58 = arith.constant 0.000000e+00 : f32
    %383 = vector.broadcast %cst_58 : f32 to vector<2x128xf32>
    %384 = arith.maximumf %382, %383 : vector<2x128xf32>
    %c2_i32_59 = arith.constant 2 : i32
    %385 = tpu.memref_slice %arg19[%c2_i32_59] : memref<5x!tpu.dma_semaphore, #tpu.memory_space<semaphore_mem>> -> memref<1x!tpu.dma_semaphore, #tpu.memory_space<semaphore_mem>>
    %386 = tpu.memref_squeeze %385 : memref<1x!tpu.dma_semaphore, #tpu.memory_space<semaphore_mem>> -> memref<!tpu.dma_semaphore, #tpu.memory_space<semaphore_mem>>
    tpu.wait_dma2 semaphore(%386 : memref<!tpu.dma_semaphore, #tpu.memory_space<semaphore_mem>>) src(%arg10 : memref<128x128xf32, #tpu.memory_space<any>>) dst(%arg16 : memref<128x128xf32, #tpu.memory_space<vmem>>)
    %c0_60 = arith.constant 0 : index
    %c0_61 = arith.constant 0 : index
    %387 = vector.load %arg16[%c0_60, %c0_61] : memref<128x128xf32, #tpu.memory_space<vmem>>, vector<128x128xf32>
    %cst_62 = arith.constant dense<0.000000e+00> : vector<2x128xf32>
    %388 = tpu.matmul %384, %387, %cst_62 {dimension_numbers = #tpu.dot_dimension_numbers<[1], [0], [0], [1], [0, 0, 1, 1], [], []>} : vector<2x128xf32>, vector<128x128xf32>, vector<2x128xf32> -> vector<2x128xf32>
    %c0_63 = arith.constant 0 : index
    %c0_64 = arith.constant 0 : index
    %389 = vector.load %arg5[%c0_63, %c0_64] : memref<1x128xf32, #tpu.memory_space<vmem>>, vector<1x128xf32>
    %390 = vector.broadcast %389 : vector<1x128xf32> to vector<2x128xf32>
    %391 = arith.addf %388, %390 : vector<2x128xf32>
    %cst_65 = arith.constant 0.000000e+00 : f32
    %392 = vector.broadcast %cst_65 : f32 to vector<2x128xf32>
    %393 = arith.maximumf %391, %392 : vector<2x128xf32>
    %c3_i32_66 = arith.constant 3 : i32
    %394 = tpu.memref_slice %arg19[%c3_i32_66] : memref<5x!tpu.dma_semaphore, #tpu.memory_space<semaphore_mem>> -> memref<1x!tpu.dma_semaphore, #tpu.memory_space<semaphore_mem>>
    %395 = tpu.memref_squeeze %394 : memref<1x!tpu.dma_semaphore, #tpu.memory_space<semaphore_mem>> -> memref<!tpu.dma_semaphore, #tpu.memory_space<semaphore_mem>>
    tpu.wait_dma2 semaphore(%395 : memref<!tpu.dma_semaphore, #tpu.memory_space<semaphore_mem>>) src(%arg11 : memref<128x128xf32, #tpu.memory_space<any>>) dst(%arg17 : memref<128x128xf32, #tpu.memory_space<vmem>>)
    %c0_67 = arith.constant 0 : index
    %c0_68 = arith.constant 0 : index
    %396 = vector.load %arg17[%c0_67, %c0_68] : memref<128x128xf32, #tpu.memory_space<vmem>>, vector<128x128xf32>
    %cst_69 = arith.constant dense<0.000000e+00> : vector<2x128xf32>
    %397 = tpu.matmul %393, %396, %cst_69 {dimension_numbers = #tpu.dot_dimension_numbers<[1], [0], [0], [1], [0, 0, 1, 1], [], []>} : vector<2x128xf32>, vector<128x128xf32>, vector<2x128xf32> -> vector<2x128xf32>
    %c0_70 = arith.constant 0 : index
    %c0_71 = arith.constant 0 : index
    %398 = vector.load %arg6[%c0_70, %c0_71] : memref<1x128xf32, #tpu.memory_space<vmem>>, vector<1x128xf32>
    %399 = vector.broadcast %398 : vector<1x128xf32> to vector<2x128xf32>
    %400 = arith.addf %397, %399 : vector<2x128xf32>
    %cst_72 = arith.constant 0.000000e+00 : f32
    %401 = vector.broadcast %cst_72 : f32 to vector<2x128xf32>
    %402 = arith.maximumf %400, %401 : vector<2x128xf32>
    %c4_i32_73 = arith.constant 4 : i32
    %403 = tpu.memref_slice %arg19[%c4_i32_73] : memref<5x!tpu.dma_semaphore, #tpu.memory_space<semaphore_mem>> -> memref<1x!tpu.dma_semaphore, #tpu.memory_space<semaphore_mem>>
    %404 = tpu.memref_squeeze %403 : memref<1x!tpu.dma_semaphore, #tpu.memory_space<semaphore_mem>> -> memref<!tpu.dma_semaphore, #tpu.memory_space<semaphore_mem>>
    tpu.wait_dma2 semaphore(%404 : memref<!tpu.dma_semaphore, #tpu.memory_space<semaphore_mem>>) src(%arg12 : memref<128x8xf32, #tpu.memory_space<any>>) dst(%arg18 : memref<128x8xf32, #tpu.memory_space<vmem>>)
    %c0_74 = arith.constant 0 : index
    %c0_75 = arith.constant 0 : index
    %405 = vector.load %arg18[%c0_74, %c0_75] : memref<128x8xf32, #tpu.memory_space<vmem>>, vector<128x8xf32>
    %cst_76 = arith.constant dense<0.000000e+00> : vector<2x8xf32>
    %406 = tpu.matmul %402, %405, %cst_76 {dimension_numbers = #tpu.dot_dimension_numbers<[1], [0], [0], [1], [0, 0, 1, 1], [], []>} : vector<2x128xf32>, vector<128x8xf32>, vector<2x8xf32> -> vector<2x8xf32>
    %c0_77 = arith.constant 0 : index
    %c0_78 = arith.constant 0 : index
    %407 = vector.load %arg7[%c0_77, %c0_78] : memref<1x8xf32, #tpu.memory_space<vmem>>, vector<1x8xf32>
    %408 = vector.broadcast %407 : vector<1x8xf32> to vector<2x8xf32>
    %409 = arith.addf %406, %408 : vector<2x8xf32>
    %c0_79 = arith.constant 0 : index
    %c0_80 = arith.constant 0 : index
    %410 = vector.load %arg13[%c0_79, %c0_80] : memref<2x8xf32, #tpu.memory_space<vmem>>, vector<2x8xf32>
    tpu.vector_store %arg13[%c0_79, %c0_80], %409 {strides = array<i32>} : memref<2x8xf32, #tpu.memory_space<vmem>>, vector<2x8xf32>,
    return
  }
}

</mosaic_0001>

<bundles_post_ra>
// kernel: goal_cond_grid_convnet.1
= control target key start
LH: loop header
LB: loop body
LE: loop exit
PB: predicated region body
PF: predicated region fallthrough
CT: control target
= control target key end

     0   :  { %18 = vsyncpa [#allocation11], 0  ;;  %s3451_s0 = inlined_call_operand.vmem [shape: f32[2,258], index: 0, kind: input, shape index: {}]   ;;  %s3452_s1 = inlined_call_operand.hbm [shape: f32[72], index: 1, kind: input, shape index: {}]   ;;  %s3453_s2 = inlined_call_operand.hbm [shape: f32[8], index: 2, kind: input, shape index: {}]   ;;  %s3454_s3 = inlined_call_operand.hbm [shape: f32[1,256], index: 3, kind: input, shape index: {}]   ;;  %s3455_s4 = inlined_call_operand.hbm [shape: f32[1,128], index: 4, kind: input, shape index: {}]   ;;  %s3456_s5 = inlined_call_operand.hbm [shape: f32[1,128], index: 5, kind: input, shape index: {}]   ;;  %s3457_s6 = inlined_call_operand.hbm [shape: f32[1,128], index: 6, kind: input, shape index: {}]   ;;  %s3458_s7 = inlined_call_operand.hbm [shape: f32[1,8], index: 7, kind: input, shape index: {}]   ;;  %s3459_s8 = inlined_call_operand.hbm [shape: f32[8,224,256], index: 8, kind: input, shape index: {}]   ;;  %s3460_s9 = inlined_call_operand.hbm [shape: f32[256,128], index: 9, kind: input, shape index: {}]   ;;  %s3461_s10 = inlined_call_operand.hbm [shape: f32[128,128], index: 10, kind: input, shape index: {}]   ;;  %s3462_s11 = inlined_call_operand.hbm [shape: f32[128,128], index: 11, kind: input, shape index: {}]   ;;  %s3463_s12 = inlined_call_operand.vmem [shape: f32[128,8], index: 12, kind: input, shape index: {}]   ;;  %s3464_s13 = inlined_call_operand.hbm [shape: f32[2,8], index: 13, kind: output, shape index: {}]  }
   0x1   :  { %19 = vsyncpa [#allocation13], 0 }
   0x2   :  { %20 = vsyncpa [#allocation9], 0 }
   0x3   :  { %21 = vsyncpa [#allocation16], 0 }
   0x4   :  { %22 = vsyncpa [#allocation19], 0  ;;  %s60_s27 = sshll.u32 %s3455_s4, 4  ;;  %s61_s27 = int_to_ptr.hbm [resolvable:$true] %s60_s27 }
   0x5   :  { %23 = vsyncpa [#allocation10], 0  ;;  %s2795_s28 = smov [#allocation15]   ;;  %s82_s15 = sshll.u32 %s3457_s6, 4  ;;  %s83_s15 = int_to_ptr.hbm [resolvable:$true] %s82_s15 }
   0x6   :  { %s62_s29 = sshll.u32 %s2795_s28, 4  ;;  %s2796_s16 = smov [#allocation18]   ;;  %s63_s29 = int_to_ptr.vmem [resolvable:$true] %s62_s29 }
   0x7   :  { %65 = dma.hbm_to_vmem [thread:$0]  %s61_s27, 16, %s63_s29, [#allocation16]  }
   0x8   :  { %s84_s17 = sshll.u32 %s2796_s16, 4  ;;  %s31_s20 = sshll.u32 %s3452_s1, 4  ;;  %s85_s17 = int_to_ptr.vmem [resolvable:$true] %s84_s17  ;;  %s32_s20 = int_to_ptr.hbm [resolvable:$true] %s31_s20 }
   0x9   :  { %87 = dma.hbm_to_vmem [thread:$0]  %s83_s15, 16, %s85_s17, [#allocation19]  }
   0xa   :  { %s40_s22 = sshll.u32 %s3453_s2, 4  ;;  %s2797_s23 = smov [#allocation8]   ;;  %s41_s22 = int_to_ptr.hbm [resolvable:$true] %s40_s22 }
   0xb   :  { %34 = dma.hbm_to_smem %s32_s20, 16, %s2797_s23, [#allocation11]  }
   0xc   :  { %s2798_s24 = smov [#allocation12]   ;;  %s49_s26 = sshll.u32 %s3454_s3, 4  ;;  %s50_s26 = int_to_ptr.hbm [resolvable:$true] %s49_s26 }
   0xd   :  { %43 = dma.hbm_to_smem %s41_s22, 16, %s2798_s24, [#allocation13]  }
   0xe   :  { %s2799_s27 = smov [#allocation14]   ;;  %s71_s30 = sshll.u32 %s3456_s5, 4  ;;  %s72_s30 = int_to_ptr.hbm [resolvable:$true] %s71_s30 }
   0xf   :  { %s51_s28 = sshll.u32 %s2799_s27, 4  ;;  %s2800_s2 = smov [#allocation17]   ;;  %s52_s28 = int_to_ptr.vmem [resolvable:$true] %s51_s28 }
  0x10   :  { %54 = dma.hbm_to_vmem [thread:$0]  %s50_s26, 32, %s52_s28, [#allocation9]  }
  0x11   :  { %s73_s14 = sshll.u32 %s2800_s2, 4  ;;  %s93_s17 = sshll.u32 %s3458_s7, 4  ;;  %s74_s14 = int_to_ptr.vmem [resolvable:$true] %s73_s14  ;;  %s94_s17 = int_to_ptr.hbm [resolvable:$true] %s93_s17 }
  0x12   :  { %76 = dma.hbm_to_vmem [thread:$0]  %s72_s30, 16, %s74_s14, [#allocation16]  }
  0x13   :  { %s2801_s3 = smov [#allocation20]  }
  0x14   :  { %s95_s18 = sshll.u32 %s2801_s3, 4  ;;  %s96_s18 = int_to_ptr.vmem [resolvable:$true] %s95_s18 }
  0x15   :  { %98 = dma.hbm_to_vmem [thread:$0]  %s94_s17, 16, %s96_s18, [#allocation19]  }
  0x16   :  { %2773 = dma.done.wait [#allocation11], 16  }
  0x17   :  { %2774 = vsyncadd [#allocation11], 4294967280 }
  0x18   :  { %2775 = dma.done.wait [#allocation13], 16  }
  0x19   :  { %2776 = vsyncadd [#allocation13], 4294967280 }
  0x1a   :  { %2777 = dma.done.wait [#allocation9], 32  }
  0x1b   :  { %2778 = vsyncadd [#allocation9], 4294967264 }
  0x1c   :  { %2779 = dma.done.wait [#allocation16], 32  }
  0x1d   :  { %2780 = vsyncadd [#allocation16], 4294967264 }
  0x1e   :  { %2781 = dma.done.wait [#allocation19], 32  }
  0x1f   :  { %2782 = vsyncadd [#allocation19], 4294967264 }
  0x20   :  { %127 = sfence }
  0x21   :  { %s135_s19 = sshll.u32 %s3459_s8, 4  ;;  %v2912_v0 = vld [vmem:[%s3463_s12] sm:$0xff]  ;;  %v2917_v1 = vld [vmem:[%s3463_s12 + $0x8] sm:$0xff]  ;;  %v2922_v2 = vld [vmem:[%s3463_s12 + $0x10] sm:$0xff]  ;;  %s2802_s6 = smov [#allocation2]   ;;  %s136_s19 = int_to_ptr.hbm [resolvable:$true] %s135_s19 }
  0x22   :  { %s137_s25 = sshll.u32 %s2802_s6, 4  ;;  %v2927_v3 = vld [vmem:[%s3463_s12 + $0x18] sm:$0xff]  ;;  %v2932_v4 = vld [vmem:[%s3463_s12 + $0x20] sm:$0xff]  ;;  %v2937_v5 = vld [vmem:[%s3463_s12 + $0x28] sm:$0xff]  ;;  %s149_s14 = sshll.u32 %s3460_s9, 4  ;;  %s138_s25 = int_to_ptr.vmem [resolvable:$true] %s137_s25  ;;  %s150_s14 = int_to_ptr.hbm [resolvable:$true] %s149_s14 }
  0x23   :  { %v2945_v6 = vld [vmem:[%s3463_s12 + $0x30] sm:$0xff]  ;;  %v2950_v7 = vld [vmem:[%s3463_s12 + $0x38] sm:$0xff]  ;;  %v2955_v8 = vld [vmem:[%s3463_s12 + $0x40] sm:$0xff]  ;;  %140 = dma.hbm_to_vmem [thread:$0]  %s136_s19, 57344, %s138_s25, [#allocation7] }
  0x24   :  { %v2960_v9 = vld [vmem:[%s3463_s12 + $0x48] sm:$0xff]  ;;  %v2965_v10 = vld [vmem:[%s3463_s12 + $0x50] sm:$0xff]  ;;  %v2970_v11 = vld [vmem:[%s3463_s12 + $0x58] sm:$0xff]  ;;  %s2803_s8 = smov [#allocation3]   ;;  %s163_s29 = sshll.u32 %s3461_s10, 4  ;;  %s164_s29 = int_to_ptr.hbm [resolvable:$true] %s163_s29 }
  0x25   :  { %v2975_v12 = vld [vmem:[%s3463_s12 + $0x60] sm:$0xff]  ;;  %v2980_v13 = vld [vmem:[%s3463_s12 + $0x68] sm:$0xff]  ;;  %v2985_v14 = vld [vmem:[%s3463_s12 + $0x70] sm:$0xff]  ;;  %s151_s27 = sshll.u32 %s2803_s8, 4  ;;  %s177_s17 = sshll.u32 %s3462_s11, 4  ;;  %s152_s27 = int_to_ptr.vmem [resolvable:$true] %s151_s27  ;;  %s178_s17 = int_to_ptr.hbm [resolvable:$true] %s177_s17 }
  0x26   :  { %v2993_v15 = vld [vmem:[%s3463_s12 + $0x78] sm:$0xff]  ;;  %154 = dma.hbm_to_vmem [thread:$0]  %s150_s14, 4096, %s152_s27, [#allocation7 + $0x1] }
  0x27   :  { %s2804_s3 = smov [#allocation4]   ;;  %s2805_s5 = smov [#allocation5]  }
  0x28   :  { %s165_s18 = sshll.u32 %s2804_s3, 4  ;;  %s179_s7 = sshll.u32 %s2805_s5, 4  ;;  %s166_s18 = int_to_ptr.vmem [resolvable:$true] %s165_s18  ;;  %s180_s7 = int_to_ptr.vmem [resolvable:$true] %s179_s7 }
  0x29   :  { %168 = dma.hbm_to_vmem [thread:$0]  %s164_s29, 2048, %s166_s18, [#allocation7 + $0x2] }
  0x2a   :  { %182 = dma.hbm_to_vmem [thread:$0]  %s178_s17, 2048, %s180_s7, [#allocation7 + $0x3] }
  0x2b   :  { %s2387_s10 = sld [smem:[#allocation8 + $0x3]] }
  0x2c   :  { %s2385_s20 = sld [smem:[#allocation8 + $0x1]] }
  0x2d   :  { %231 = vsyncadd [#allocation7 + $0x4], 2048  ;;  %s2389_s12 = sld [smem:[#allocation8 + $0x5]]  ;;  %v3001_v16 = vld [vmem:[%s3451_s0] sm:$0x3f]  ;;  %s2806_s22 = smov 112  }
  0x2e   :  { %s2388_s9 = sld [smem:[#allocation8 + $0x4]]  ;;  %s2807_s23 = smov 127   ;;  %vm243_vm0 = vcmask 1039360   ;;  %vm254_vm1 = vcmask 1031168   ;;  %vm265_vm2 = vcmask 916480   ;;  %vm276_vm3 = vcmask 908288  }
  0x2f   :  { %s2386_s11 = sld [smem:[#allocation8 + $0x2]]  ;;  %s2808_s19 = smov 110   ;;  %vm287_vm4 = vcmask 900096   ;;  %vm298_vm5 = vcmask 785408   ;;  %vm309_vm6 = vcmask 777216   ;;  %vm320_vm7 = vcmask 769024  }
  0x30   :  { %s2390_s21 = sld [smem:[#allocation8 + $0x6]]  ;;  %s2809_s26 = smov 111  }
  0x31   :  { %v259_v17 = vstv %s2387_s10  ;;  %s2392_s24 = sld [smem:[#allocation8 + $0x8]]  ;;  %s2810_s8 = smov 126  }
  0x32   :  { %v260_v18 = vmul.f32 %v259_v17, %v3001_v16  ;;  %v237_v19 = vstv %s2385_s20  ;;  %s2391_s6 = sld [smem:[#allocation8 + $0x7]]  ;;  %s2811_s28 = smov 96  }
  0x33   :  { %v238_v20 = vmul.f32 %v237_v19, %v3001_v16  ;;  %v281_v21 = vstv %s2389_s12  ;;  %s2394_s25 = sld [smem:[#allocation8 + $0xa]]  ;;  %s2812_s30 = smov 94  }
  0x34   :  { %262 = vrot.lane.b32.xlu1 %v260_v18, %s2806_s22  ;;  %v282_v22 = vmul.f32 %v281_v21, %v3001_v16  ;;  %v270_v23 = vstv %s2388_s9  ;;  %s2396_s27 = sld [smem:[#allocation8 + $0xc]]  ;;  %s2813_s2 = smov 95  }
  0x35   :  { %240 = vrot.lane.b32.xlu0 %v238_v20, %s2807_s23  ;;  %v248_v24 = vstv %s2386_s11  ;;  %v271_v26 = vmul.f32 %v270_v23, %v3001_v16  ;;  %s2395_s1 = sld [smem:[#allocation8 + $0xb]] }
  0x36   :  { %284 = vrot.lane.b32.xlu2 %v282_v22, %s2808_s19  ;;  %v292_v25 = vstv %s2390_s21  ;;  %v249_v27 = vmul.f32 %v248_v24, %v3001_v16  ;;  %s2397_s29 = sld [smem:[#allocation8 + $0xd]] }
  0x37   :  { %v293_v28 = vmul.f32 %v292_v25, %v3001_v16  ;;  %v314_v29 = vstv %s2392_s24  ;;  %s2399_s15 = sld [smem:[#allocation8 + $0xf]] }
  0x38   :  { %v303_v30 = vstv %s2391_s6  ;;  %v315_v32 = vmul.f32 %v314_v29, %v3001_v16  ;;  %s2398_s16 = sld [smem:[#allocation8 + $0xe]] }
  0x39   :  { %v332_v31 = vstv %s2394_s25  ;;  %v304_v33 = vmul.f32 %v303_v30, %v3001_v16  ;;  %s2400_s17 = sld [smem:[#allocation8 + $0x10]] }
  0x3a   :  { %v333_v34 = vmul.f32 %v332_v31, %v3001_v16  ;;  %v352_v35 = vstv %s2396_s27  ;;  %s2404_s3 = sld [smem:[#allocation8 + $0x13]] }
  0x3b   :  { %v342_v36 = vstv %s2395_s1  ;;  %v353_v38 = vmul.f32 %v352_v35, %v3001_v16  ;;  %s2401_s18 = sld [smem:[#allocation8 + $0x11]] }
  0x3c   :  { %273 = vrot.lane.b32.xlu1 %v271_v26, %s2809_s26  ;;  %v362_v37 = vstv %s2397_s29  ;;  %v343_v39 = vmul.f32 %v342_v36, %v3001_v16  ;;  %s2405_s5 = sld [smem:[#allocation8 + $0x14]] }
  0x3d   :  { %251 = vrot.lane.b32.xlu0 %v249_v27, %s2810_s8  ;;  %v363_v40 = vmul.f32 %v362_v37, %v3001_v16  ;;  %v382_v41 = vstv %s2399_s15  ;;  %s2407_s7 = sld [smem:[#allocation8 + $0x16]] }
  0x3e   :  { %295 = vrot.lane.b32.xlu2 %v293_v28, %s2811_s28  ;;  %v372_v42 = vstv %s2398_s16  ;;  %v383_v44 = vmul.f32 %v382_v41, %v3001_v16  ;;  %s2406_s10 = sld [smem:[#allocation8 + $0x15]] }
  0x3f   :  { %v392_v43 = vstv %s2400_s17  ;;  %v373_v45 = vmul.f32 %v372_v42, %v3001_v16  ;;  %s2408_s20 = sld [smem:[#allocation8 + $0x17]] }
  0x40   :  { %v393_v46 = vmul.f32 %v392_v43, %v3001_v16  ;;  %v419_v47 = vstv %s2404_s3  ;;  %s2410_s12 = sld [smem:[#allocation8 + $0x19]] }
  0x41   :  { %v402_v48 = vstv %s2401_s18  ;;  %v420_v50 = vmul.f32 %v419_v47, %v3001_v16  ;;  %s2409_s9 = sld [smem:[#allocation8 + $0x18]] }
  0x42   :  { %v429_v49 = vstv %s2405_s5  ;;  %v403_v51 = vmul.f32 %v402_v48, %v3001_v16  ;;  %s2411_s4 = sld [smem:[#allocation8 + $0x1a]] }
  0x43   :  { %v430_v52 = vmul.f32 %v429_v49, %v3001_v16  ;;  %v449_v53 = vstv %s2407_s7  ;;  %s2415_s14 = sld [smem:[#allocation8 + $0x1d]] }
  0x44   :  { %317 = vrot.lane.b32.xlu1 %v315_v32, %s2812_s30  ;;  %v439_v54 = vstv %s2406_s10  ;;  %v450_v56 = vmul.f32 %v449_v53, %v3001_v16  ;;  %s2414_s11 = sld [smem:[#allocation8 + $0x1c]] }
  0x45   :  { %306 = vrot.lane.b32.xlu0 %v304_v33, %s2813_s2  ;;  %v459_v55 = vstv %s2408_s20  ;;  %v440_v57 = vmul.f32 %v439_v54, %v3001_v16  ;;  %s2416_s21 = sld [smem:[#allocation8 + $0x1e]] }
  0x46   :  { %335 = vrot.lane.b32.xlu2 %v333_v34, %s2807_s23  ;;  %v460_v58 = vmul.f32 %v459_v55, %v3001_v16  ;;  %v479_v59 = vstv %s2410_s12  ;;  %s2418_s24 = sld [smem:[#allocation8 + $0x20]] }
  0x47   :  { %v469_v60 = vstv %s2409_s9  ;;  %v480_v62 = vmul.f32 %v479_v59, %v3001_v16  ;;  %s2417_s6 = sld [smem:[#allocation8 + $0x1f]] }
  0x48   :  { %v489_v61 = vstv %s2411_s4  ;;  %v470_v63 = vmul.f32 %v469_v60, %v3001_v16  ;;  %s2419_s25 = sld [smem:[#allocation8 + $0x21]] }
  0x49   :  { %v490_v17 = vmul.f32 %v489_v61, %v3001_v16  ;;  %v516_v18 = vstv %s2415_s14  ;;  %s2421_s27 = sld [smem:[#allocation8 + $0x23]] }
  0x4a   :  { %v506_v19 = vstv %s2414_s11  ;;  %v517_v21 = vmul.f32 %v516_v18, %v3001_v16  ;;  %s2420_s1 = sld [smem:[#allocation8 + $0x22]] }
  0x4b   :  { %v526_v20 = vstv %s2416_s21  ;;  %v507_v22 = vmul.f32 %v506_v19, %v3001_v16  ;;  %s2424_s29 = sld [smem:[#allocation8 + $0x25]] }
  0x4c   :  { %355 = vrot.lane.b32.xlu1 %v353_v38, %s2806_s22  ;;  %v527_v23 = vmul.f32 %v526_v20, %v3001_v16  ;;  %v546_v24 = vstv %s2418_s24  ;;  %s2426_s15 = sld [smem:[#allocation8 + $0x27]] }
  0x4d   :  { %345 = vrot.lane.b32.xlu0 %v343_v39, %s2810_s8  ;;  %v536_v25 = vstv %s2417_s6  ;;  %v547_v27 = vmul.f32 %v546_v24, %v3001_v16  ;;  %s2425_s16 = sld [smem:[#allocation8 + $0x26]] }
  0x4e   :  { %365 = vrot.lane.b32.xlu2 %v363_v40, %s2809_s26  ;;  %v556_v26 = vstv %s2419_s25  ;;  %v537_v28 = vmul.f32 %v536_v25, %v3001_v16  ;;  %s2427_s17 = sld [smem:[#allocation8 + $0x28]] }
  0x4f   :  { %v557_v29 = vmul.f32 %v556_v26, %v3001_v16  ;;  %v576_v30 = vstv %s2421_s27  ;;  %s2429_s3 = sld [smem:[#allocation8 + $0x2a]] }
  0x50   :  { %v566_v31 = vstv %s2420_s1  ;;  %v577_v33 = vmul.f32 %v576_v30, %v3001_v16  ;;  %s2428_s18 = sld [smem:[#allocation8 + $0x29]] }
  0x51   :  { %v593_v32 = vstv %s2424_s29  ;;  %v567_v34 = vmul.f32 %v566_v31, %v3001_v16  ;;  %s2430_s5 = sld [smem:[#allocation8 + $0x2b]] }
  0x52   :  { %v594_v35 = vmul.f32 %v593_v32, %v3001_v16  ;;  %v613_v36 = vstv %s2426_s15  ;;  %s2434_s7 = sld [smem:[#allocation8 + $0x2e]] }
  0x53   :  { %v603_v37 = vstv %s2425_s16  ;;  %v614_v39 = vmul.f32 %v613_v36, %v3001_v16  ;;  %s2431_s10 = sld [smem:[#allocation8 + $0x2c]] }
  0x54   :  { %385 = vrot.lane.b32.xlu1 %v383_v44, %s2811_s28  ;;  %v623_v38 = vstv %s2427_s17  ;;  %v604_v40 = vmul.f32 %v603_v37, %v3001_v16  ;;  %s2435_s20 = sld [smem:[#allocation8 + $0x2f]] }
  0x55   :  { %375 = vrot.lane.b32.xlu0 %v373_v45, %s2808_s19  ;;  %v624_v41 = vmul.f32 %v623_v38, %v3001_v16  ;;  %v643_v42 = vstv %s2429_s3  ;;  %s2437_s12 = sld [smem:[#allocation8 + $0x31]] }
  0x56   :  { %395 = vrot.lane.b32.xlu2 %v393_v46, %s2813_s2  ;;  %v633_v43 = vstv %s2428_s18  ;;  %v644_v46 = vmul.f32 %v643_v42, %v3001_v16  ;;  %s2436_s9 = sld [smem:[#allocation8 + $0x30]] }
  0x57   :  { %v653_v44 = vstv %s2430_s5  ;;  %v634_v47 = vmul.f32 %v633_v43, %v3001_v16  ;;  %s2444_s4 = sld [smem:[#allocation8 + $0x37]] }
  0x58   :  { %v654_v48 = vmul.f32 %v653_v44, %v3001_v16  ;;  %v680_v49 = vstv %s2434_s7  ;;  %s2445_s14 = sld [smem:[#allocation8 + $0x38]] }
  0x59   :  { %v681_v53 = vmul.f32 %v680_v49, %v3001_v16  ;;  %s2454_s11 = sld [smem:[#allocation8 + $0x40]] }
  0x5a   :  { %s2455_s21 = sld [smem:[#allocation8 + $0x41]] }
  0x5b   :  { %s233_s24 = sld [smem:[#allocation8]] }
  0x5c   :  { %422 = vrot.lane.b32.xlu1 %v420_v50, %s2807_s23  ;;  %v663_v50 = vstv %s2431_s10  ;;  %s3098_s6 = sld [smem:[#allocation8 + $0x42]] }
  0x5d   :  { %405 = vrot.lane.b32.xlu0 %v403_v51, %s2812_s30  ;;  %v690_v51 = vstv %s2435_s20  ;;  %v664_v54 = vmul.f32 %v663_v50, %v3001_v16  ;;  %s3101_s25 = sld [smem:[#allocation8 + $0x39]] }
  0x5e   :  { %432 = vrot.lane.b32.xlu2 %v430_v52, %s2810_s8  ;;  %v691_v55 = vmul.f32 %v690_v51, %v3001_v16  ;;  %s3103_s27 = sld [smem:[#allocation8 + $0x3a]] }
  0x5f   :  { %v854_v18 = vstv %s2454_s11  ;;  %s3110_s1 = sld [smem:[#allocation8 + $0x9]] }
  0x60   :  { %v864_v20 = vstv %s2455_s21  ;;  %s3116_s29 = sld [smem:[#allocation8 + $0x32]] }
  0x61   :  { %v234_v24 = vstv %s233_s24  ;;  %v865_v26 = vmul.f32 %v864_v20, %v3001_v16  ;;  %s3121_s15 = sld [smem:[#allocation8 + $0x43]] }
  0x62   :  { %s3124_s16 = sld [smem:[#allocation8 + $0x3b]] }
  0x63   :  { %v787_v31 = vstv %s3101_s25  ;;  %s3145_s17 = sld [smem:[#allocation8 + $0x44]] }
  0x64   :  { %452 = vrot.lane.b32.xlu1 %v450_v56, %s2809_s26  ;;  %v710_v56 = vstv %s2437_s12  ;;  %s3169_s3 = sld [smem:[#allocation8 + $0x34]] }
  0x65   :  { %442 = vrot.lane.b32.xlu0 %v440_v57, %s2806_s22  ;;  %v700_v57 = vstv %s2436_s9  ;;  %v711_v60 = vmul.f32 %v710_v56, %v3001_v16  ;;  %s3174_s18 = sld [smem:[#allocation8 + $0x45]] }
  0x66   :  { %462 = vrot.lane.b32.xlu2 %v460_v58, %s2808_s19  ;;  %v767_v58 = vstv %s2444_s4  ;;  %v701_v61 = vmul.f32 %v700_v57, %v3001_v16  ;;  %v720_v49 = vstv %s3116_s29  ;;  %s3177_s5 = sld [smem:[#allocation8 + $0x3d]] }
  0x67   :  { %s3197_s7 = sld [smem:[#allocation8 + $0x35]] }
  0x68   :  { %s3201_s10 = sld [smem:[#allocation8 + $0x46]] }
  0x69   :  { %s3204_s20 = sld [smem:[#allocation8 + $0x3e]] }
  0x6a   :  { %s2461_s12 = sld [smem:[#allocation8 + $0x47]] }
  0x6b   :  { %s2422_s9 = sld [smem:[#allocation12 + $0x3]] }
  0x6c   :  { %482 = vrot.lane.b32.xlu1 %v480_v62, %s2813_s2  ;;  %v768_v62 = vmul.f32 %v767_v58, %v3001_v16  ;;  %v807_v58 = vstv %s3124_s16  ;;  %s2432_s4 = sld [smem:[#allocation12 + $0x4]] }
  0x6d   :  { %472 = vrot.lane.b32.xlu0 %v470_v63, %s2811_s28  ;;  %v777_v63 = vstv %s2445_s14  ;;  %v808_v20 = vmul.f32 %v807_v58, %v3001_v16  ;;  %s2443_s14 = sld [smem:[#allocation8 + $0x36]] }
  0x6e   :  { %492 = vrot.lane.b32.xlu2 %v490_v17, %s2812_s30  ;;  %s2433_s11 = sld [smem:[#allocation8 + $0x2d]] }
  0x6f   :  { %s2452_s21 = sld [smem:[#allocation12 + $0x6]] }
  0x70   :  { %s2453_s24 = sld [smem:[#allocation8 + $0x3f]] }
  0x74   :  { %519 = vrot.lane.b32.xlu1 %v517_v21, %s2810_s8 }
  0x75   :  { %509 = vrot.lane.b32.xlu0 %v507_v22, %s2807_s23  ;;  %v778_v22 = vmul.f32 %v777_v63, %v3001_v16 }
  0x76   :  { %529 = vrot.lane.b32.xlu2 %v527_v23, %s2806_s22  ;;  %v855_v23 = vmul.f32 %v854_v18, %v3001_v16 }
  0x7c   :  { %549 = vrot.lane.b32.xlu1 %v547_v27, %s2808_s19  ;;  %v235_v27 = vmul.f32 %v234_v24, %v3001_v16 }
  0x7d   :  { %539 = vrot.lane.b32.xlu0 %v537_v28, %s2809_s26  ;;  %v874_v28 = vstv %s3098_s6 }
  0x7e   :  { %559 = vrot.lane.b32.xlu2 %v557_v29, %s2811_s28  ;;  %v875_v38 = vmul.f32 %v874_v28, %v3001_v16 }
  0x84   :  { %579 = vrot.lane.b32.xlu1 %v577_v33, %s2812_s30  ;;  %v797_v33 = vstv %s3103_s27  ;;  %s2442_s27 = sld [smem:[#allocation12 + $0x5]] }
  0x85   :  { %569 = vrot.lane.b32.xlu0 %v567_v34, %s2813_s2  ;;  %v798_v42 = vmul.f32 %v797_v33, %v3001_v16 }
  0x86   :  { %596 = vrot.lane.b32.xlu2 %v594_v35, %s2807_s23 }
  0x8c   :  { %616 = vrot.lane.b32.xlu1 %v614_v39, %s2806_s22 }
  0x8d   :  { %606 = vrot.lane.b32.xlu0 %v604_v40, %s2810_s8  ;;  %v788_v40 = vmul.f32 %v787_v31, %v3001_v16 }
  0x8e   :  { %626 = vrot.lane.b32.xlu2 %v624_v41, %s2809_s26 }
  0x90   :  { %v3075_v45 = vpop.permute.xlu2 %284 }
  0x91   :  { %v286_v43 = vrot.slane %v3075_v45, 2 }
  0x94   :  { %646 = vrot.lane.b32.xlu1 %v644_v46, %s2811_s28 }
  0x95   :  { %636 = vrot.lane.b32.xlu0 %v634_v47, %s2808_s19 }
  0x96   :  { %656 = vrot.lane.b32.xlu2 %v654_v48, %s2813_s2 }
  0x98   :  { %v3083_v52 = vpop.permute.xlu2 %295 }
  0x99   :  { %v297_v50 = vrot.slane %v3083_v52, 2 }
  0x9c   :  { %683 = vrot.lane.b32.xlu1 %v681_v53, %s2807_s23  ;;  %v884_v53 = vstv %s3121_s15 }
  0x9d   :  { %666 = vrot.lane.b32.xlu0 %v664_v54, %s2812_s30  ;;  %v288_v54 = vsel %vm287_vm4, %v3075_v45, %v286_v43  ;;  %v885_v45 = vmul.f32 %v884_v53, %v3001_v16  ;;  %v904_v53 = vstv %s3174_s18 }
  0x9e   :  { %693 = vrot.lane.b32.xlu2 %v691_v55, %s2810_s8  ;;  %v329_v55 = vstv %s3110_s1 }
  0xa0   :  { %v3091_v59 = vpop.permute.xlu2 %335 }
  0xa4   :  { %713 = vrot.lane.b32.xlu1 %v711_v60, %s2809_s26  ;;  %v337_v60 = vrot.slane %v3091_v59, 2 }
  0xa5   :  { %703 = vrot.lane.b32.xlu0 %v701_v61, %s2806_s22 }
  0xa6   :  { %770 = vrot.lane.b32.xlu2 %v768_v62, %s2807_s23  ;;  %v263_v17 = vpop.permute.xlu1 %262  ;;  %v338_v24 = vsel %vm243_vm0, %v3091_v59, %v337_v60 }
  0xa7   :  { %v241_v19 = vpop.permute.xlu0 %240  ;;  %v264_v34 = vrot.slane %v263_v17, 2 }
  0xa8   :  { %v3105_v21 = vpop.permute.xlu2 %365  ;;  %v242_v25 = vrot.slane %v241_v19, 2 }
  0xa9   :  { %v266_v46 = vsel %vm265_vm2, %v263_v17, %v264_v34  ;;  %v721_v17 = vmul.f32 %v720_v49, %v3001_v16 }
  0xaa   :  { %v244_v29 = vsel %vm243_vm0, %v241_v19, %v242_v25  ;;  %v299_v19 = vsel %vm298_vm5, %v3083_v52, %v297_v50  ;;  %v740_v50 = vstv %s3169_s3 }
  0xab   :  { %v246_v39 = vadd.f32 %v244_v29, %v235_v27 }
  0xac   :  { %780 = vrot.lane.b32.xlu1 %v778_v22, %s2810_s8  ;;  %v330_v22 = vmul.f32 %v329_v55, %v3001_v16 }
  0xad   :  { %857 = vrot.lane.b32.xlu0 %v855_v23, %s2807_s23  ;;  %s3136_s23 = sld [smem:[#allocation12]] }
  0xae   :  { %867 = vrot.lane.b32.xlu2 %v865_v26, %s2810_s8  ;;  %v274_v30 = vpop.permute.xlu1 %273  ;;  %s3140_s8 = sld [smem:[#allocation8 + $0x33]]  ;;  %v340_v59 = vadd.f32 %v338_v24, %v330_v22 }
  0xaf   :  { %v252_v32 = vpop.permute.xlu0 %251  ;;  %v275_v35 = vrot.slane %v274_v30, 2 }
  0xb0   :  { %v253_v36 = vrot.slane %v252_v32, 2  ;;  %v3126_v37 = vpop.permute.xlu2 %395 }
  0xb1   :  { %v277_v47 = vsel %vm276_vm3, %v274_v30, %v275_v35  ;;  %v894_v30 = vstv %s3145_s17  ;;  %v367_v35 = vrot.slane %v3105_v21, 2 }
  0xb2   :  { %v255_v41 = vsel %vm254_vm1, %v252_v32, %v253_v36 }
  0xb3   :  { %v257_v44 = vadd.f32 %v255_v41, %v246_v39  ;;  %v325_v52 = vstv %s3136_s23  ;;  %v895_v41 = vmul.f32 %v894_v30, %v3001_v16 }
  0xb4   :  { %877 = vrot.lane.b32.xlu1 %v875_v38, %s2806_s22  ;;  %v730_v28 = vstv %s3140_s8 }
  0xb5   :  { %v268_v48 = vadd.f32 %v266_v46, %v257_v44  ;;  %790 = vrot.lane.b32.xlu0 %v788_v40, %s2806_s22  ;;  %s3151_s22 = sld [smem:[#allocation8 + $0x3c]]  ;;  %v731_v39 = vmul.f32 %v730_v28, %v3001_v16  ;;  %v914_v28 = vstv %s3201_s10 }
  0xb6   :  { %800 = vrot.lane.b32.xlu2 %v798_v42, %s2809_s26  ;;  %v318_v51 = vpop.permute.xlu1 %317 }
  0xb7   :  { %v279_v56 = vadd.f32 %v277_v47, %v268_v48  ;;  %v307_v57 = vpop.permute.xlu0 %306  ;;  %v319_v61 = vrot.slane %v318_v51, 2  ;;  %v368_v48 = vsel %vm276_vm3, %v3105_v21, %v367_v35  ;;  %v397_v21 = vrot.slane %v3126_v37, 2 }
  0xb8   :  { %v308_v62 = vrot.slane %v307_v57, 2  ;;  %v3154_v63 = vpop.permute.xlu2 %432  ;;  %v915_v35 = vmul.f32 %v914_v28, %v3001_v16 }
  0xb9   :  { %v290_v18 = vadd.f32 %v288_v54, %v279_v56  ;;  %v321_v25 = vsel %vm320_vm7, %v318_v51, %v319_v61  ;;  %v741_v61 = vmul.f32 %v740_v50, %v3001_v16  ;;  %v398_v22 = vsel %vm309_vm6, %v3126_v37, %v397_v21 }
  0xba   :  { %v310_v26 = vsel %vm309_vm6, %v307_v57, %v308_v62  ;;  %v827_v57 = vstv %s3177_s5  ;;  %v905_v62 = vmul.f32 %v904_v53, %v3001_v16  ;;  %v837_v37 = vstv %s3204_s20 }
  0xbb   :  { %v301_v23 = vadd.f32 %v299_v19, %v290_v18  ;;  %v817_v34 = vstv %s3151_s22 }
  0xbc   :  { %723 = vrot.lane.b32.xlu1 %v721_v17, %s2808_s19  ;;  %v818_v44 = vmul.f32 %v817_v34, %v3001_v16 }
  0xbd   :  { %v312_v27 = vadd.f32 %v310_v26, %v301_v23  ;;  %887 = vrot.lane.b32.xlu0 %v885_v45, %s2809_s26  ;;  %s3190_s26 = sld [smem:[#allocation8 + $0x12]]  ;;  %v828_v45 = vmul.f32 %v827_v57, %v3001_v16  ;;  %v434_v23 = vrot.slane %v3154_v63, 2 }
  0xbe   :  { %810 = vrot.lane.b32.xlu2 %v808_v20, %s2808_s19  ;;  %v356_v29 = vpop.permute.xlu1 %355 }
  0xbf   :  { %v323_v31 = vadd.f32 %v321_v25, %v312_v27  ;;  %v357_v32 = vrot.slane %v356_v29, 2  ;;  %v346_v33 = vpop.permute.xlu0 %345  ;;  %v750_v25 = vstv %s3197_s7 }
  0xc0   :  { %v347_v36 = vrot.slane %v346_v33, 2  ;;  %v3180_v38 = vpop.permute.xlu2 %462 }
  0xc1   :  { %v3183_v40 = vadd.f32 %v325_v52, %v323_v31  ;;  %v358_v42 = vsel %vm265_vm2, %v356_v29, %v357_v32  ;;  %v751_v32 = vmul.f32 %v750_v25, %v3001_v16  ;;  %v464_v53 = vrot.slane %v3180_v38, 2 }
  0xc2   :  { %v348_v43 = vsel %vm254_vm1, %v346_v33, %v347_v36  ;;  %v435_v33 = vsel %vm254_vm1, %v3154_v63, %v434_v23 }
  0xc3   :  { %v327_v46 = vmax.f32 %v3183_v40, 0.0  ;;  %v350_v47 = vadd.f32 %v348_v43, %v340_v59  ;;  %v416_v20 = vstv %s3190_s26 }
  0xc4   :  { %733 = vrot.lane.b32.xlu1 %v731_v39, %s2811_s28  ;;  %v417_v26 = vmul.f32 %v416_v20, %v3001_v16 }
  0xc5   :  { %v360_v49 = vadd.f32 %v358_v42, %v350_v47  ;;  %897 = vrot.lane.b32.xlu0 %v895_v41, %s2808_s19  ;;  %s3214_s19 = sld [smem:[#allocation12 + $0x1]]  ;;  %v838_v42 = vmul.f32 %v837_v37, %v3001_v16 }
  0xc6   :  { %820 = vrot.lane.b32.xlu2 %v818_v44, %s2811_s28  ;;  %v386_v51 = vpop.permute.xlu1 %385 }
  0xc7   :  { %v387_v54 = vrot.slane %v386_v51, 2  ;;  %v370_v55 = vadd.f32 %v368_v48, %v360_v49  ;;  %v376_v56 = vpop.permute.xlu0 %375  ;;  %v924_v48 = vstv %s2461_s12 }
  0xc8   :  { %v377_v58 = vrot.slane %v376_v56, 2  ;;  %v3207_v60 = vpop.permute.xlu2 %492 }
  0xc9   :  { %v388_v17 = vsel %vm298_vm5, %v386_v51, %v387_v54  ;;  %v494_v20 = vrot.slane %v3207_v60, 2 }
  0xca   :  { %v378_v18 = vsel %vm287_vm4, %v376_v56, %v377_v58  ;;  %v925_v56 = vmul.f32 %v924_v48, %v3001_v16 }
  0xcb   :  { %v380_v19 = vadd.f32 %v378_v18, %v370_v55  ;;  %v412_v39 = vstv %s3214_s19 }
  0xcc   :  { %743 = vrot.lane.b32.xlu1 %v741_v61, %s2813_s2  ;;  %v465_v61 = vsel %vm287_vm4, %v3180_v38, %v464_v53  ;;  %v495_v38 = vsel %vm320_vm7, %v3207_v60, %v494_v20 }
  0xcd   :  { %v390_v24 = vadd.f32 %v388_v17, %v380_v19  ;;  %907 = vrot.lane.b32.xlu0 %v905_v62, %s2811_s28  ;;  %s2413_s28 = sld [smem:[#allocation8 + $0x1b]] }
  0xce   :  { %830 = vrot.lane.b32.xlu2 %v828_v45, %s2813_s2  ;;  %v423_v27 = vpop.permute.xlu1 %422 }
  0xcf   :  { %v424_v52 = vrot.slane %v423_v27, 2  ;;  %v400_v29 = vadd.f32 %v398_v22, %v390_v24  ;;  %v406_v30 = vpop.permute.xlu0 %405 }
  0xd0   :  { %v407_v59 = vrot.slane %v406_v30, 2  ;;  %v530_v31 = vpop.permute.xlu2 %529 }
  0xd1   :  { %v425_v34 = vsel %vm243_vm0, %v423_v27, %v424_v52 }
  0xd2   :  { %v427_v36 = vadd.f32 %v425_v34, %v417_v26  ;;  %v408_v41 = vsel %vm320_vm7, %v406_v30, %v407_v59 }
  0xd3   :  { %v410_v43 = vadd.f32 %v408_v41, %v400_v29  ;;  %v503_v27 = vstv %s2413_s28 }
  0xd4   :  { %753 = vrot.lane.b32.xlu1 %v751_v32, %s2812_s30  ;;  %v437_v44 = vadd.f32 %v435_v33, %v427_v36  ;;  %v504_v59 = vmul.f32 %v503_v27, %v3001_v16  ;;  %v531_v33 = vrot.slane %v530_v31, 2 }
  0xd5   :  { %v3236_v47 = vadd.f32 %v412_v39, %v410_v43  ;;  %917 = vrot.lane.b32.xlu0 %v915_v35, %s2813_s2  ;;  %s2412_s2 = sld [smem:[#allocation12 + $0x2]] }
  0xd6   :  { %840 = vrot.lane.b32.xlu2 %v838_v42, %s2812_s30  ;;  %v453_v63 = vpop.permute.xlu1 %452  ;;  %v532_v43 = vsel %vm265_vm2, %v530_v31, %v531_v33 }
  0xd7   :  { %v414_v49 = vmax.f32 %v3236_v47, 0.0  ;;  %v454_v50 = vrot.slane %v453_v63, 2  ;;  %v443_v51 = vpop.permute.xlu0 %442 }
  0xd8   :  { %v444_v54 = vrot.slane %v443_v51, 2  ;;  %v560_v55 = vpop.permute.xlu2 %559 }
  0xd9   :  { %v455_v57 = vsel %vm276_vm3, %v453_v63, %v454_v50  ;;  %v561_v53 = vrot.slane %v560_v55, 2 }
  0xda   :  { %v445_v21 = vsel %vm265_vm2, %v443_v51, %v444_v54 }
  0xdb   :  { %v447_v58 = vadd.f32 %v445_v21, %v437_v44  ;;  %v499_v52 = vstv %s2412_s2 }
  0xdd   :  { %v457_v62 = vadd.f32 %v455_v57, %v447_v58  ;;  %927 = vrot.lane.b32.xlu0 %v925_v56, %s2812_s30  ;;  %s2423_s30 = sld [smem:[#allocation8 + $0x24]] }
  0xde   :  { %v483_v17 = vpop.permute.xlu1 %482 }
  0xdf   :  { %v484_v18 = vrot.slane %v483_v17, 2  ;;  %v467_v45 = vadd.f32 %v465_v61, %v457_v62  ;;  %v473_v19 = vpop.permute.xlu0 %472  ;;  %v562_v61 = vsel %vm298_vm5, %v560_v55, %v561_v53 }
  0xe0   :  { %v474_v22 = vrot.slane %v473_v19, 2  ;;  %v597_v23 = vpop.permute.xlu2 %596 }
  0xe1   :  { %v485_v24 = vsel %vm309_vm6, %v483_v17, %v484_v18  ;;  %v598_v20 = vrot.slane %v597_v23, 2 }
  0xe2   :  { %v475_v25 = vsel %vm298_vm5, %v473_v19, %v474_v22 }
  0xe3   :  { %v477_v26 = vadd.f32 %v475_v25, %v467_v45  ;;  %v590_v19 = vstv %s2423_s30  ;;  %v599_v55 = vsel %vm243_vm0, %v597_v23, %v598_v20 }
  0xe5   :  { %v487_v28 = vadd.f32 %v485_v24, %v477_v26 }
  0xe6   :  { %v520_v29 = vpop.permute.xlu1 %519 }
  0xe7   :  { %v497_v30 = vadd.f32 %v495_v38, %v487_v28  ;;  %v521_v37 = vrot.slane %v520_v29, 2  ;;  %v510_v32 = vpop.permute.xlu0 %509  ;;  %v591_v38 = vmul.f32 %v590_v19, %v3001_v16  ;;  %v586_v28 = vstv %s2422_s9 }
  0xe8   :  { %v511_v34 = vrot.slane %v510_v32, 2  ;;  %v627_v35 = vpop.permute.xlu2 %626 }
  0xe9   :  { %v3254_v36 = vadd.f32 %v499_v52, %v497_v30  ;;  %v522_v39 = vsel %vm254_vm1, %v520_v29, %v521_v37  ;;  %v601_v30 = vadd.f32 %v599_v55, %v591_v38  ;;  %v628_v33 = vrot.slane %v627_v35, 2 }
  0xea   :  { %v512_v41 = vsel %vm243_vm0, %v510_v32, %v511_v34 }
  0xeb   :  { %v501_v60 = vmax.f32 %v3254_v36, 0.0  ;;  %v514_v42 = vadd.f32 %v512_v41, %v504_v59  ;;  %v629_v23 = vsel %vm276_vm3, %v627_v35, %v628_v33 }
  0xed   :  { %v524_v44 = vadd.f32 %v522_v39, %v514_v42 }
  0xee   :  { %v550_v63 = vpop.permute.xlu1 %549 }
  0xef   :  { %v551_v48 = vrot.slane %v550_v63, 2  ;;  %v534_v50 = vadd.f32 %v532_v43, %v524_v44  ;;  %v540_v51 = vpop.permute.xlu0 %539 }
  0xf0   :  { %v541_v54 = vrot.slane %v540_v51, 2  ;;  %v657_v56 = vpop.permute.xlu2 %656 }
  0xf1   :  { %v552_v57 = vsel %vm287_vm4, %v550_v63, %v551_v48 }
  0xf2   :  { %v542_v21 = vsel %vm276_vm3, %v540_v51, %v541_v54  ;;  %v658_v54 = vrot.slane %v657_v56, 2 }
  0xf3   :  { %v544_v58 = vadd.f32 %v542_v21, %v534_v50 }
  0xf5   :  { %v554_v62 = vadd.f32 %v552_v57, %v544_v58 }
  0xf6   :  { %v580_v17 = vpop.permute.xlu1 %579 }
  0xf7   :  { %v581_v31 = vrot.slane %v580_v17, 2  ;;  %v564_v18 = vadd.f32 %v562_v61, %v554_v62  ;;  %v570_v45 = vpop.permute.xlu0 %569 }
  0xf8   :  { %v571_v22 = vrot.slane %v570_v45, 2  ;;  %v3263_v24 = vpop.permute.xlu2 %693 }
  0xf9   :  { %v582_v25 = vsel %vm320_vm7, %v580_v17, %v581_v31  ;;  %v659_v17 = vsel %vm309_vm6, %v657_v56, %v658_v54  ;;  %v764_v56 = vstv %s2443_s14 }
  0xfa   :  { %v572_v26 = vsel %vm309_vm6, %v570_v45, %v571_v22  ;;  %v673_v22 = vstv %s2432_s4  ;;  %v765_v33 = vmul.f32 %v764_v56, %v3001_v16 }
  0xfb   :  { %v574_v27 = vadd.f32 %v572_v26, %v564_v18 }
  0xfd   :  { %v584_v52 = vadd.f32 %v582_v25, %v574_v27 }
  0xfe   :  { %v617_v29 = vpop.permute.xlu1 %616 }
  0xff   :  { %v3269_v37 = vadd.f32 %v586_v28, %v584_v52  ;;  %v618_v59 = vrot.slane %v617_v29, 2  ;;  %v607_v32 = vpop.permute.xlu0 %606 }
 0x100   :  { %v608_v34 = vrot.slane %v607_v32, 2  ;;  %v771_v39 = vpop.permute.xlu2 %770 }
 0x101   :  { %v588_v41 = vmax.f32 %v3269_v37, 0.0  ;;  %v619_v42 = vsel %vm265_vm2, %v617_v29, %v618_v59  ;;  %v772_v29 = vrot.slane %v771_v39, 2 }
 0x102   :  { %v609_v43 = vsel %vm254_vm1, %v607_v32, %v608_v34 }
 0x103   :  { %v611_v44 = vadd.f32 %v609_v43, %v601_v30  ;;  %v773_v34 = vsel %vm243_vm0, %v771_v39, %v772_v29 }
 0x104   :  { %v775_v43 = vadd.f32 %v773_v34, %v765_v33  ;;  %v695_v34 = vrot.slane %v3263_v24, 2 }
 0x105   :  { %v621_v63 = vadd.f32 %v619_v42, %v611_v44 }
 0x106   :  { %v647_v48 = vpop.permute.xlu1 %646 }
 0x107   :  { %v648_v50 = vrot.slane %v647_v48, 2  ;;  %v631_v51 = vadd.f32 %v629_v23, %v621_v63  ;;  %v637_v53 = vpop.permute.xlu0 %636 }
 0x108   :  { %v638_v57 = vrot.slane %v637_v53, 2  ;;  %v3275_v21 = vpop.permute.xlu2 %867 }
 0x109   :  { %v649_v58 = vsel %vm298_vm5, %v647_v48, %v648_v50 }
 0x10a   :  { %v639_v61 = vsel %vm287_vm4, %v637_v53, %v638_v57 }
 0x10b   :  { %v641_v62 = vadd.f32 %v639_v61, %v631_v51 }
 0x10d   :  { %v651_v31 = vadd.f32 %v649_v58, %v641_v62 }
 0x10e   :  { %v684_v18 = vpop.permute.xlu1 %683 }
 0x10f   :  { %v661_v35 = vadd.f32 %v659_v17, %v651_v31  ;;  %v667_v45 = vpop.permute.xlu0 %666 }
 0x110   :  { %v668_v19 = vrot.slane %v667_v45, 2  ;;  %v801_v20 = vpop.permute.xlu2 %800 }
 0x111   :  { %v802_v44 = vrot.slane %v801_v20, 2 }
 0x112   :  { %v669_v25 = vsel %vm320_vm7, %v667_v45, %v668_v19  ;;  %v677_v19 = vstv %s2433_s11 }
 0x113   :  { %v671_v26 = vadd.f32 %v669_v25, %v661_v35  ;;  %v803_v57 = vsel %vm276_vm3, %v801_v20, %v802_v44  ;;  %v678_v33 = vmul.f32 %v677_v19, %v3001_v16 }
 0x115   :  { %v3281_v38 = vadd.f32 %v673_v22, %v671_v26  ;;  %v685_v22 = vrot.slane %v684_v18, 2 }
 0x116   :  { %v3283_v27 = vpop.permute.xlu1 %713 }
 0x117   :  { %v675_v55 = vmax.f32 %v3281_v38, 0.0  ;;  %v704_v28 = vpop.permute.xlu0 %703 }
 0x118   :  { %v811_v52 = vpop.permute.xlu2 %810 }
 0x119   :  { %v812_v50 = vrot.slane %v811_v52, 2 }
 0x11b   :  { %v813_v39 = vsel %vm287_vm4, %v811_v52, %v812_v50  ;;  %v686_v52 = vsel %vm243_vm0, %v684_v18, %v685_v22  ;;  %v696_v50 = vsel %vm254_vm1, %v3263_v24, %v695_v34  ;;  %v715_v18 = vrot.slane %v3283_v27, 2 }
 0x11d   :  { %v716_v24 = vsel %vm276_vm3, %v3283_v27, %v715_v18 }
 0x11e   :  { %v781_v30 = vpop.permute.xlu1 %780 }
 0x11f   :  { %v3286_v59 = vpop.permute.xlu0 %857  ;;  %v782_v42 = vrot.slane %v781_v30, 2 }
 0x120   :  { %v821_v32 = vpop.permute.xlu2 %820 }
 0x121   :  { %v783_v23 = vsel %vm254_vm1, %v781_v30, %v782_v42  ;;  %v822_v58 = vrot.slane %v821_v32, 2 }
 0x122   :  { %v785_v54 = vadd.f32 %v783_v23, %v775_v43  ;;  %v688_v23 = vadd.f32 %v686_v52, %v678_v33 }
 0x123   :  { %v823_v35 = vsel %vm298_vm5, %v821_v32, %v822_v58  ;;  %v847_v32 = vstv %s2452_s21 }
 0x126   :  { %v3291_v63 = vpop.permute.xlu1 %877 }
 0x127   :  { %v791_v48 = vpop.permute.xlu0 %790 }
 0x128   :  { %v792_v51 = vrot.slane %v791_v48, 2  ;;  %v831_v53 = vpop.permute.xlu2 %830 }
 0x129   :  { %v832_v17 = vrot.slane %v831_v53, 2 }
 0x12a   :  { %v793_v61 = vsel %vm265_vm2, %v791_v48, %v792_v51  ;;  %v705_v51 = vrot.slane %v704_v28, 2 }
 0x12b   :  { %v795_v62 = vadd.f32 %v793_v61, %v785_v54  ;;  %v833_v56 = vsel %vm309_vm6, %v831_v53, %v832_v17  ;;  %v851_v61 = vstv %s2453_s24 }
 0x12c   :  { %v706_v58 = vsel %vm265_vm2, %v704_v28, %v705_v51 }
 0x12d   :  { %v805_v31 = vadd.f32 %v803_v57, %v795_v62  ;;  %v698_v57 = vadd.f32 %v696_v50, %v688_v23  ;;  %v859_v62 = vrot.slane %v3286_v59, 2 }
 0x12e   :  { %v724_v45 = vpop.permute.xlu1 %723 }
 0x12f   :  { %v815_v25 = vadd.f32 %v813_v39, %v805_v31  ;;  %v888_v26 = vpop.permute.xlu0 %887  ;;  %v725_v39 = vrot.slane %v724_v45, 2  ;;  %v708_v17 = vadd.f32 %v706_v58, %v698_v57  ;;  %v860_v28 = vsel %vm243_vm0, %v3286_v59, %v859_v62 }
 0x130   :  { %v841_v29 = vpop.permute.xlu2 %840  ;;  %v760_v62 = vstv %s2442_s27 }
 0x131   :  { %v825_v20 = vadd.f32 %v823_v35, %v815_v25  ;;  %v842_v30 = vrot.slane %v841_v29, 2  ;;  %v2504_v35 = vld [vmem:[%s3451_s0] sm:$0x3f]  ;;  %v718_v33 = vadd.f32 %v716_v24, %v708_v17  ;;  %s2462_s0 = sld [smem:[#allocation12 + $0x7]] }
 0x132   :  { %v852_v19 = vmul.f32 %v2504_v35, %v851_v61 }
 0x133   :  { %v835_v42 = vadd.f32 %v833_v56, %v825_v20  ;;  %v843_v43 = vsel %vm320_vm7, %v841_v29, %v842_v30  ;;  %v869_v56 = vrot.slane %v3275_v21, 2  ;;  %v726_v29 = vsel %vm287_vm4, %v724_v45, %v725_v39 }
 0x134   :  { %v879_v30 = vrot.slane %v3291_v63, 2  ;;  %v862_v27 = vadd.f32 %v860_v28, %v852_v19 }
 0x135   :  { %v845_v44 = vadd.f32 %v843_v43, %v835_v42  ;;  %v870_v52 = vsel %vm254_vm1, %v3275_v21, %v869_v56  ;;  %v728_v42 = vadd.f32 %v726_v29, %v718_v33  ;;  %v889_v43 = vrot.slane %v888_v26, 2 }
 0x136   :  { %v734_v48 = vpop.permute.xlu1 %733  ;;  %v880_v59 = vsel %vm265_vm2, %v3291_v63, %v879_v30  ;;  %v872_v50 = vadd.f32 %v870_v52, %v862_v27 }
 0x137   :  { %v3304_v53 = vadd.f32 %v847_v32, %v845_v44  ;;  %v898_v54 = vpop.permute.xlu0 %897  ;;  %v735_v22 = vrot.slane %v734_v48, 2  ;;  %v890_v18 = vsel %vm276_vm3, %v888_v26, %v889_v43  ;;  %v934_v30 = vstv %s2462_s0 }
 0x138   :  { %v899_v45 = vrot.slane %v898_v54, 2  ;;  %v882_v61 = vadd.f32 %v880_v59, %v872_v50 }
 0x139   :  { %v849_v16 = vmax.f32 %v3304_v53, 0.0  ;;  %v736_v34 = vsel %vm298_vm5, %v734_v48, %v735_v22 }
 0x13a   :  { %v738_v44 = vadd.f32 %v736_v34, %v728_v42  ;;  %v900_v39 = vsel %vm287_vm4, %v898_v54, %v899_v45  ;;  %v892_v63 = vadd.f32 %v890_v18, %v882_v61 }
 0x13c   :  { %v902_v19 = vadd.f32 %v900_v39, %v892_v63 }
 0x13e   :  { %v744_v31 = vpop.permute.xlu1 %743 }
 0x13f   :  { %v908_v25 = vpop.permute.xlu0 %907  ;;  %v745_v20 = vrot.slane %v744_v31, 2 }
 0x140   :  { %v909_v48 = vrot.slane %v908_v25, 2 }
 0x141   :  { %v746_v32 = vsel %vm309_vm6, %v744_v31, %v745_v20 }
 0x142   :  { %v748_v58 = vadd.f32 %v746_v32, %v738_v44  ;;  %v910_v24 = vsel %vm298_vm5, %v908_v25, %v909_v48 }
 0x143   :  { %v912_v56 = vadd.f32 %v910_v24, %v902_v19 }
 0x146   :  { %v754_v23 = vpop.permute.xlu1 %753 }
 0x147   :  { %v755_v51 = vrot.slane %v754_v23, 2  ;;  %v918_v57 = vpop.permute.xlu0 %917 }
 0x148   :  { %v919_v31 = vrot.slane %v918_v57, 2 }
 0x149   :  { %v756_v21 = vsel %vm320_vm7, %v754_v23, %v755_v51 }
 0x14a   :  { %v758_v17 = vadd.f32 %v756_v21, %v748_v58  ;;  %v920_v26 = vsel %vm309_vm6, %v918_v57, %v919_v31 }
 0x14b   :  { %v922_v20 = vadd.f32 %v920_v26, %v912_v56 }
 0x14c   :  { %v3330_v35 = vadd.f32 %v760_v62, %v758_v17 }
 0x14e   :  { %v762_v22 = vmax.f32 %v3330_v35, 0.0 }
 0x14f   :  { %v928_v28 = vpop.permute.xlu0 %927 }
 0x150   :  { %v929_v29 = vrot.slane %v928_v28, 2 }
 0x152   :  { %v930_v54 = vsel %vm320_vm7, %v928_v28, %v929_v29 }
 0x153   :  { %v932_v33 = vadd.f32 %v930_v54, %v922_v20 }
 0x155   :  { %v3335_v27 = vadd.f32 %v934_v30, %v932_v33 }
 0x157   :  { %v936_v34 = vmax.f32 %v3335_v27, 0.0 }
 0x158   :  { %2783 = dma.done.wait [#allocation7], 57344 }
 0x159   :  { %2784 = vsyncadd [#allocation7], 4294909952  ;;  %1000 = vst [vmem:[#allocation1] ss:$4 sm:$0xff] %v327_v46  ;;  %v973_v25 = vld [vmem:[#allocation2 + $0xf0] sm:$0xff]  ;;  %v974_v42 = vld [vmem:[#allocation2 + $0xf8] sm:$0xff] }
 0x15a   :  { %v997_v52 = vld [vmem:[#allocation2 + $0x1b0] sm:$0xff]  ;;  %1006 = vmatpush.msra.mxu0 %v973_v25  ;;  %v998_v43 = vld [vmem:[#allocation2 + $0x1b8] sm:$0xff]  ;;  %v971_v32 = vld [vmem:[#allocation2 + $0xe0] sm:$0xff]  ;;  %1046 = vmatpush.msra.mxu2 %v974_v42 }
 0x15b   :  { %1030 = vmatpush.msra.mxu1 %v997_v52  ;;  %v995_v59 = vld [vmem:[#allocation2 + $0x1a0] sm:$0xff]  ;;  %1070 = vmatpush.msra.mxu3 %v998_v43  ;;  %v972_v44 = vld [vmem:[#allocation2 + $0xe8] sm:$0xff]  ;;  %v969_v23 = vld [vmem:[#allocation2 + $0xd0] sm:$0xff] }
 0x15c   :  { %v996_v45 = vld [vmem:[#allocation2 + $0x1a8] sm:$0xff]  ;;  %1007 = vmatpush.msra.mxu0 %v971_v32  ;;  %v993_v50 = vld [vmem:[#allocation2 + $0x190] sm:$0xff]  ;;  %v970_v51 = vld [vmem:[#allocation2 + $0xd8] sm:$0xff]  ;;  %1047 = vmatpush.msra.mxu2 %v972_v44 }
 0x15d   :  { %1031 = vmatpush.msra.mxu1 %v995_v59  ;;  %v994_v57 = vld [vmem:[#allocation2 + $0x198] sm:$0xff]  ;;  %1071 = vmatpush.msra.mxu3 %v996_v45  ;;  %v967_v40 = vld [vmem:[#allocation2 + $0xc0] sm:$0xff]  ;;  %v968_v18 = vld [vmem:[#allocation2 + $0xc8] sm:$0xff] }
 0x15e   :  { %v991_v46 = vld [vmem:[#allocation2 + $0x180] sm:$0xff]  ;;  %1008 = vmatpush.msra.mxu0 %v969_v23  ;;  %v992_v58 = vld [vmem:[#allocation2 + $0x188] sm:$0xff]  ;;  %1048 = vmatpush.msra.mxu2 %v970_v51  ;;  %v965_v48 = vld [vmem:[#allocation2 + $0xb0] sm:$0xff] }
 0x15f   :  { %1032 = vmatpush.msra.mxu1 %v993_v50  ;;  %1072 = vmatpush.msra.mxu3 %v994_v57  ;;  %v989_v61 = vld [vmem:[#allocation2 + $0x170] sm:$0xff]  ;;  %v966_v62 = vld [vmem:[#allocation2 + $0xb8] sm:$0xff]  ;;  %v963_v39 = vld [vmem:[#allocation2 + $0xa0] sm:$0xff] }
 0x160   :  { %1009 = vmatpush.msra.mxu0 %v967_v40  ;;  %v990_v21 = vld [vmem:[#allocation2 + $0x178] sm:$0xff]  ;;  %1049 = vmatpush.msra.mxu2 %v968_v18  ;;  %v987_v17 = vld [vmem:[#allocation2 + $0x160] sm:$0xff]  ;;  %v964_v31 = vld [vmem:[#allocation2 + $0xa8] sm:$0xff] }
 0x161   :  { %1033 = vmatpush.msra.mxu1 %v991_v46  ;;  %1073 = vmatpush.msra.mxu3 %v992_v58  ;;  %v988_v63 = vld [vmem:[#allocation2 + $0x168] sm:$0xff]  ;;  %v961_v24 = vld [vmem:[#allocation2 + $0x90] sm:$0xff]  ;;  %v962_v26 = vld [vmem:[#allocation2 + $0x98] sm:$0xff] }
 0x162   :  { %1010 = vmatpush.msra.mxu0 %v965_v48  ;;  %1050 = vmatpush.msra.mxu2 %v966_v62  ;;  %v985_v19 = vld [vmem:[#allocation2 + $0x150] sm:$0xff]  ;;  %v986_v56 = vld [vmem:[#allocation2 + $0x158] sm:$0xff]  ;;  %v959_v28 = vld [vmem:[#allocation2 + $0x80] sm:$0xff] }
 0x163   :  { %1034 = vmatpush.msra.mxu1 %v989_v61  ;;  %1074 = vmatpush.msra.mxu3 %v990_v21  ;;  %v983_v29 = vld [vmem:[#allocation2 + $0x140] sm:$0xff]  ;;  %v960_v20 = vld [vmem:[#allocation2 + $0x88] sm:$0xff]  ;;  %v957_v54 = vld [vmem:[#allocation2 + $0x70] sm:$0xff] }
 0x164   :  { %1011 = vmatpush.msra.mxu0 %v963_v39  ;;  %1051 = vmatpush.msra.mxu2 %v964_v31  ;;  %v984_v30 = vld [vmem:[#allocation2 + $0x148] sm:$0xff]  ;;  %v981_v33 = vld [vmem:[#allocation2 + $0x130] sm:$0xff]  ;;  %v958_v25 = vld [vmem:[#allocation2 + $0x78] sm:$0xff] }
 0x165   :  { %1035 = vmatpush.msra.mxu1 %v987_v17  ;;  %1075 = vmatpush.msra.mxu3 %v988_v63  ;;  %v982_v52 = vld [vmem:[#allocation2 + $0x138] sm:$0xff]  ;;  %v955_v42 = vld [vmem:[#allocation2 + $0x60] sm:$0xff]  ;;  %v956_v32 = vld [vmem:[#allocation2 + $0x68] sm:$0xff] }
 0x166   :  { %1012 = vmatpush.msra.mxu0 %v961_v24  ;;  %1052 = vmatpush.msra.mxu2 %v962_v26  ;;  %v979_v43 = vld [vmem:[#allocation2 + $0x120] sm:$0xff]  ;;  %v980_v59 = vld [vmem:[#allocation2 + $0x128] sm:$0xff]  ;;  %v953_v44 = vld [vmem:[#allocation2 + $0x50] sm:$0xff] }
 0x167   :  { %1036 = vmatpush.msra.mxu1 %v985_v19  ;;  %1076 = vmatpush.msra.mxu3 %v986_v56  ;;  %v977_v45 = vld [vmem:[#allocation2 + $0x110] sm:$0xff]  ;;  %v954_v23 = vld [vmem:[#allocation2 + $0x58] sm:$0xff]  ;;  %v951_v51 = vld [vmem:[#allocation2 + $0x40] sm:$0xff] }
 0x168   :  { %1013 = vmatpush.msra.mxu0 %v959_v28  ;;  %1053 = vmatpush.msra.mxu2 %v960_v20  ;;  %v978_v50 = vld [vmem:[#allocation2 + $0x118] sm:$0xff]  ;;  %v975_v57 = vld [vmem:[#allocation2 + $0x100] sm:$0xff]  ;;  %v952_v40 = vld [vmem:[#allocation2 + $0x48] sm:$0xff] }
 0x169   :  { %1037 = vmatpush.msra.mxu1 %v983_v29  ;;  %1077 = vmatpush.msra.mxu3 %v984_v30  ;;  %v976_v46 = vld [vmem:[#allocation2 + $0x108] sm:$0xff]  ;;  %v1124_v18 = vld [vmem:[#allocation2 + $0x2b0] sm:$0xff]  ;;  %v950_v61 = vld [vmem:[#allocation2 + $0x38] sm:$0xff] }
 0x16a   :  { %1014 = vmatpush.msra.mxu0 %v957_v54  ;;  %1054 = vmatpush.msra.mxu2 %v958_v25  ;;  %v1148_v58 = vld [vmem:[#allocation2 + $0x370] sm:$0xff]  ;;  %v1122_v62 = vld [vmem:[#allocation2 + $0x2a0] sm:$0xff]  ;;  %v948_v17 = vld [vmem:[#allocation2 + $0x28] sm:$0xff] }
 0x16b   :  { %1038 = vmatpush.msra.mxu1 %v981_v33  ;;  %1078 = vmatpush.msra.mxu3 %v982_v52  ;;  %v949_v48 = vld [vmem:[#allocation2 + $0x30] sm:$0xff]  ;;  %v1146_v21 = vld [vmem:[#allocation2 + $0x360] sm:$0xff]  ;;  %v946_v19 = vld [vmem:[#allocation2 + $0x18] sm:$0xff] }
 0x16c   :  { %1015 = vmatpush.msra.mxu0 %v955_v42  ;;  %1055 = vmatpush.msra.mxu2 %v956_v32  ;;  %v947_v39 = vld [vmem:[#allocation2 + $0x20] sm:$0xff]  ;;  %v1120_v31 = vld [vmem:[#allocation2 + $0x290] sm:$0xff]  ;;  %v944_v29 = vld [vmem:[#allocation2 + $0x8] sm:$0xff] }
 0x16d   :  { %1039 = vmatpush.msra.mxu1 %v979_v43  ;;  %1079 = vmatpush.msra.mxu3 %v980_v59  ;;  %v1144_v63 = vld [vmem:[#allocation2 + $0x350] sm:$0xff]  ;;  %v1118_v26 = vld [vmem:[#allocation2 + $0x280] sm:$0xff]  ;;  %v1125_v54 = vld [vmem:[#allocation2 + $0x2b8] sm:$0xff] }
 0x16e   :  { %1016 = vmatpush.msra.mxu0 %v953_v44  ;;  %1056 = vmatpush.msra.mxu2 %v954_v23  ;;  %v945_v24 = vld [vmem:[#allocation2 + $0x10] sm:$0xff]  ;;  %v1142_v56 = vld [vmem:[#allocation2 + $0x340] sm:$0xff]  ;;  %v1149_v33 = vld [vmem:[#allocation2 + $0x378] sm:$0xff] }
 0x16f   :  { %1040 = vmatpush.msra.mxu1 %v977_v45  ;;  %1080 = vmatpush.msra.mxu3 %v978_v50  ;;  %v943_v28 = vld [vmem:[#allocation2] sm:$0xff]  ;;  %v1116_v20 = vld [vmem:[#allocation2 + $0x270] sm:$0xff]  ;;  %v1123_v42 = vld [vmem:[#allocation2 + $0x2a8] sm:$0xff] }
 0x170   :  { %1017 = vmatpush.msra.mxu0 %v951_v51  ;;  %1057 = vmatpush.msra.mxu2 %v952_v40  ;;  %v1140_v30 = vld [vmem:[#allocation2 + $0x330] sm:$0xff]  ;;  %v1114_v25 = vld [vmem:[#allocation2 + $0x260] sm:$0xff]  ;;  %v1147_v43 = vld [vmem:[#allocation2 + $0x368] sm:$0xff] }
 0x171   :  { %1041 = vmatpush.msra.mxu1 %v975_v57  ;;  %1081 = vmatpush.msra.mxu3 %v976_v46  ;;  %v1138_v52 = vld [vmem:[#allocation2 + $0x320] sm:$0xff]  ;;  %v1112_v32 = vld [vmem:[#allocation2 + $0x250] sm:$0xff]  ;;  %v1121_v44 = vld [vmem:[#allocation2 + $0x298] sm:$0xff] }
 0x172   :  { %1018 = vmatpush.msra.mxu0 %v949_v48  ;;  %1058 = vmatpush.msra.mxu2 %v950_v61  ;;  %v1136_v59 = vld [vmem:[#allocation2 + $0x310] sm:$0xff]  ;;  %v1145_v45 = vld [vmem:[#allocation2 + $0x358] sm:$0xff]  ;;  %v3340_v23 = vld.sshfl [vmem:[#allocation1 + $0x8] sm:$0xff pattern:$0x73625140] }
 0x173   :  { %1157 = vmatpush.msrb.mxu1 %v1124_v18  ;;  %1181 = vmatpush.msrb.mxu3 %v1148_v58  ;;  %v3342_v50 = vld.sshfl [vmem:[#allocation1] sm:$0xff pattern:$0x73625140]  ;;  %v1110_v51 = vld [vmem:[#allocation2 + $0x240] sm:$0xff]  ;;  %v1119_v40 = vld [vmem:[#allocation2 + $0x288] sm:$0xff] }
 0x174   :  { %1019 = vmatpush.msra.mxu0 %v947_v39  ;;  %1059 = vmatpush.msra.mxu2 %v948_v17  ;;  %v1134_v57 = vld [vmem:[#allocation2 + $0x300] sm:$0xff]  ;;  %1151 = vst [vmem:[#allocation1] ss:$4 sm:$0xff] %v414_v49  ;;  %v1143_v46 = vld [vmem:[#allocation2 + $0x348] sm:$0xff]  ;;  %v1108_v18 = vld [vmem:[#allocation2 + $0x230] sm:$0xff] }
 0x175   :  { %1158 = vmatpush.msrb.mxu1 %v1122_v62  ;;  %1182 = vmatpush.msrb.mxu3 %v1146_v21  ;;  %v1132_v58 = vld [vmem:[#allocation2 + $0x2f0] sm:$0xff]  ;;  %v1117_v48 = vld [vmem:[#allocation2 + $0x278] sm:$0xff]  ;;  %v1106_v62 = vld [vmem:[#allocation2 + $0x220] sm:$0xff] }
 0x176   :  { %1020 = vmatpush.msra.mxu0 %v945_v24  ;;  %1060 = vmatpush.msra.mxu2 %v946_v19  ;;  %v1141_v61 = vld [vmem:[#allocation2 + $0x338] sm:$0xff]  ;;  %v1130_v21 = vld [vmem:[#allocation2 + $0x2e0] sm:$0xff]  ;;  %v1115_v47 = vld [vmem:[#allocation2 + $0x268] sm:$0xff] }
 0x177   :  { %1159 = vmatpush.msrb.mxu1 %v1120_v31  ;;  %1183 = vmatpush.msrb.mxu3 %v1144_v63  ;;  %v1139_v49 = vld [vmem:[#allocation2 + $0x328] sm:$0xff]  ;;  %v1104_v39 = vld [vmem:[#allocation2 + $0x210] sm:$0xff]  ;;  %v1113_v31 = vld [vmem:[#allocation2 + $0x258] sm:$0xff] }
 0x178   :  { %1021 = vmatpush.msra.mxu0 %v943_v28  ;;  %1061 = vmatpush.msra.mxu2 %v944_v29  ;;  %v1128_v17 = vld [vmem:[#allocation2 + $0x2d0] sm:$0xff]  ;;  %v1137_v63 = vld [vmem:[#allocation2 + $0x318] sm:$0xff]  ;;  %v1102_v24 = vld [vmem:[#allocation2 + $0x200] sm:$0xff] }
 0x179   :  { %1160 = vmatpush.msrb.mxu1 %v1118_v26  ;;  %1184 = vmatpush.msrb.mxu3 %v1142_v56  ;;  %v1126_v19 = vld [vmem:[#allocation2 + $0x2c0] sm:$0xff]  ;;  %v1111_v26 = vld [vmem:[#allocation2 + $0x248] sm:$0xff]  ;;  %v1266_v36 = vld [vmem:[#allocation2 + $0x450] sm:$0xff] }
 0x17a   :  { %1197 = vmatpush.msrb.mxu0 %v1125_v54  ;;  %1221 = vmatpush.msrb.mxu2 %v1149_v33  ;;  %v1135_v56 = vld [vmem:[#allocation2 + $0x308] sm:$0xff]  ;;  %v1109_v54 = vld [vmem:[#allocation2 + $0x238] sm:$0xff]  ;;  %v1872_v27 = vld [vmem:[#allocation2 + $0xc00] sm:$0xff] }
 0x17b   :  { %1161 = vmatpush.msrb.mxu1 %v1116_v20  ;;  %1185 = vmatpush.msrb.mxu3 %v1140_v30  ;;  %v3346_v28 = vld.sshfl [vmem:[#allocation1 + $0x8] sm:$0xff pattern:$0x73625140]  ;;  %v3348_v29 = vld.sshfl [vmem:[#allocation1] sm:$0xff pattern:$0x73625140] }
 0x17c   :  { %1198 = vmatpush.msrb.mxu0 %v1123_v42  ;;  %1222 = vmatpush.msrb.mxu2 %v1147_v43  ;;  %v1100_v20 = vld [vmem:[#allocation2 + $0x1f0] sm:$0xff]  ;;  %1297 = vst [vmem:[#allocation1] ss:$4 sm:$0xff] %v501_v60  ;;  %v1133_v33 = vld [vmem:[#allocation2 + $0x2f8] sm:$0xff]  ;;  %v1107_v42 = vld [vmem:[#allocation2 + $0x228] sm:$0xff] }
 0x17d   :  { %1162 = vmatpush.msrb.mxu1 %v1114_v25  ;;  %1186 = vmatpush.msrb.mxu3 %v1138_v52  ;;  %v1270_v30 = vld [vmem:[#allocation2 + $0x470] sm:$0xff]  ;;  %v1098_v25 = vld [vmem:[#allocation2 + $0x1e0] sm:$0xff]  ;;  %v1131_v43 = vld [vmem:[#allocation2 + $0x2e8] sm:$0xff] }
 0x17e   :  { %1199 = vmatpush.msrb.mxu0 %v1121_v44  ;;  %1223 = vmatpush.msrb.mxu2 %v1145_v45  ;;  %v1268_v52 = vld [vmem:[#allocation2 + $0x460] sm:$0xff]  ;;  %v1105_v60 = vld [vmem:[#allocation2 + $0x218] sm:$0xff]  ;;  %v1265_v37 = vld [vmem:[#allocation2 + $0x448] sm:$0xff] }
 0x17f   :  { %1163 = vmatpush.msrb.mxu1 %v1112_v32  ;;  %1187 = vmatpush.msrb.mxu3 %v1136_v59  ;;  %v1096_v32 = vld [vmem:[#allocation2 + $0x1d0] sm:$0xff]  ;;  %v1129_v59 = vld [vmem:[#allocation2 + $0x2d8] sm:$0xff]  ;;  %v1264_v44 = vld [vmem:[#allocation2 + $0x440] sm:$0xff] }
 0x180   :  { %1200 = vmatpush.msrb.mxu0 %v1119_v40  ;;  %1224 = vmatpush.msrb.mxu2 %v1143_v46  ;;  %v1094_v45 = vld [vmem:[#allocation2 + $0x1c0] sm:$0xff]  ;;  %v1262_v40 = vld [vmem:[#allocation2 + $0x430] sm:$0xff]  ;;  %v1441_v38 = vld [vmem:[#allocation2 + $0x6f8] sm:$0xff] }
 0x181   :  { %1164 = vmatpush.msrb.mxu1 %v1110_v51  ;;  %1188 = vmatpush.msrb.mxu3 %v1134_v57  ;;  %v1103_v51 = vld [vmem:[#allocation2 + $0x208] sm:$0xff]  ;;  %v1294_v46 = vld [vmem:[#allocation2 + $0x530] sm:$0xff]  ;;  %v1733_v53 = vld [vmem:[#allocation2 + $0xa78] sm:$0xff] }
 0x182   :  { %1201 = vmatpush.msrb.mxu0 %v1117_v48  ;;  %1225 = vmatpush.msrb.mxu2 %v1141_v61  ;;  %v1127_v57 = vld [vmem:[#allocation2 + $0x2c8] sm:$0xff]  ;;  %v1260_v48 = vld [vmem:[#allocation2 + $0x420] sm:$0xff] }
 0x183   :  { %1165 = vmatpush.msrb.mxu1 %v1108_v18  ;;  %1189 = vmatpush.msrb.mxu3 %v1132_v58  ;;  %v1271_v18 = vld [vmem:[#allocation2 + $0x478] sm:$0xff]  ;;  %v1292_v61 = vld [vmem:[#allocation2 + $0x520] sm:$0xff]  ;;  %v1387_v35 = vld [vmem:[#allocation2 + $0x548] sm:$0xff] }
 0x184   :  { %1202 = vmatpush.msrb.mxu0 %v1115_v47  ;;  %1226 = vmatpush.msrb.mxu2 %v1139_v49  ;;  %v1101_v58 = vld [vmem:[#allocation2 + $0x1f8] sm:$0xff]  ;;  %v3359_v49 = vld.sshfl [vmem:[#allocation1 + $0x8] sm:$0xff pattern:$0x73625140] }
 0x185   :  { %1166 = vmatpush.msrb.mxu1 %v1106_v62  ;;  %1190 = vmatpush.msrb.mxu3 %v1130_v21  ;;  %v1269_v62 = vld [vmem:[#allocation2 + $0x468] sm:$0xff]  ;;  %v3357_v47 = vld.sshfl [vmem:[#allocation1] sm:$0xff pattern:$0x73625140] }
 0x186   :  { %1203 = vmatpush.msrb.mxu0 %v1113_v31  ;;  %1227 = vmatpush.msrb.mxu2 %v1137_v63  ;;  %v1099_v21 = vld [vmem:[#allocation2 + $0x1e8] sm:$0xff]  ;;  %1443 = vst [vmem:[#allocation1] ss:$4 sm:$0xff] %v588_v41  ;;  %v1097_v31 = vld [vmem:[#allocation2 + $0x1d8] sm:$0xff]  ;;  %v1256_v63 = vld [vmem:[#allocation2 + $0x400] sm:$0xff] }
 0x187   :  { %1167 = vmatpush.msrb.mxu1 %v1104_v39  ;;  %1191 = vmatpush.msrb.mxu3 %v1128_v17  ;;  %v1258_v39 = vld [vmem:[#allocation2 + $0x410] sm:$0xff]  ;;  %v1267_v17 = vld [vmem:[#allocation2 + $0x458] sm:$0xff]  ;;  %v1095_v41 = vld [vmem:[#allocation2 + $0x1c8] sm:$0xff] }
 0x188   :  { %1204 = vmatpush.msrb.mxu0 %v1111_v26  ;;  %1228 = vmatpush.msrb.mxu2 %v1135_v56  ;;  %v1263_v26 = vld [vmem:[#allocation2 + $0x438] sm:$0xff] }
 0x189   :  { %1168 = vmatpush.msrb.mxu1 %v1102_v24  ;;  %1192 = vmatpush.msrb.mxu3 %v1126_v19  ;;  %v1288_v24 = vld [vmem:[#allocation2 + $0x500] sm:$0xff]  ;;  %v1286_v19 = vld [vmem:[#allocation2 + $0x4f0] sm:$0xff]  ;;  %v1295_v56 = vld [vmem:[#allocation2 + $0x538] sm:$0xff] }
 0x18a   :  { %2464 = vmatmul.msk.f32.vlgmr.msra.gmra.mxu3 %vm298_vm5, %v3340_v23  ;;  %1205 = vmatpush.msrb.mxu0 %v1109_v54  ;;  %v1293_v54 = vld [vmem:[#allocation2 + $0x528] sm:$0xff] }
 0x18b   :  { %1169 = vmatpush.msrb.mxu1 %v1100_v20  ;;  %1303 = vmatpush.msra.mxu3 %v1270_v30  ;;  %v1252_v20 = vld [vmem:[#allocation2 + $0x3e0] sm:$0xff]  ;;  %v1261_v30 = vld [vmem:[#allocation2 + $0x428] sm:$0xff] }
 0x18c   :  { %1229 = vmatpush.msrb.mxu2 %v1133_v33  ;;  %1206 = vmatpush.msrb.mxu0 %v1107_v42  ;;  %v1250_v33 = vld [vmem:[#allocation2 + $0x3d0] sm:$0xff]  ;;  %v1291_v42 = vld [vmem:[#allocation2 + $0x518] sm:$0xff] }
 0x18d   :  { %1170 = vmatpush.msrb.mxu1 %v1098_v25  ;;  %1304 = vmatpush.msra.mxu3 %v1268_v52  ;;  %v1282_v25 = vld [vmem:[#allocation2 + $0x4d0] sm:$0xff]  ;;  %v1259_v52 = vld [vmem:[#allocation2 + $0x418] sm:$0xff] }
 0x18e   :  { %1230 = vmatpush.msrb.mxu2 %v1131_v43  ;;  %1207 = vmatpush.msrb.mxu0 %v1105_v60  ;;  %v1248_v43 = vld [vmem:[#allocation2 + $0x3c0] sm:$0xff]  ;;  %v1289_v60 = vld [vmem:[#allocation2 + $0x508] sm:$0xff] }
 0x18f   :  { %1171 = vmatpush.msrb.mxu1 %v1096_v32  ;;  %1062 = vmatmul.f32.vlgmr.msra.gmra.mxu2 %v3342_v50  ;;  %v1280_v32 = vld [vmem:[#allocation2 + $0x4c0] sm:$0xff] }
 0x190   :  { %1305 = vmatpush.msra.mxu3 %v1266_v36  ;;  %1231 = vmatpush.msrb.mxu2 %v1129_v59  ;;  %v1257_v36 = vld [vmem:[#allocation2 + $0x408] sm:$0xff]  ;;  %v1246_v59 = vld [vmem:[#allocation2 + $0x3b0] sm:$0xff] }
 0x191   :  { %1172 = vmatpush.msrb.mxu1 %v1094_v45  ;;  %1208 = vmatpush.msrb.mxu0 %v1103_v51  ;;  %v1287_v45 = vld [vmem:[#allocation2 + $0x4f8] sm:$0xff]  ;;  %v1244_v51 = vld [vmem:[#allocation2 + $0x3a0] sm:$0xff] }
 0x192   :  { %1306 = vmatpush.msra.mxu3 %v1264_v44  ;;  %1232 = vmatpush.msrb.mxu2 %v1127_v57  ;;  %v1278_v44 = vld [vmem:[#allocation2 + $0x4b0] sm:$0xff]  ;;  %v1276_v57 = vld [vmem:[#allocation2 + $0x4a0] sm:$0xff] }
 0x193   :  { %2463 = vmatmul.msk.f32.vlgmr.msra.gmra.mxu1 %vm298_vm5, %v3340_v23  ;;  %1209 = vmatpush.msrb.mxu0 %v1101_v58  ;;  %v1290_v23 = vld [vmem:[#allocation2 + $0x510] sm:$0xff] }
 0x194   :  { %1307 = vmatpush.msra.mxu3 %v1262_v40  ;;  %1327 = vmatpush.msra.mxu1 %v1294_v46  ;;  %v1253_v40 = vld [vmem:[#allocation2 + $0x3e8] sm:$0xff]  ;;  %v1274_v58 = vld [vmem:[#allocation2 + $0x490] sm:$0xff] }
 0x195   :  { %1343 = vmatpush.msra.mxu2 %v1271_v18  ;;  %1022 = vmatmul.f32.vlgmr.msra.gmra.mxu0 %v3342_v50  ;;  %v1254_v50 = vld [vmem:[#allocation2 + $0x3f0] sm:$0xff]  ;;  %v1285_v46 = vld [vmem:[#allocation2 + $0x4e8] sm:$0xff] }
 0x196   :  { %1308 = vmatpush.msra.mxu3 %v1260_v48  ;;  %1328 = vmatpush.msra.mxu1 %v1292_v61  ;;  %v1242_v18 = vld [vmem:[#allocation2 + $0x390] sm:$0xff]  ;;  %v1251_v48 = vld [vmem:[#allocation2 + $0x3d8] sm:$0xff] }
 0x197   :  { %1344 = vmatpush.msra.mxu2 %v1269_v62  ;;  %1210 = vmatpush.msrb.mxu0 %v1099_v21  ;;  %v1283_v61 = vld [vmem:[#allocation2 + $0x4d8] sm:$0xff]  ;;  %v1240_v62 = vld [vmem:[#allocation2 + $0x380] sm:$0xff] }
 0x198   :  { %2465 = vmatmul.msk.f32.vlgmr.msrb.gmra.mxu3 %vm298_vm5, %v3346_v28  ;;  %2466 = vmatmul.msk.f32.vlgmr.msrb.gmra.mxu2 %vm298_vm5, %v3346_v28  ;;  %v1284_v28 = vld [vmem:[#allocation2 + $0x4e0] sm:$0xff] }
 0x199   :  { %1309 = vmatpush.msra.mxu3 %v1258_v39  ;;  %1329 = vmatpush.msra.mxu1 %v1290_v23  ;;  %v1272_v21 = vld [vmem:[#allocation2 + $0x480] sm:$0xff]  ;;  %v1249_v39 = vld [vmem:[#allocation2 + $0x3c8] sm:$0xff] }
 0x19a   :  { %1345 = vmatpush.msra.mxu2 %v1267_v17  ;;  %1211 = vmatpush.msrb.mxu0 %v1097_v31  ;;  %v1281_v23 = vld [vmem:[#allocation2 + $0x4c8] sm:$0xff]  ;;  %v1416_v17 = vld [vmem:[#allocation2 + $0x630] sm:$0xff] }
 0x19b   :  { %1310 = vmatpush.msra.mxu3 %v1256_v63  ;;  %1330 = vmatpush.msra.mxu1 %v1288_v24  ;;  %v1440_v31 = vld [vmem:[#allocation2 + $0x6f0] sm:$0xff]  ;;  %v1247_v63 = vld [vmem:[#allocation2 + $0x3b8] sm:$0xff] }
 0x19c   :  { %1346 = vmatpush.msra.mxu2 %v1265_v37  ;;  %1212 = vmatpush.msrb.mxu0 %v1095_v41  ;;  %v1279_v24 = vld [vmem:[#allocation2 + $0x4b8] sm:$0xff]  ;;  %v1414_v37 = vld [vmem:[#allocation2 + $0x620] sm:$0xff] }
 0x19d   :  { %1311 = vmatpush.msra.mxu3 %v1254_v50  ;;  %1331 = vmatpush.msra.mxu1 %v1286_v19  ;;  %v1438_v41 = vld [vmem:[#allocation2 + $0x6e0] sm:$0xff]  ;;  %v1245_v50 = vld [vmem:[#allocation2 + $0x3a8] sm:$0xff] }
 0x19e   :  { %1347 = vmatpush.msra.mxu2 %v1263_v26  ;;  %1367 = vmatpush.msra.mxu0 %v1295_v56  ;;  %v1277_v19 = vld [vmem:[#allocation2 + $0x4a8] sm:$0xff]  ;;  %v1412_v26 = vld [vmem:[#allocation2 + $0x610] sm:$0xff] }
 0x19f   :  { %1173 = vmatmul.f32.vlgmr.msrb.gmra.mxu1 %v3348_v29  ;;  %1213 = vmatmul.f32.vlgmr.msrb.gmra.mxu0 %v3348_v29  ;;  %v1255_v29 = vld [vmem:[#allocation2 + $0x3f8] sm:$0xff]  ;;  %v1436_v56 = vld [vmem:[#allocation2 + $0x6d0] sm:$0xff] }
 0x1a0   :  { %1312 = vmatpush.msra.mxu3 %v1252_v20  ;;  %1332 = vmatpush.msra.mxu1 %v1284_v28  ;;  %v1243_v20 = vld [vmem:[#allocation2 + $0x398] sm:$0xff]  ;;  %v3371_v28 = vld.sshfl [vmem:[#allocation1 + $0x8] sm:$0xff pattern:$0x73625140] }
 0x1a1   :  { %1348 = vmatpush.msra.mxu2 %v1261_v30  ;;  %1368 = vmatpush.msra.mxu0 %v1293_v54  ;;  %v3373_v30 = vld.sshfl [vmem:[#allocation1] sm:$0xff pattern:$0x73625140] }
 0x1a2   :  { %1313 = vmatpush.msra.mxu3 %v1250_v33  ;;  %1333 = vmatpush.msra.mxu1 %v1282_v25  ;;  %v1275_v54 = vld [vmem:[#allocation2 + $0x498] sm:$0xff]  ;;  %1589 = vst [vmem:[#allocation1] ss:$4 sm:$0xff] %v675_v55  ;;  %v1410_v33 = vld [vmem:[#allocation2 + $0x600] sm:$0xff] }
 0x1a3   :  { %1349 = vmatpush.msra.mxu2 %v1259_v52  ;;  %1369 = vmatpush.msra.mxu0 %v1291_v42  ;;  %v1434_v25 = vld [vmem:[#allocation2 + $0x6c0] sm:$0xff]  ;;  %v1241_v52 = vld [vmem:[#allocation2 + $0x388] sm:$0xff] }
 0x1a4   :  { %1314 = vmatpush.msra.mxu3 %v1248_v43  ;;  %1334 = vmatpush.msra.mxu1 %v1280_v32  ;;  %v1273_v42 = vld [vmem:[#allocation2 + $0x488] sm:$0xff]  ;;  %v1408_v43 = vld [vmem:[#allocation2 + $0x5f0] sm:$0xff]  ;;  %v1406_v55 = vld [vmem:[#allocation2 + $0x5e0] sm:$0xff] }
 0x1a5   :  { %1350 = vmatpush.msra.mxu2 %v1257_v36  ;;  %1370 = vmatpush.msra.mxu0 %v1289_v60  ;;  %v1432_v32 = vld [vmem:[#allocation2 + $0x6b0] sm:$0xff]  ;;  %v1417_v36 = vld [vmem:[#allocation2 + $0x638] sm:$0xff]  ;;  %v1430_v60 = vld [vmem:[#allocation2 + $0x6a0] sm:$0xff] }
 0x1a6   :  { %1315 = vmatpush.msra.mxu3 %v1246_v59  ;;  %1335 = vmatpush.msra.mxu1 %v1278_v44  ;;  %v1415_v59 = vld [vmem:[#allocation2 + $0x628] sm:$0xff] }
 0x1a7   :  { %1351 = vmatpush.msra.mxu2 %v1255_v29  ;;  %1371 = vmatpush.msra.mxu0 %v1287_v45  ;;  %v1439_v44 = vld [vmem:[#allocation2 + $0x6e8] sm:$0xff]  ;;  %v1404_v29 = vld [vmem:[#allocation2 + $0x5d0] sm:$0xff] }
 0x1a8   :  { %1316 = vmatpush.msra.mxu3 %v1244_v51  ;;  %1336 = vmatpush.msra.mxu1 %v1276_v57  ;;  %v1428_v45 = vld [vmem:[#allocation2 + $0x690] sm:$0xff]  ;;  %v1413_v51 = vld [vmem:[#allocation2 + $0x618] sm:$0xff] }
 0x1a9   :  { %1352 = vmatpush.msra.mxu2 %v1253_v40  ;;  %1372 = vmatpush.msra.mxu0 %v1285_v46  ;;  %v1437_v57 = vld [vmem:[#allocation2 + $0x6d8] sm:$0xff]  ;;  %v1402_v40 = vld [vmem:[#allocation2 + $0x5c0] sm:$0xff] }
 0x1aa   :  { %1317 = vmatpush.msra.mxu3 %v1242_v18  ;;  %1337 = vmatpush.msra.mxu1 %v1274_v58  ;;  %v1426_v46 = vld [vmem:[#allocation2 + $0x680] sm:$0xff]  ;;  %v1435_v18 = vld [vmem:[#allocation2 + $0x6c8] sm:$0xff]  ;;  %v1400_v58 = vld [vmem:[#allocation2 + $0x5b0] sm:$0xff] }
 0x1ab   :  { %1353 = vmatpush.msra.mxu2 %v1251_v48  ;;  %1373 = vmatpush.msra.mxu0 %v1283_v61  ;;  %v1424_v48 = vld [vmem:[#allocation2 + $0x670] sm:$0xff]  ;;  %v1409_v61 = vld [vmem:[#allocation2 + $0x5f8] sm:$0xff] }
 0x1ac   :  { %1318 = vmatpush.msra.mxu3 %v1240_v62  ;;  %1338 = vmatpush.msra.mxu1 %v1272_v21  ;;  %v1433_v62 = vld [vmem:[#allocation2 + $0x6b8] sm:$0xff]  ;;  %v1398_v21 = vld [vmem:[#allocation2 + $0x5a0] sm:$0xff] }
 0x1ad   :  { %1354 = vmatpush.msra.mxu2 %v1249_v39  ;;  %1374 = vmatpush.msra.mxu0 %v1281_v23  ;;  %v1422_v39 = vld [vmem:[#allocation2 + $0x660] sm:$0xff]  ;;  %v1407_v23 = vld [vmem:[#allocation2 + $0x5e8] sm:$0xff] }
 0x1ae   :  { %1319 = vmatmul.f32.vlgmr.msra.gmra.mxu3 %v3357_v47  ;;  %1449 = vmatpush.msrb.mxu1 %v1416_v17  ;;  %v1431_v17 = vld [vmem:[#allocation2 + $0x6a8] sm:$0xff] }
 0x1af   :  { %1473 = vmatpush.msrb.mxu3 %v1440_v31  ;;  %1355 = vmatpush.msra.mxu2 %v1247_v63  ;;  %v1396_v31 = vld [vmem:[#allocation2 + $0x590] sm:$0xff] }
 0x1b0   :  { %1375 = vmatpush.msra.mxu0 %v1279_v24  ;;  %1450 = vmatpush.msrb.mxu1 %v1414_v37  ;;  %v1420_v63 = vld [vmem:[#allocation2 + $0x650] sm:$0xff]  ;;  %v1429_v24 = vld [vmem:[#allocation2 + $0x698] sm:$0xff]  ;;  %v1394_v37 = vld [vmem:[#allocation2 + $0x580] sm:$0xff] }
 0x1b1   :  { %1474 = vmatpush.msrb.mxu3 %v1438_v41  ;;  %1356 = vmatpush.msra.mxu2 %v1245_v50  ;;  %v1418_v41 = vld [vmem:[#allocation2 + $0x640] sm:$0xff]  ;;  %v1403_v50 = vld [vmem:[#allocation2 + $0x5c8] sm:$0xff] }
 0x1b2   :  { %1376 = vmatpush.msra.mxu0 %v1277_v19  ;;  %1451 = vmatpush.msrb.mxu1 %v1412_v26  ;;  %v1427_v19 = vld [vmem:[#allocation2 + $0x688] sm:$0xff]  ;;  %v1562_v26 = vld [vmem:[#allocation2 + $0x7f0] sm:$0xff] }
 0x1b3   :  { %1475 = vmatpush.msrb.mxu3 %v1436_v56  ;;  %1357 = vmatpush.msra.mxu2 %v1243_v20  ;;  %v1392_v56 = vld [vmem:[#allocation2 + $0x570] sm:$0xff]  ;;  %v1401_v20 = vld [vmem:[#allocation2 + $0x5b8] sm:$0xff] }
 0x1b4   :  { %1377 = vmatpush.msra.mxu0 %v1275_v54  ;;  %2467 = vmatmul.msk.f32.vlgmr.msra.gmra.mxu1 %vm298_vm5, %v3359_v49  ;;  %v1425_v54 = vld [vmem:[#allocation2 + $0x678] sm:$0xff] }
 0x1b5   :  { %1452 = vmatpush.msrb.mxu1 %v1410_v33  ;;  %1476 = vmatpush.msrb.mxu3 %v1434_v25  ;;  %v1390_v33 = vld [vmem:[#allocation2 + $0x560] sm:$0xff] }
 0x1b6   :  { %1358 = vmatpush.msra.mxu2 %v1241_v52  ;;  %1378 = vmatpush.msra.mxu0 %v1273_v42  ;;  %v1560_v25 = vld [vmem:[#allocation2 + $0x7e0] sm:$0xff]  ;;  %v1399_v52 = vld [vmem:[#allocation2 + $0x5a8] sm:$0xff] }
 0x1b7   :  { %1359 = vmatmul.f32.vlgmr.msra.gmra.mxu2 %v3357_v47  ;;  %1453 = vmatpush.msrb.mxu1 %v1408_v43  ;;  %v1411_v47 = vld [vmem:[#allocation2 + $0x608] sm:$0xff]  ;;  %v1388_v43 = vld [vmem:[#allocation2 + $0x550] sm:$0xff] }
 0x1b8   :  { %1477 = vmatpush.msrb.mxu3 %v1432_v32  ;;  %1489 = vmatpush.msrb.mxu0 %v1417_v36  ;;  %v1423_v42 = vld [vmem:[#allocation2 + $0x668] sm:$0xff]  ;;  %v1558_v32 = vld [vmem:[#allocation2 + $0x7d0] sm:$0xff]  ;;  %v1397_v36 = vld [vmem:[#allocation2 + $0x598] sm:$0xff] }
 0x1b9   :  { %1513 = vmatpush.msrb.mxu2 %v1441_v38  ;;  %1454 = vmatpush.msrb.mxu1 %v1406_v55  ;;  %v1421_v38 = vld [vmem:[#allocation2 + $0x658] sm:$0xff]  ;;  %v1386_v55 = vld [vmem:[#allocation2 + $0x540] sm:$0xff] }
 0x1ba   :  { %1478 = vmatpush.msrb.mxu3 %v1430_v60  ;;  %1490 = vmatpush.msrb.mxu0 %v1415_v59  ;;  %v1556_v60 = vld [vmem:[#allocation2 + $0x7c0] sm:$0xff]  ;;  %v1395_v59 = vld [vmem:[#allocation2 + $0x588] sm:$0xff] }
 0x1bb   :  { %1514 = vmatpush.msrb.mxu2 %v1439_v44  ;;  %1455 = vmatpush.msrb.mxu1 %v1404_v29  ;;  %v1419_v44 = vld [vmem:[#allocation2 + $0x648] sm:$0xff]  ;;  %v1554_v29 = vld [vmem:[#allocation2 + $0x7b0] sm:$0xff] }
 0x1bc   :  { %1479 = vmatpush.msrb.mxu3 %v1428_v45  ;;  %1491 = vmatpush.msrb.mxu0 %v1413_v51  ;;  %v1586_v45 = vld [vmem:[#allocation2 + $0x8b0] sm:$0xff]  ;;  %v1563_v51 = vld [vmem:[#allocation2 + $0x7f8] sm:$0xff] }
 0x1bd   :  { %1515 = vmatpush.msrb.mxu2 %v1437_v57  ;;  %2468 = vmatmul.msk.f32.vlgmr.msra.gmra.mxu0 %vm298_vm5, %v3359_v49  ;;  %v1405_v49 = vld [vmem:[#allocation2 + $0x5d8] sm:$0xff] }
 0x1be   :  { %1456 = vmatpush.msrb.mxu1 %v1402_v40  ;;  %1480 = vmatpush.msrb.mxu3 %v1426_v46  ;;  %v1393_v57 = vld [vmem:[#allocation2 + $0x578] sm:$0xff]  ;;  %v1552_v40 = vld [vmem:[#allocation2 + $0x7a0] sm:$0xff] }
 0x1bf   :  { %1492 = vmatpush.msrb.mxu0 %v1411_v47  ;;  %1516 = vmatpush.msrb.mxu2 %v1435_v18  ;;  %v3385_v46 = vld.sshfl [vmem:[#allocation1] sm:$0xff pattern:$0x73625140]  ;;  %v3387_v47 = vld.sshfl [vmem:[#allocation1 + $0x8] sm:$0xff pattern:$0x73625140] }
 0x1c0   :  { %1457 = vmatpush.msrb.mxu1 %v1400_v58  ;;  %1481 = vmatpush.msrb.mxu3 %v1424_v48  ;;  %v1584_v18 = vld [vmem:[#allocation2 + $0x8a0] sm:$0xff]  ;;  %v1561_v58 = vld [vmem:[#allocation2 + $0x7e8] sm:$0xff]  ;;  %1735 = vst [vmem:[#allocation1] ss:$4 sm:$0xff] %v762_v22  ;;  %v1546_v22 = vld [vmem:[#allocation2 + $0x770] sm:$0xff] }
 0x1c1   :  { %1493 = vmatpush.msrb.mxu0 %v1409_v61  ;;  %1517 = vmatpush.msrb.mxu2 %v1433_v62  ;;  %v1391_v48 = vld [vmem:[#allocation2 + $0x568] sm:$0xff]  ;;  %v1550_v61 = vld [vmem:[#allocation2 + $0x790] sm:$0xff] }
 0x1c2   :  { %1458 = vmatpush.msrb.mxu1 %v1398_v21  ;;  %1482 = vmatpush.msrb.mxu3 %v1422_v39  ;;  %v1582_v62 = vld [vmem:[#allocation2 + $0x890] sm:$0xff]  ;;  %v1559_v21 = vld [vmem:[#allocation2 + $0x7d8] sm:$0xff] }
 0x1c3   :  { %1494 = vmatpush.msrb.mxu0 %v1407_v23  ;;  %1518 = vmatpush.msrb.mxu2 %v1431_v17  ;;  %v1389_v39 = vld [vmem:[#allocation2 + $0x558] sm:$0xff]  ;;  %v1548_v23 = vld [vmem:[#allocation2 + $0x780] sm:$0xff] }
 0x1c4   :  { %1459 = vmatpush.msrb.mxu1 %v1396_v31  ;;  %1483 = vmatpush.msrb.mxu3 %v1420_v63  ;;  %v1580_v17 = vld [vmem:[#allocation2 + $0x880] sm:$0xff]  ;;  %v1557_v31 = vld [vmem:[#allocation2 + $0x7c8] sm:$0xff]  ;;  %v1578_v63 = vld [vmem:[#allocation2 + $0x870] sm:$0xff] }
 0x1c5   :  { %1495 = vmatpush.msrb.mxu0 %v1405_v49  ;;  %1519 = vmatpush.msrb.mxu2 %v1429_v24  ;;  %v1587_v49 = vld [vmem:[#allocation2 + $0x8b8] sm:$0xff]  ;;  %v1544_v24 = vld [vmem:[#allocation2 + $0x760] sm:$0xff] }
 0x1c6   :  { %1460 = vmatpush.msrb.mxu1 %v1394_v37  ;;  %1484 = vmatpush.msrb.mxu3 %v1418_v41  ;;  %v1576_v37 = vld [vmem:[#allocation2 + $0x860] sm:$0xff]  ;;  %v1553_v41 = vld [vmem:[#allocation2 + $0x7a8] sm:$0xff] }
 0x1c7   :  { %1496 = vmatpush.msrb.mxu0 %v1403_v50  ;;  %1520 = vmatpush.msrb.mxu2 %v1427_v19  ;;  %v1585_v50 = vld [vmem:[#allocation2 + $0x8a8] sm:$0xff]  ;;  %v1542_v19 = vld [vmem:[#allocation2 + $0x750] sm:$0xff] }
 0x1c8   :  { %1595 = vmatpush.msra.mxu3 %v1562_v26  ;;  %1461 = vmatpush.msrb.mxu1 %v1392_v56  ;;  %v1574_v26 = vld [vmem:[#allocation2 + $0x850] sm:$0xff]  ;;  %v1551_v56 = vld [vmem:[#allocation2 + $0x798] sm:$0xff] }
 0x1c9   :  { %1497 = vmatpush.msrb.mxu0 %v1401_v20  ;;  %1521 = vmatpush.msrb.mxu2 %v1425_v54  ;;  %v1583_v20 = vld [vmem:[#allocation2 + $0x898] sm:$0xff]  ;;  %v1540_v54 = vld [vmem:[#allocation2 + $0x740] sm:$0xff] }
 0x1ca   :  { %2469 = vmatmul.msk.f32.vlgmr.msrb.gmra.mxu3 %vm298_vm5, %v3371_v28  ;;  %1462 = vmatpush.msrb.mxu1 %v1390_v33  ;;  %v1572_v33 = vld [vmem:[#allocation2 + $0x840] sm:$0xff] }
 0x1cb   :  { %1596 = vmatpush.msra.mxu3 %v1560_v25  ;;  %1498 = vmatpush.msrb.mxu0 %v1399_v52  ;;  %v1549_v25 = vld [vmem:[#allocation2 + $0x788] sm:$0xff] }
 0x1cc   :  { %1522 = vmatpush.msrb.mxu2 %v1423_v42  ;;  %1463 = vmatpush.msrb.mxu1 %v1388_v43  ;;  %v1581_v52 = vld [vmem:[#allocation2 + $0x888] sm:$0xff]  ;;  %v1570_v42 = vld [vmem:[#allocation2 + $0x830] sm:$0xff]  ;;  %v1547_v43 = vld [vmem:[#allocation2 + $0x778] sm:$0xff] }
 0x1cd   :  { %1597 = vmatpush.msra.mxu3 %v1558_v32  ;;  %1499 = vmatpush.msrb.mxu0 %v1397_v36  ;;  %v1579_v32 = vld [vmem:[#allocation2 + $0x878] sm:$0xff]  ;;  %v1536_v36 = vld [vmem:[#allocation2 + $0x720] sm:$0xff] }
 0x1ce   :  { %1523 = vmatpush.msrb.mxu2 %v1421_v38  ;;  %1464 = vmatpush.msrb.mxu1 %v1386_v55  ;;  %v1568_v38 = vld [vmem:[#allocation2 + $0x820] sm:$0xff]  ;;  %v1545_v55 = vld [vmem:[#allocation2 + $0x768] sm:$0xff] }
 0x1cf   :  { %1598 = vmatpush.msra.mxu3 %v1556_v60  ;;  %1500 = vmatpush.msrb.mxu0 %v1395_v59  ;;  %v1577_v60 = vld [vmem:[#allocation2 + $0x868] sm:$0xff]  ;;  %v1534_v59 = vld [vmem:[#allocation2 + $0x710] sm:$0xff] }
 0x1d0   :  { %1524 = vmatpush.msrb.mxu2 %v1419_v44  ;;  %1465 = vmatmul.f32.vlgmr.msrb.gmra.mxu1 %v3373_v30  ;;  %v1566_v44 = vld [vmem:[#allocation2 + $0x810] sm:$0xff] }
 0x1d1   :  { %1599 = vmatpush.msra.mxu3 %v1554_v29  ;;  %1619 = vmatpush.msra.mxu1 %v1586_v45  ;;  %v1543_v29 = vld [vmem:[#allocation2 + $0x758] sm:$0xff] }
 0x1d2   :  { %1635 = vmatpush.msra.mxu2 %v1563_v51  ;;  %1501 = vmatpush.msrb.mxu0 %v1393_v57  ;;  %v1575_v45 = vld [vmem:[#allocation2 + $0x858] sm:$0xff]  ;;  %v1532_v51 = vld [vmem:[#allocation2 + $0x700] sm:$0xff] }
 0x1d3   :  { %2470 = vmatmul.msk.f32.vlgmr.msrb.gmra.mxu2 %vm298_vm5, %v3371_v28  ;;  %1600 = vmatpush.msra.mxu3 %v1552_v40  ;;  %v1555_v28 = vld [vmem:[#allocation2 + $0x7b8] sm:$0xff]  ;;  %v1564_v57 = vld [vmem:[#allocation2 + $0x800] sm:$0xff]  ;;  %v1541_v40 = vld [vmem:[#allocation2 + $0x748] sm:$0xff] }
 0x1d4   :  { %1620 = vmatpush.msra.mxu1 %v1584_v18  ;;  %1636 = vmatpush.msra.mxu2 %v1561_v58  ;;  %v1573_v18 = vld [vmem:[#allocation2 + $0x848] sm:$0xff]  ;;  %v1708_v58 = vld [vmem:[#allocation2 + $0x9b0] sm:$0xff] }
 0x1d5   :  { %1502 = vmatpush.msrb.mxu0 %v1391_v48  ;;  %1601 = vmatpush.msra.mxu3 %v1550_v61  ;;  %v1732_v48 = vld [vmem:[#allocation2 + $0xa70] sm:$0xff]  ;;  %v1539_v61 = vld [vmem:[#allocation2 + $0x738] sm:$0xff] }
 0x1d6   :  { %1621 = vmatpush.msra.mxu1 %v1582_v62  ;;  %1637 = vmatpush.msra.mxu2 %v1559_v21  ;;  %v1571_v62 = vld [vmem:[#allocation2 + $0x838] sm:$0xff]  ;;  %v1706_v21 = vld [vmem:[#allocation2 + $0x9a0] sm:$0xff] }
 0x1d7   :  { %1503 = vmatpush.msrb.mxu0 %v1389_v39  ;;  %1602 = vmatpush.msra.mxu3 %v1548_v23  ;;  %v1730_v39 = vld [vmem:[#allocation2 + $0xa60] sm:$0xff]  ;;  %v1537_v23 = vld [vmem:[#allocation2 + $0x728] sm:$0xff] }
 0x1d8   :  { %1622 = vmatpush.msra.mxu1 %v1580_v17  ;;  %1638 = vmatpush.msra.mxu2 %v1557_v31  ;;  %v1569_v17 = vld [vmem:[#allocation2 + $0x828] sm:$0xff]  ;;  %v1704_v31 = vld [vmem:[#allocation2 + $0x990] sm:$0xff] }
 0x1d9   :  { %1504 = vmatpush.msrb.mxu0 %v1387_v35  ;;  %1603 = vmatpush.msra.mxu3 %v1546_v22  ;;  %v1728_v35 = vld [vmem:[#allocation2 + $0xa50] sm:$0xff]  ;;  %v1535_v22 = vld [vmem:[#allocation2 + $0x718] sm:$0xff] }
 0x1da   :  { %1505 = vmatmul.f32.vlgmr.msrb.gmra.mxu0 %v3373_v30  ;;  %1623 = vmatpush.msra.mxu1 %v1578_v63  ;;  %v1538_v30 = vld [vmem:[#allocation2 + $0x730] sm:$0xff]  ;;  %v3395_v63 = vld.sshfl [vmem:[#allocation1 + $0x8] sm:$0xff pattern:$0x73625140] }
 0x1db   :  { %1639 = vmatpush.msra.mxu2 %v1555_v28  ;;  %1659 = vmatpush.msra.mxu0 %v1587_v49  ;;  %v3397_v28 = vld.sshfl [vmem:[#allocation1] sm:$0xff pattern:$0x73625140] }
 0x1dc   :  { %1604 = vmatpush.msra.mxu3 %v1544_v24  ;;  %1624 = vmatpush.msra.mxu1 %v1576_v37  ;;  %v1567_v49 = vld [vmem:[#allocation2 + $0x818] sm:$0xff]  ;;  %1881 = vst [vmem:[#allocation1] ss:$4 sm:$0xff] %v849_v16  ;;  %v1702_v24 = vld [vmem:[#allocation2 + $0x980] sm:$0xff] }
 0x1dd   :  { %1640 = vmatpush.msra.mxu2 %v1553_v41  ;;  %1660 = vmatpush.msra.mxu0 %v1585_v50  ;;  %v1726_v37 = vld [vmem:[#allocation2 + $0xa40] sm:$0xff]  ;;  %v1533_v41 = vld [vmem:[#allocation2 + $0x708] sm:$0xff] }
 0x1de   :  { %1605 = vmatpush.msra.mxu3 %v1542_v19  ;;  %1625 = vmatpush.msra.mxu1 %v1574_v26  ;;  %v1565_v50 = vld [vmem:[#allocation2 + $0x808] sm:$0xff]  ;;  %v1700_v19 = vld [vmem:[#allocation2 + $0x970] sm:$0xff]  ;;  %v1698_v16 = vld [vmem:[#allocation2 + $0x960] sm:$0xff] }
 0x1df   :  { %1641 = vmatpush.msra.mxu2 %v1551_v56  ;;  %1661 = vmatpush.msra.mxu0 %v1583_v20  ;;  %v1724_v26 = vld [vmem:[#allocation2 + $0xa30] sm:$0xff]  ;;  %v1709_v56 = vld [vmem:[#allocation2 + $0x9b8] sm:$0xff]  ;;  %v1722_v20 = vld [vmem:[#allocation2 + $0xa20] sm:$0xff] }
 0x1e0   :  { %1606 = vmatpush.msra.mxu3 %v1540_v54  ;;  %1626 = vmatpush.msra.mxu1 %v1572_v33  ;;  %v1707_v54 = vld [vmem:[#allocation2 + $0x9a8] sm:$0xff] }
 0x1e1   :  { %1642 = vmatpush.msra.mxu2 %v1549_v25  ;;  %1662 = vmatpush.msra.mxu0 %v1581_v52  ;;  %v1731_v33 = vld [vmem:[#allocation2 + $0xa68] sm:$0xff]  ;;  %v1696_v25 = vld [vmem:[#allocation2 + $0x950] sm:$0xff] }
 0x1e2   :  { %1607 = vmatpush.msra.mxu3 %v1538_v30  ;;  %1627 = vmatpush.msra.mxu1 %v1570_v42  ;;  %v1720_v52 = vld [vmem:[#allocation2 + $0xa10] sm:$0xff]  ;;  %v1705_v30 = vld [vmem:[#allocation2 + $0x998] sm:$0xff] }
 0x1e3   :  { %1643 = vmatpush.msra.mxu2 %v1547_v43  ;;  %1663 = vmatpush.msra.mxu0 %v1579_v32  ;;  %v1729_v42 = vld [vmem:[#allocation2 + $0xa58] sm:$0xff]  ;;  %v1694_v43 = vld [vmem:[#allocation2 + $0x940] sm:$0xff] }
 0x1e4   :  { %1608 = vmatpush.msra.mxu3 %v1536_v36  ;;  %1628 = vmatpush.msra.mxu1 %v1568_v38  ;;  %v1718_v32 = vld [vmem:[#allocation2 + $0xa00] sm:$0xff]  ;;  %v1727_v36 = vld [vmem:[#allocation2 + $0xa48] sm:$0xff]  ;;  %v1692_v38 = vld [vmem:[#allocation2 + $0x930] sm:$0xff] }
 0x1e5   :  { %1644 = vmatpush.msra.mxu2 %v1545_v55  ;;  %1664 = vmatpush.msra.mxu0 %v1577_v60  ;;  %v1716_v55 = vld [vmem:[#allocation2 + $0x9f0] sm:$0xff]  ;;  %v1701_v60 = vld [vmem:[#allocation2 + $0x978] sm:$0xff] }
 0x1e6   :  { %1609 = vmatpush.msra.mxu3 %v1534_v59  ;;  %1629 = vmatpush.msra.mxu1 %v1566_v44  ;;  %v1725_v59 = vld [vmem:[#allocation2 + $0xa38] sm:$0xff]  ;;  %v1690_v44 = vld [vmem:[#allocation2 + $0x920] sm:$0xff] }
 0x1e7   :  { %1645 = vmatpush.msra.mxu2 %v1543_v29  ;;  %1665 = vmatpush.msra.mxu0 %v1575_v45  ;;  %v1714_v29 = vld [vmem:[#allocation2 + $0x9e0] sm:$0xff]  ;;  %v1699_v45 = vld [vmem:[#allocation2 + $0x968] sm:$0xff] }
 0x1e8   :  { %1610 = vmatpush.msra.mxu3 %v1532_v51  ;;  %1630 = vmatpush.msra.mxu1 %v1564_v57  ;;  %v1723_v51 = vld [vmem:[#allocation2 + $0xa28] sm:$0xff]  ;;  %v1688_v57 = vld [vmem:[#allocation2 + $0x910] sm:$0xff] }
 0x1e9   :  { %1646 = vmatpush.msra.mxu2 %v1541_v40  ;;  %1666 = vmatpush.msra.mxu0 %v1573_v18  ;;  %v1712_v40 = vld [vmem:[#allocation2 + $0x9d0] sm:$0xff]  ;;  %v1721_v18 = vld [vmem:[#allocation2 + $0xa18] sm:$0xff] }
 0x1ea   :  { %1611 = vmatmul.f32.vlgmr.msra.gmra.mxu3 %v3385_v46  ;;  %1741 = vmatpush.msrb.mxu1 %v1708_v58  ;;  %v1686_v58 = vld [vmem:[#allocation2 + $0x900] sm:$0xff] }
 0x1eb   :  { %1765 = vmatpush.msrb.mxu3 %v1732_v48  ;;  %1647 = vmatpush.msra.mxu2 %v1539_v61  ;;  %v1710_v48 = vld [vmem:[#allocation2 + $0x9c0] sm:$0xff]  ;;  %v1695_v61 = vld [vmem:[#allocation2 + $0x948] sm:$0xff] }
 0x1ec   :  { %1667 = vmatpush.msra.mxu0 %v1571_v62  ;;  %1742 = vmatpush.msrb.mxu1 %v1706_v21  ;;  %v1719_v62 = vld [vmem:[#allocation2 + $0xa08] sm:$0xff]  ;;  %v1854_v21 = vld [vmem:[#allocation2 + $0xb70] sm:$0xff] }
 0x1ed   :  { %1766 = vmatpush.msrb.mxu3 %v1730_v39  ;;  %1648 = vmatpush.msra.mxu2 %v1537_v23  ;;  %v1684_v39 = vld [vmem:[#allocation2 + $0x8f0] sm:$0xff]  ;;  %v1693_v23 = vld [vmem:[#allocation2 + $0x938] sm:$0xff] }
 0x1ee   :  { %1668 = vmatpush.msra.mxu0 %v1569_v17  ;;  %1743 = vmatpush.msrb.mxu1 %v1704_v31  ;;  %v1717_v17 = vld [vmem:[#allocation2 + $0x9f8] sm:$0xff]  ;;  %v1682_v31 = vld [vmem:[#allocation2 + $0x8e0] sm:$0xff] }
 0x1ef   :  { %1767 = vmatpush.msrb.mxu3 %v1728_v35  ;;  %1649 = vmatpush.msra.mxu2 %v1535_v22  ;;  %v1852_v35 = vld [vmem:[#allocation2 + $0xb60] sm:$0xff]  ;;  %v1691_v22 = vld [vmem:[#allocation2 + $0x928] sm:$0xff] }
 0x1f0   :  { %1669 = vmatpush.msra.mxu0 %v1567_v49  ;;  %2471 = vmatmul.msk.f32.vlgmr.msra.gmra.mxu1 %vm298_vm5, %v3387_v47  ;;  %v1715_v49 = vld [vmem:[#allocation2 + $0x9e8] sm:$0xff] }
 0x1f1   :  { %1744 = vmatpush.msrb.mxu1 %v1702_v24  ;;  %1768 = vmatpush.msrb.mxu3 %v1726_v37  ;;  %v1680_v24 = vld [vmem:[#allocation2 + $0x8d0] sm:$0xff] }
 0x1f2   :  { %1650 = vmatpush.msra.mxu2 %v1533_v41  ;;  %1670 = vmatpush.msra.mxu0 %v1565_v50  ;;  %v1850_v37 = vld [vmem:[#allocation2 + $0xb50] sm:$0xff]  ;;  %v1689_v41 = vld [vmem:[#allocation2 + $0x918] sm:$0xff] }
 0x1f3   :  { %1651 = vmatmul.f32.vlgmr.msra.gmra.mxu2 %v3385_v46  ;;  %1745 = vmatpush.msrb.mxu1 %v1700_v19  ;;  %v1703_v46 = vld [vmem:[#allocation2 + $0x988] sm:$0xff]  ;;  %v1713_v50 = vld [vmem:[#allocation2 + $0x9d8] sm:$0xff]  ;;  %v1678_v19 = vld [vmem:[#allocation2 + $0x8c0] sm:$0xff] }
 0x1f4   :  { %1769 = vmatpush.msrb.mxu3 %v1724_v26  ;;  %1781 = vmatpush.msrb.mxu0 %v1709_v56  ;;  %v1848_v26 = vld [vmem:[#allocation2 + $0xb40] sm:$0xff]  ;;  %v1687_v56 = vld [vmem:[#allocation2 + $0x908] sm:$0xff] }
 0x1f5   :  { %1805 = vmatpush.msrb.mxu2 %v1733_v53  ;;  %1746 = vmatpush.msrb.mxu1 %v1698_v16  ;;  %v1711_v53 = vld [vmem:[#allocation2 + $0x9c8] sm:$0xff]  ;;  %v1846_v16 = vld [vmem:[#allocation2 + $0xb30] sm:$0xff] }
 0x1f6   :  { %1770 = vmatpush.msrb.mxu3 %v1722_v20  ;;  %1782 = vmatpush.msrb.mxu0 %v1707_v54  ;;  %v1878_v20 = vld [vmem:[#allocation2 + $0xc30] sm:$0xff]  ;;  %v1855_v54 = vld [vmem:[#allocation2 + $0xb78] sm:$0xff] }
 0x1f7   :  { %1806 = vmatpush.msrb.mxu2 %v1731_v33  ;;  %1747 = vmatpush.msrb.mxu1 %v1696_v25  ;;  %v1685_v33 = vld [vmem:[#allocation2 + $0x8f8] sm:$0xff] }
 0x1f8   :  { %1771 = vmatpush.msrb.mxu3 %v1720_v52  ;;  %1783 = vmatpush.msrb.mxu0 %v1705_v30  ;;  %v3408_v25 = vld.sshfl [vmem:[#allocation1] sm:$0xff pattern:$0x73625140]  ;;  %v3410_v52 = vld.sshfl [vmem:[#allocation1 + $0x8] sm:$0xff pattern:$0x73625140] }
 0x1f9   :  { %1807 = vmatpush.msrb.mxu2 %v1729_v42  ;;  %2472 = vmatmul.msk.f32.vlgmr.msra.gmra.mxu0 %vm298_vm5, %v3387_v47  ;;  %v1697_v47 = vld [vmem:[#allocation2 + $0x958] sm:$0xff]  ;;  %v1844_v30 = vld [vmem:[#allocation2 + $0xb20] sm:$0xff]  ;;  %2027 = vst [vmem:[#allocation1] ss:$4 sm:$0xff] %v936_v34  ;;  %v1849_v34 = vld [vmem:[#allocation2 + $0xb48] sm:$0xff] }
 0x1fa   :  { %1748 = vmatpush.msrb.mxu1 %v1694_v43  ;;  %1772 = vmatpush.msrb.mxu3 %v1718_v32  ;;  %v1876_v42 = vld [vmem:[#allocation2 + $0xc20] sm:$0xff]  ;;  %v1853_v43 = vld [vmem:[#allocation2 + $0xb68] sm:$0xff] }
 0x1fb   :  { %1784 = vmatpush.msrb.mxu0 %v1703_v46  ;;  %1808 = vmatpush.msrb.mxu2 %v1727_v36  ;;  %v1683_v32 = vld [vmem:[#allocation2 + $0x8e8] sm:$0xff]  ;;  %v1842_v46 = vld [vmem:[#allocation2 + $0xb10] sm:$0xff] }
 0x1fc   :  { %1749 = vmatpush.msrb.mxu1 %v1692_v38  ;;  %1773 = vmatpush.msrb.mxu3 %v1716_v55  ;;  %v1874_v36 = vld [vmem:[#allocation2 + $0xc10] sm:$0xff]  ;;  %v1851_v38 = vld [vmem:[#allocation2 + $0xb58] sm:$0xff] }
 0x1fd   :  { %1785 = vmatpush.msrb.mxu0 %v1701_v60  ;;  %1809 = vmatpush.msrb.mxu2 %v1725_v59  ;;  %v1681_v55 = vld [vmem:[#allocation2 + $0x8d8] sm:$0xff]  ;;  %v1840_v60 = vld [vmem:[#allocation2 + $0xb00] sm:$0xff]  ;;  %v1679_v59 = vld [vmem:[#allocation2 + $0x8c8] sm:$0xff] }
 0x1fe   :  { %1750 = vmatpush.msrb.mxu1 %v1690_v44  ;;  %1774 = vmatpush.msrb.mxu3 %v1714_v29  ;;  %v1838_v44 = vld [vmem:[#allocation2 + $0xaf0] sm:$0xff] }
 0x1ff   :  { %1786 = vmatpush.msrb.mxu0 %v1699_v45  ;;  %1810 = vmatpush.msrb.mxu2 %v1723_v51  ;;  %v1870_v29 = vld [vmem:[#allocation2 + $0xbf0] sm:$0xff]  ;;  %v1879_v45 = vld [vmem:[#allocation2 + $0xc38] sm:$0xff]  ;;  %v1836_v51 = vld [vmem:[#allocation2 + $0xae0] sm:$0xff] }
 0x200   :  { %1751 = vmatpush.msrb.mxu1 %v1688_v57  ;;  %1775 = vmatpush.msrb.mxu3 %v1712_v40  ;;  %v1868_v57 = vld [vmem:[#allocation2 + $0xbe0] sm:$0xff]  ;;  %v1845_v40 = vld [vmem:[#allocation2 + $0xb28] sm:$0xff] }
 0x201   :  { %1787 = vmatpush.msrb.mxu0 %v1697_v47  ;;  %1811 = vmatpush.msrb.mxu2 %v1721_v18  ;;  %v1877_v47 = vld [vmem:[#allocation2 + $0xc28] sm:$0xff]  ;;  %v1834_v18 = vld [vmem:[#allocation2 + $0xad0] sm:$0xff] }
 0x202   :  { %1752 = vmatpush.msrb.mxu1 %v1686_v58  ;;  %1776 = vmatpush.msrb.mxu3 %v1710_v48  ;;  %v1866_v58 = vld [vmem:[#allocation2 + $0xbd0] sm:$0xff]  ;;  %v1843_v48 = vld [vmem:[#allocation2 + $0xb18] sm:$0xff] }
 0x203   :  { %1788 = vmatpush.msrb.mxu0 %v1695_v61  ;;  %1812 = vmatpush.msrb.mxu2 %v1719_v62  ;;  %v1875_v61 = vld [vmem:[#allocation2 + $0xc18] sm:$0xff]  ;;  %v1832_v62 = vld [vmem:[#allocation2 + $0xac0] sm:$0xff] }
 0x204   :  { %1887 = vmatpush.msra.mxu3 %v1854_v21  ;;  %1753 = vmatpush.msrb.mxu1 %v1684_v39  ;;  %v1864_v21 = vld [vmem:[#allocation2 + $0xbc0] sm:$0xff]  ;;  %v1841_v39 = vld [vmem:[#allocation2 + $0xb08] sm:$0xff] }
 0x205   :  { %1789 = vmatpush.msrb.mxu0 %v1693_v23  ;;  %1813 = vmatpush.msrb.mxu2 %v1717_v17  ;;  %v1873_v23 = vld [vmem:[#allocation2 + $0xc08] sm:$0xff]  ;;  %v1862_v17 = vld [vmem:[#allocation2 + $0xbb0] sm:$0xff] }
 0x206   :  { %2473 = vmatmul.msk.f32.vlgmr.msrb.gmra.mxu3 %vm298_vm5, %v3395_v63  ;;  %1754 = vmatpush.msrb.mxu1 %v1682_v31  ;;  %v1839_v31 = vld [vmem:[#allocation2 + $0xaf8] sm:$0xff] }
 0x207   :  { %1888 = vmatpush.msra.mxu3 %v1852_v35  ;;  %1790 = vmatpush.msrb.mxu0 %v1691_v22  ;;  %v1871_v35 = vld [vmem:[#allocation2 + $0xbf8] sm:$0xff]  ;;  %v1828_v22 = vld [vmem:[#allocation2 + $0xaa0] sm:$0xff] }
 0x208   :  { %1814 = vmatpush.msrb.mxu2 %v1715_v49  ;;  %1755 = vmatpush.msrb.mxu1 %v1680_v24  ;;  %v1860_v49 = vld [vmem:[#allocation2 + $0xba0] sm:$0xff]  ;;  %v1837_v24 = vld [vmem:[#allocation2 + $0xae8] sm:$0xff] }
 0x209   :  { %1889 = vmatpush.msra.mxu3 %v1850_v37  ;;  %1791 = vmatpush.msrb.mxu0 %v1689_v41  ;;  %v1869_v37 = vld [vmem:[#allocation2 + $0xbe8] sm:$0xff]  ;;  %v1826_v41 = vld [vmem:[#allocation2 + $0xa90] sm:$0xff] }
 0x20a   :  { %1815 = vmatpush.msrb.mxu2 %v1713_v50  ;;  %1756 = vmatpush.msrb.mxu1 %v1678_v19  ;;  %v1858_v50 = vld [vmem:[#allocation2 + $0xb90] sm:$0xff]  ;;  %v1835_v19 = vld [vmem:[#allocation2 + $0xad8] sm:$0xff] }
 0x20b   :  { %1890 = vmatpush.msra.mxu3 %v1848_v26  ;;  %1792 = vmatpush.msrb.mxu0 %v1687_v56  ;;  %v1867_v26 = vld [vmem:[#allocation2 + $0xbd8] sm:$0xff]  ;;  %v1824_v56 = vld [vmem:[#allocation2 + $0xa80] sm:$0xff] }
 0x20c   :  { %1816 = vmatpush.msrb.mxu2 %v1711_v53  ;;  %1757 = vmatmul.f32.vlgmr.msrb.gmra.mxu1 %v3397_v28  ;;  %v1856_v53 = vld [vmem:[#allocation2 + $0xb80] sm:$0xff] }
 0x20d   :  { %1891 = vmatpush.msra.mxu3 %v1846_v16  ;;  %1911 = vmatpush.msra.mxu1 %v1878_v20  ;;  %v1833_v16 = vld [vmem:[#allocation2 + $0xac8] sm:$0xff] }
 0x20e   :  { %1927 = vmatpush.msra.mxu2 %v1855_v54  ;;  %1793 = vmatpush.msrb.mxu0 %v1685_v33  ;;  %v1865_v20 = vld [vmem:[#allocation2 + $0xbc8] sm:$0xff]  ;;  %v2000_v54 = vld [vmem:[#allocation2 + $0xd30] sm:$0xff]  ;;  %v1831_v33 = vld [vmem:[#allocation2 + $0xab8] sm:$0xff] }
 0x20f   :  { %2474 = vmatmul.msk.f32.vlgmr.msrb.gmra.mxu2 %vm298_vm5, %v3395_v63  ;;  %1892 = vmatpush.msra.mxu3 %v1844_v30  ;;  %v1847_v63 = vld [vmem:[#allocation2 + $0xb38] sm:$0xff] }
 0x210   :  { %1912 = vmatpush.msra.mxu1 %v1876_v42  ;;  %1928 = vmatpush.msra.mxu2 %v1853_v43  ;;  %v1863_v30 = vld [vmem:[#allocation2 + $0xbb8] sm:$0xff]  ;;  %v1998_v42 = vld [vmem:[#allocation2 + $0xd20] sm:$0xff]  ;;  %v2024_v43 = vld [vmem:[#allocation2 + $0xdf0] sm:$0xff] }
 0x211   :  { %1794 = vmatpush.msrb.mxu0 %v1683_v32  ;;  %1893 = vmatpush.msra.mxu3 %v1842_v46  ;;  %v1829_v32 = vld [vmem:[#allocation2 + $0xaa8] sm:$0xff] }
 0x212   :  { %1913 = vmatpush.msra.mxu1 %v1874_v36  ;;  %1929 = vmatpush.msra.mxu2 %v1851_v38  ;;  %v1861_v46 = vld [vmem:[#allocation2 + $0xba8] sm:$0xff]  ;;  %v1996_v36 = vld [vmem:[#allocation2 + $0xd10] sm:$0xff]  ;;  %v2022_v38 = vld [vmem:[#allocation2 + $0xde0] sm:$0xff] }
 0x213   :  { %1795 = vmatpush.msrb.mxu0 %v1681_v55  ;;  %1894 = vmatpush.msra.mxu3 %v1840_v60  ;;  %v1827_v55 = vld [vmem:[#allocation2 + $0xa98] sm:$0xff] }
 0x214   :  { %1914 = vmatpush.msra.mxu1 %v1872_v27  ;;  %1930 = vmatpush.msra.mxu2 %v1849_v34  ;;  %v1859_v60 = vld [vmem:[#allocation2 + $0xb98] sm:$0xff]  ;;  %v2020_v27 = vld [vmem:[#allocation2 + $0xdd0] sm:$0xff]  ;;  %v1994_v34 = vld [vmem:[#allocation2 + $0xd00] sm:$0xff] }
 0x215   :  { %1796 = vmatpush.msrb.mxu0 %v1679_v59  ;;  %1895 = vmatpush.msra.mxu3 %v1838_v44  ;;  %v1825_v59 = vld [vmem:[#allocation2 + $0xa88] sm:$0xff] }
 0x216   :  { %1797 = vmatmul.f32.vlgmr.msrb.gmra.mxu0 %v3397_v28  ;;  %1915 = vmatpush.msra.mxu1 %v1870_v29  ;;  %v1830_v28 = vld [vmem:[#allocation2 + $0xab0] sm:$0xff]  ;;  %v1857_v44 = vld [vmem:[#allocation2 + $0xb88] sm:$0xff] }
 0x217   :  { %1931 = vmatpush.msra.mxu2 %v1847_v63  ;;  %1951 = vmatpush.msra.mxu0 %v1879_v45  ;;  %v1992_v29 = vld [vmem:[#allocation2 + $0xcf0] sm:$0xff]  ;;  %v2018_v63 = vld [vmem:[#allocation2 + $0xdc0] sm:$0xff]  ;;  %v2001_v45 = vld [vmem:[#allocation2 + $0xd38] sm:$0xff] }
 0x218   :  { %1896 = vmatpush.msra.mxu3 %v1836_v51  ;;  %1916 = vmatpush.msra.mxu1 %v1868_v57  ;;  %v2025_v51 = vld [vmem:[#allocation2 + $0xdf8] sm:$0xff]  ;;  %v1990_v57 = vld [vmem:[#allocation2 + $0xce0] sm:$0xff] }
 0x219   :  { %1932 = vmatpush.msra.mxu2 %v1845_v40  ;;  %1952 = vmatpush.msra.mxu0 %v1877_v47  ;;  %v2016_v40 = vld [vmem:[#allocation2 + $0xdb0] sm:$0xff]  ;;  %v1999_v47 = vld [vmem:[#allocation2 + $0xd28] sm:$0xff] }
 0x21a   :  { %1897 = vmatpush.msra.mxu3 %v1834_v18  ;;  %1917 = vmatpush.msra.mxu1 %v1866_v58  ;;  %v2023_v18 = vld [vmem:[#allocation2 + $0xde8] sm:$0xff]  ;;  %v1988_v58 = vld [vmem:[#allocation2 + $0xcd0] sm:$0xff] }
 0x21b   :  { %1933 = vmatpush.msra.mxu2 %v1843_v48  ;;  %1953 = vmatpush.msra.mxu0 %v1875_v61  ;;  %v2014_v48 = vld [vmem:[#allocation2 + $0xda0] sm:$0xff]  ;;  %v1997_v61 = vld [vmem:[#allocation2 + $0xd18] sm:$0xff] }
 0x21c   :  { %1898 = vmatpush.msra.mxu3 %v1832_v62  ;;  %1918 = vmatpush.msra.mxu1 %v1864_v21  ;;  %v2021_v62 = vld [vmem:[#allocation2 + $0xdd8] sm:$0xff]  ;;  %v1986_v21 = vld [vmem:[#allocation2 + $0xcc0] sm:$0xff] }
 0x21d   :  { %1934 = vmatpush.msra.mxu2 %v1841_v39  ;;  %1954 = vmatpush.msra.mxu0 %v1873_v23  ;;  %v1995_v39 = vld [vmem:[#allocation2 + $0xd08] sm:$0xff]  ;;  %v1984_v23 = vld [vmem:[#allocation2 + $0xcb0] sm:$0xff] }
 0x21e   :  { %1899 = vmatpush.msra.mxu3 %v1830_v28  ;;  %1919 = vmatpush.msra.mxu1 %v1862_v17  ;;  %v2019_v28 = vld [vmem:[#allocation2 + $0xdc8] sm:$0xff]  ;;  %v2010_v17 = vld [vmem:[#allocation2 + $0xd80] sm:$0xff] }
 0x21f   :  { %1935 = vmatpush.msra.mxu2 %v1839_v31  ;;  %1955 = vmatpush.msra.mxu0 %v1871_v35  ;;  %v1993_v31 = vld [vmem:[#allocation2 + $0xcf8] sm:$0xff]  ;;  %v1982_v35 = vld [vmem:[#allocation2 + $0xca0] sm:$0xff] }
 0x220   :  { %1900 = vmatpush.msra.mxu3 %v1828_v22  ;;  %1920 = vmatpush.msra.mxu1 %v1860_v49  ;;  %v2017_v22 = vld [vmem:[#allocation2 + $0xdb8] sm:$0xff]  ;;  %v2008_v49 = vld [vmem:[#allocation2 + $0xd70] sm:$0xff] }
 0x221   :  { %1936 = vmatpush.msra.mxu2 %v1837_v24  ;;  %1956 = vmatpush.msra.mxu0 %v1869_v37  ;;  %v1991_v24 = vld [vmem:[#allocation2 + $0xce8] sm:$0xff]  ;;  %v1980_v37 = vld [vmem:[#allocation2 + $0xc90] sm:$0xff] }
 0x222   :  { %1901 = vmatpush.msra.mxu3 %v1826_v41  ;;  %1921 = vmatpush.msra.mxu1 %v1858_v50  ;;  %v2015_v41 = vld [vmem:[#allocation2 + $0xda8] sm:$0xff]  ;;  %v2006_v50 = vld [vmem:[#allocation2 + $0xd60] sm:$0xff] }
 0x223   :  { %1937 = vmatpush.msra.mxu2 %v1835_v19  ;;  %1957 = vmatpush.msra.mxu0 %v1867_v26  ;;  %v1989_v19 = vld [vmem:[#allocation2 + $0xcd8] sm:$0xff] }
 0x224   :  { %1902 = vmatpush.msra.mxu3 %v1824_v56  ;;  %1922 = vmatpush.msra.mxu1 %v1856_v53  ;;  %v2013_v26 = vld [vmem:[#allocation2 + $0xd98] sm:$0xff]  ;;  %v2004_v56 = vld [vmem:[#allocation2 + $0xd50] sm:$0xff]  ;;  %v1987_v53 = vld [vmem:[#allocation2 + $0xcc8] sm:$0xff] }
 0x225   :  { %1938 = vmatpush.msra.mxu2 %v1833_v16  ;;  %1958 = vmatpush.msra.mxu0 %v1865_v20  ;;  %v1976_v16 = vld [vmem:[#allocation2 + $0xc70] sm:$0xff]  ;;  %v2011_v20 = vld [vmem:[#allocation2 + $0xd88] sm:$0xff] }
 0x226   :  { %1903 = vmatmul.f32.vlgmr.msra.gmra.mxu3 %v3408_v25  ;;  %2033 = vmatpush.msrb.mxu1 %v2000_v54  ;;  %v2002_v54 = vld [vmem:[#allocation2 + $0xd40] sm:$0xff] }
 0x227   :  { %1939 = vmatpush.msra.mxu2 %v1831_v33  ;;  %1959 = vmatpush.msra.mxu0 %v1863_v30  ;;  %v1985_v33 = vld [vmem:[#allocation2 + $0xcb8] sm:$0xff]  ;;  %v2029_v30 = vld.sshfl [vmem:[#allocation1 + $0x8] sm:$0xff pattern:$0x73625140] }
 0x228   :  { %2034 = vmatpush.msrb.mxu1 %v1998_v42  ;;  %2057 = vmatpush.msrb.mxu3 %v2024_v43  ;;  %v1974_v42 = vld [vmem:[#allocation2 + $0xc60] sm:$0xff]  ;;  %v1983_v43 = vld [vmem:[#allocation2 + $0xca8] sm:$0xff] }
 0x229   :  { %1940 = vmatpush.msra.mxu2 %v1829_v32  ;;  %1960 = vmatpush.msra.mxu0 %v1861_v46  ;;  %v2009_v32 = vld [vmem:[#allocation2 + $0xd78] sm:$0xff]  ;;  %v1972_v46 = vld [vmem:[#allocation2 + $0xc50] sm:$0xff] }
 0x22a   :  { %2035 = vmatpush.msrb.mxu1 %v1996_v36  ;;  %2058 = vmatpush.msrb.mxu3 %v2022_v38  ;;  %v1981_v36 = vld [vmem:[#allocation2 + $0xc98] sm:$0xff]  ;;  %v2007_v38 = vld [vmem:[#allocation2 + $0xd68] sm:$0xff] }
 0x22b   :  { %1941 = vmatpush.msra.mxu2 %v1827_v55  ;;  %1961 = vmatpush.msra.mxu0 %v1859_v60  ;;  %v1970_v55 = vld [vmem:[#allocation2 + $0xc40] sm:$0xff]  ;;  %v1979_v60 = vld [vmem:[#allocation2 + $0xc88] sm:$0xff] }
 0x22c   :  { %2475 = vmatmul.msk.f32.vlgmr.msra.gmra.mxu1 %vm298_vm5, %v3410_v52  ;;  %2059 = vmatpush.msrb.mxu3 %v2020_v27  ;;  %v2005_v27 = vld [vmem:[#allocation2 + $0xd58] sm:$0xff] }
 0x22d   :  { %2036 = vmatpush.msrb.mxu1 %v1994_v34  ;;  %1942 = vmatpush.msra.mxu2 %v1825_v59  ;;  %v2028_v34 = vld.sshfl [vmem:[#allocation1] sm:$0xff pattern:$0x73625140] }
 0x22e   :  { %1962 = vmatpush.msra.mxu0 %v1857_v44  ;;  %1943 = vmatmul.f32.vlgmr.msra.gmra.mxu2 %v3408_v25  ;;  %v2012_v25 = vld [vmem:[#allocation2 + $0xd90] sm:$0xff]  ;;  %v1977_v59 = vld [vmem:[#allocation2 + $0xc78] sm:$0xff]  ;;  %v2003_v44 = vld [vmem:[#allocation2 + $0xd48] sm:$0xff] }
 0x22f   :  { %2037 = vmatpush.msrb.mxu1 %v1992_v29  ;;  %2060 = vmatpush.msrb.mxu3 %v2018_v63  ;;  %v1975_v29 = vld [vmem:[#allocation2 + $0xc68] sm:$0xff]  ;;  %v1973_v63 = vld [vmem:[#allocation2 + $0xc58] sm:$0xff] }
 0x230   :  { %2073 = vmatpush.msrb.mxu0 %v2001_v45  ;;  %2097 = vmatpush.msrb.mxu2 %v2025_v51  ;;  %v1971_v45 = vld [vmem:[#allocation2 + $0xc48] sm:$0xff]  ;;  %v1043_v51 = vpop.f32.mrf.mxu1 }
 0x231   :  { %2038 = vmatpush.msrb.mxu1 %v1990_v57  ;;  %2061 = vmatpush.msrb.mxu3 %v2016_v40  ;;  %v1083_v57 = vpop.f32.mrf.mxu3  ;;  %v1023_v40 = vpop.f32.mrf.mxu0 }
 0x232   :  { %2074 = vmatpush.msrb.mxu0 %v1999_v47  ;;  %2098 = vmatpush.msrb.mxu2 %v2023_v18  ;;  %v1063_v47 = vpop.f32.mrf.mxu2 }
 0x233   :  { %2039 = vmatpush.msrb.mxu1 %v1988_v58  ;;  %2062 = vmatpush.msrb.mxu3 %v2014_v48 }
 0x234   :  { %2075 = vmatpush.msrb.mxu0 %v1997_v61  ;;  %2099 = vmatpush.msrb.mxu2 %v2021_v62 }
 0x235   :  { %2476 = vmatmul.msk.f32.vlgmr.msra.gmra.mxu0 %vm298_vm5, %v3410_v52  ;;  %2040 = vmatpush.msrb.mxu1 %v1986_v21  ;;  %v1978_v52 = vld [vmem:[#allocation2 + $0xc80] sm:$0xff] }
 0x236   :  { %2063 = vmatpush.msrb.mxu3 %v2012_v25  ;;  %2076 = vmatpush.msrb.mxu0 %v1995_v39 }
 0x237   :  { %2041 = vmatpush.msrb.mxu1 %v1984_v23  ;;  %2100 = vmatpush.msrb.mxu2 %v2019_v28 }
 0x238   :  { %2064 = vmatpush.msrb.mxu3 %v2010_v17  ;;  %2077 = vmatpush.msrb.mxu0 %v1993_v31  ;;  %v1174_v18 = vpop.f32.mrf.mxu1 }
 0x239   :  { %2042 = vmatpush.msrb.mxu1 %v1982_v35  ;;  %2101 = vmatpush.msrb.mxu2 %v2017_v22  ;;  %v1194_v58 = vpop.f32.mrf.mxu3  ;;  %v1214_v48 = vpop.f32.mrf.mxu0 }
 0x23a   :  { %2065 = vmatpush.msrb.mxu3 %v2008_v49  ;;  %2078 = vmatpush.msrb.mxu0 %v1991_v24  ;;  %v1234_v61 = vpop.f32.mrf.mxu2  ;;  %v942_v49 = vld [vmem:[#allocation14] sm:$0x3]  ;;  %v1044_v24 = vadd.f32 %v1043_v51, %v1023_v40 }
 0x23b   :  { %2043 = vmatpush.msrb.mxu1 %v1980_v37  ;;  %2102 = vmatpush.msrb.mxu2 %v2015_v41  ;;  %v1087_v37 = vperm.slane %v942_v49, 0 }
 0x23c   :  { %2066 = vmatpush.msrb.mxu3 %v2006_v50  ;;  %2079 = vmatpush.msrb.mxu0 %v1989_v19 }
 0x23d   :  { %2044 = vmatpush.msrb.mxu1 %v1978_v52  ;;  %2103 = vmatpush.msrb.mxu2 %v2013_v26  ;;  %v1091_v26 = vadd.f32 %v1087_v37, %v1044_v24 }
 0x23e   :  { %2067 = vmatpush.msrb.mxu3 %v2004_v56  ;;  %2080 = vmatpush.msrb.mxu0 %v1987_v53  ;;  %v1195_v56 = vadd.f32 %v1194_v58, %v1174_v18 }
 0x23f   :  { %2045 = vmatpush.msrb.mxu1 %v1976_v16  ;;  %2104 = vmatpush.msrb.mxu2 %v2011_v20  ;;  %v1084_v16 = vadd.f32 %v1083_v57, %v1063_v47  ;;  %v1088_v20 = vperm.slane %v942_v49, 1 }
 0x240   :  { %2068 = vmatpush.msrb.mxu3 %v2002_v54  ;;  %2081 = vmatpush.msrb.mxu0 %v1985_v33  ;;  %v1340_v21 = vpop.f32.mrf.mxu1  ;;  %v1237_v54 = vadd.f32 %v1195_v56, %v1091_v26 }
 0x241   :  { %2477 = vmatmul.msk.f32.vlgmr.msrb.gmra.mxu3 %vm298_vm5, %v2029_v30  ;;  %2046 = vmatpush.msrb.mxu1 %v1974_v42  ;;  %v1320_v62 = vpop.f32.mrf.mxu3  ;;  %v1380_v39 = vpop.f32.mrf.mxu0 }
 0x242   :  { %2082 = vmatpush.msrb.mxu0 %v1983_v43  ;;  %2105 = vmatpush.msrb.mxu2 %v2009_v32  ;;  %v1360_v25 = vpop.f32.mrf.mxu2  ;;  %v1341_v53 = vadd.f32 %v1340_v21, %v1320_v62 }
 0x243   :  { %2047 = vmatpush.msrb.mxu1 %v1972_v46 }
 0x244   :  { %2083 = vmatpush.msrb.mxu0 %v1981_v36  ;;  %2106 = vmatpush.msrb.mxu2 %v2007_v38  ;;  %v1383_v46 = vadd.f32 %v1341_v53, %v1237_v54  ;;  %v1092_v38 = vadd.f32 %v1088_v20, %v1084_v16 }
 0x245   :  { %2048 = vmatpush.msrb.mxu1 %v1970_v55  ;;  %v1235_v55 = vadd.f32 %v1234_v61, %v1214_v48 }
 0x246   :  { %2084 = vmatpush.msrb.mxu0 %v1979_v60  ;;  %2107 = vmatpush.msrb.mxu2 %v2005_v27 }
 0x247   :  { %2049 = vmatmul.f32.vlgmr.msrb.gmra.mxu1 %v2028_v34 }
 0x248   :  { %2085 = vmatpush.msrb.mxu0 %v1977_v59  ;;  %2108 = vmatpush.msrb.mxu2 %v2003_v44 }
 0x249   :  { %2478 = vmatmul.msk.f32.vlgmr.msrb.gmra.mxu2 %vm298_vm5, %v2029_v30 }
 0x24a   :  { %2086 = vmatpush.msrb.mxu0 %v1975_v29  ;;  %v1238_v29 = vadd.f32 %v1235_v55, %v1092_v38 }
 0x24c   :  { %2087 = vmatpush.msrb.mxu0 %v1973_v63 }
 0x24d   :  { %v1466_v23 = vpop.f32.mrf.mxu1  ;;  %v1486_v28 = vpop.f32.mrf.mxu3 }
 0x24e   :  { %2088 = vmatpush.msrb.mxu0 %v1971_v45  ;;  %v1487_v33 = vadd.f32 %v1486_v28, %v1466_v23 }
 0x24f   :  { %2089 = vmatmul.f32.vlgmr.msrb.gmra.mxu0 %v2028_v34  ;;  %v1381_v34 = vadd.f32 %v1380_v39, %v1360_v25 }
 0x250   :  { %v1529_v60 = vadd.f32 %v1487_v33, %v1383_v46 }
 0x251   :  { %v1384_v18 = vadd.f32 %v1381_v34, %v1238_v29 }
 0x256   :  { %v1526_v31 = vpop.f32.mrf.mxu2 }
 0x257   :  { %v1506_v17 = vpop.f32.mrf.mxu0 }
 0x258   :  { %v1527_v63 = vadd.f32 %v1526_v31, %v1506_v17 }
 0x25a   :  { %v1530_v23 = vadd.f32 %v1527_v63, %v1384_v18 }
 0x26d   :  { %v1612_v35 = vpop.f32.mrf.mxu3  ;;  %v1632_v22 = vpop.f32.mrf.mxu1 }
 0x26e   :  { %v1633_v36 = vadd.f32 %v1632_v22, %v1612_v35 }
 0x270   :  { %v1675_v59 = vadd.f32 %v1633_v36, %v1529_v60 }
 0x276   :  { %v1652_v41 = vpop.f32.mrf.mxu2  ;;  %v1672_v50 = vpop.f32.mrf.mxu0 }
 0x277   :  { %v1673_v58 = vadd.f32 %v1672_v50, %v1652_v41 }
 0x279   :  { %v1676_v48 = vadd.f32 %v1673_v58, %v1530_v23 }
 0x289   :  { %v1758_v19 = vpop.f32.mrf.mxu1  ;;  %v1778_v52 = vpop.f32.mrf.mxu3 }
 0x28a   :  { %v1779_v27 = vadd.f32 %v1778_v52, %v1758_v19 }
 0x28c   :  { %v1821_v45 = vadd.f32 %v1779_v27, %v1675_v59 }
 0x292   :  { %v1818_v42 = vpop.f32.mrf.mxu2 }
 0x293   :  { %v1798_v30 = vpop.f32.mrf.mxu0 }
 0x294   :  { %v1819_v28 = vadd.f32 %v1818_v42, %v1798_v30 }
 0x296   :  { %v1822_v25 = vadd.f32 %v1819_v28, %v1676_v48 }
 0x2a9   :  { %v1904_v43 = vpop.f32.mrf.mxu3  ;;  %v1924_v32 = vpop.f32.mrf.mxu1 }
 0x2aa   :  { %v1925_v44 = vadd.f32 %v1924_v32, %v1904_v43 }
 0x2ac   :  { %v1967_v62 = vadd.f32 %v1925_v44, %v1821_v45 }
 0x2b1   :  { %v1944_v51 = vpop.f32.mrf.mxu2 }
 0x2b2   :  { %v1964_v57 = vpop.f32.mrf.mxu0 }
 0x2b3   :  { %v1965_v61 = vadd.f32 %v1964_v57, %v1944_v51 }
 0x2b5   :  { %v1968_v49 = vadd.f32 %v1965_v61, %v1822_v25 }
 0x2c4   :  { %v2050_v40 = vpop.f32.mrf.mxu1  ;;  %v2070_v47 = vpop.f32.mrf.mxu3 }
 0x2c5   :  { %v2071_v21 = vadd.f32 %v2070_v47, %v2050_v40 }
 0x2c7   :  { %v3426_v35 = vadd.f32 %v2071_v21, %v1967_v62 }
 0x2cc   :  { %v2090_v39 = vpop.f32.mrf.mxu0  ;;  %v2110_v22 = vpop.f32.mrf.mxu2 }
 0x2cd   :  { %v2111_v17 = vadd.f32 %v2110_v22, %v2090_v39 }
 0x2cf   :  { %v3428_v31 = vadd.f32 %v2111_v17, %v1968_v49 }
 0x2d0   :  { %2785 = dma.done.wait [#allocation7 + $0x1], 4096 }
 0x2d1   :  { %2786 = vsyncadd [#allocation7 + $0x1], 4294963200  ;;  %v2133_v24 = vld [vmem:[#allocation3 + $0x78] sm:$0xff]  ;;  %v2132_v37 = vld [vmem:[#allocation3 + $0x70] sm:$0xff] }
 0x2d2   :  { %2154 = vmatpush.msra.mxu3 %v2133_v24  ;;  %v2149_v41 = vld [vmem:[#allocation3 + $0xf8] sm:$0xff]  ;;  %v2131_v50 = vld [vmem:[#allocation3 + $0x68] sm:$0xff]  ;;  %v2148_v19 = vld [vmem:[#allocation3 + $0xf0] sm:$0xff] }
 0x2d3   :  { %2174 = vmatpush.msra.mxu1 %v2149_v41  ;;  %v2147_v52 = vld [vmem:[#allocation3 + $0xe8] sm:$0xff]  ;;  %v2130_v26 = vld [vmem:[#allocation3 + $0x60] sm:$0xff]  ;;  %v2129_v53 = vld [vmem:[#allocation3 + $0x58] sm:$0xff] }
 0x2d4   :  { %2155 = vmatpush.msra.mxu3 %v2132_v37  ;;  %v2146_v56 = vld [vmem:[#allocation3 + $0xe0] sm:$0xff]  ;;  %v2145_v16 = vld [vmem:[#allocation3 + $0xd8] sm:$0xff]  ;;  %v2128_v20 = vld [vmem:[#allocation3 + $0x50] sm:$0xff] }
 0x2d5   :  { %2175 = vmatpush.msra.mxu1 %v2148_v19  ;;  %v2144_v54 = vld [vmem:[#allocation3 + $0xd0] sm:$0xff]  ;;  %v2127_v33 = vld [vmem:[#allocation3 + $0x48] sm:$0xff]  ;;  %v2126_v42 = vld [vmem:[#allocation3 + $0x40] sm:$0xff] }
 0x2d6   :  { %2156 = vmatpush.msra.mxu3 %v2131_v50  ;;  %v2143_v30 = vld [vmem:[#allocation3 + $0xc8] sm:$0xff]  ;;  %v2142_v43 = vld [vmem:[#allocation3 + $0xc0] sm:$0xff]  ;;  %v2125_v32 = vld [vmem:[#allocation3 + $0x38] sm:$0xff] }
 0x2d7   :  { %2176 = vmatpush.msra.mxu1 %v2147_v52  ;;  %v2141_v46 = vld [vmem:[#allocation3 + $0xb8] sm:$0xff]  ;;  %v2124_v36 = vld [vmem:[#allocation3 + $0x30] sm:$0xff]  ;;  %v2123_v55 = vld [vmem:[#allocation3 + $0x28] sm:$0xff] }
 0x2d8   :  { %2157 = vmatpush.msra.mxu3 %v2130_v26  ;;  %v2140_v38 = vld [vmem:[#allocation3 + $0xb0] sm:$0xff]  ;;  %v2139_v60 = vld [vmem:[#allocation3 + $0xa8] sm:$0xff]  ;;  %v2122_v27 = vld [vmem:[#allocation3 + $0x20] sm:$0xff] }
 0x2d9   :  { %2177 = vmatpush.msra.mxu1 %v2146_v56  ;;  %v2138_v34 = vld [vmem:[#allocation3 + $0xa0] sm:$0xff]  ;;  %v2121_v59 = vld [vmem:[#allocation3 + $0x18] sm:$0xff]  ;;  %v2120_v29 = vld [vmem:[#allocation3 + $0x10] sm:$0xff] }
 0x2da   :  { %2158 = vmatpush.msra.mxu3 %v2129_v53  ;;  %v2137_v44 = vld [vmem:[#allocation3 + $0x98] sm:$0xff]  ;;  %v2136_v63 = vld [vmem:[#allocation3 + $0x90] sm:$0xff]  ;;  %v2119_v45 = vld [vmem:[#allocation3 + $0x8] sm:$0xff] }
 0x2db   :  { %2178 = vmatpush.msra.mxu1 %v2145_v16  ;;  %v2135_v51 = vld [vmem:[#allocation3 + $0x88] sm:$0xff]  ;;  %v2118_v57 = vld [vmem:[#allocation3] sm:$0xff] }
 0x2dc   :  { %2159 = vmatpush.msra.mxu3 %v2128_v20  ;;  %v2134_v40 = vld [vmem:[#allocation3 + $0x80] sm:$0xff] }
 0x2dd   :  { %2179 = vmatpush.msra.mxu1 %v2144_v54  ;;  %v2505_v47 = vld [vmem:[#allocation15] ss:$0 sm:$0xff] }
 0x2de   :  { %2160 = vmatpush.msra.mxu3 %v2127_v33 }
 0x2df   :  { %2180 = vmatpush.msra.mxu1 %v2143_v30 }
 0x2e0   :  { %2161 = vmatpush.msra.mxu3 %v2126_v42 }
 0x2e1   :  { %2181 = vmatpush.msra.mxu1 %v2142_v43 }
 0x2e2   :  { %2162 = vmatpush.msra.mxu3 %v2125_v32 }
 0x2e3   :  { %2182 = vmatpush.msra.mxu1 %v2141_v46 }
 0x2e4   :  { %2163 = vmatpush.msra.mxu3 %v2124_v36 }
 0x2e5   :  { %2183 = vmatpush.msra.mxu1 %v2140_v38 }
 0x2e6   :  { %2164 = vmatpush.msra.mxu3 %v2123_v55 }
 0x2e7   :  { %2184 = vmatpush.msra.mxu1 %v2139_v60 }
 0x2e8   :  { %2165 = vmatpush.msra.mxu3 %v2122_v27 }
 0x2e9   :  { %2185 = vmatpush.msra.mxu1 %v2138_v34 }
 0x2ea   :  { %2166 = vmatpush.msra.mxu3 %v2121_v59 }
 0x2eb   :  { %2186 = vmatpush.msra.mxu1 %v2137_v44 }
 0x2ec   :  { %2167 = vmatpush.msra.mxu3 %v2120_v29 }
 0x2ed   :  { %2187 = vmatpush.msra.mxu1 %v2136_v63 }
 0x2ee   :  { %2168 = vmatpush.msra.mxu3 %v2119_v45 }
 0x2ef   :  { %2188 = vmatpush.msra.mxu1 %v2135_v51 }
 0x2f0   :  { %2169 = vmatpush.msra.mxu3 %v2118_v57 }
 0x2f1   :  { %2170 = vmatmul.f32.vlgmr.msra.gmra.mxu3 %v3426_v35  ;;  %2189 = vmatpush.msra.mxu1 %v2134_v40 }
 0x2f2   :  { %2190 = vmatmul.f32.vlgmr.msra.gmra.mxu1 %v3428_v31 }
 0x36f   :  { %v2191_v58 = vpop.f32.mrf.mxu1 }
 0x374   :  { %v2171_v18 = vpop.f32.mrf.mxu3 }
 0x375   :  { %v2172_v62 = vadd.f32 %v2505_v47, %v2171_v18 }
 0x377   :  { %v2192_v21 = vadd.f32 %v2191_v58, %v2172_v62 }
 0x379   :  { %v2194_v23 = vmax.f32 %v2192_v21, 0.0 }
 0x37a   :  { %2787 = dma.done.wait [#allocation7 + $0x2], 2048 }
 0x37b   :  { %2788 = vsyncadd [#allocation7 + $0x2], 4294965248  ;;  %v2213_v28 = vld [vmem:[#allocation4 + $0x78] sm:$0xff]  ;;  %v2212_v48 = vld [vmem:[#allocation4 + $0x70] sm:$0xff] }
 0x37c   :  { %2218 = vmatpush.msra.mxu2 %v2213_v28  ;;  %v2211_v61 = vld [vmem:[#allocation4 + $0x68] sm:$0xff]  ;;  %v2210_v25 = vld [vmem:[#allocation4 + $0x60] sm:$0xff]  ;;  %v2209_v39 = vld [vmem:[#allocation4 + $0x58] sm:$0xff] }
 0x37d   :  { %v2208_v35 = vld [vmem:[#allocation4 + $0x50] sm:$0xff]  ;;  %v2207_v22 = vld [vmem:[#allocation4 + $0x48] sm:$0xff]  ;;  %v2206_v49 = vld [vmem:[#allocation4 + $0x40] sm:$0xff] }
 0x37e   :  { %2219 = vmatpush.msra.mxu2 %v2212_v48  ;;  %v2205_v17 = vld [vmem:[#allocation4 + $0x38] sm:$0xff]  ;;  %v2204_v31 = vld [vmem:[#allocation4 + $0x30] sm:$0xff]  ;;  %v2203_v24 = vld [vmem:[#allocation4 + $0x28] sm:$0xff] }
 0x37f   :  { %v2202_v37 = vld [vmem:[#allocation4 + $0x20] sm:$0xff]  ;;  %v2201_v41 = vld [vmem:[#allocation4 + $0x18] sm:$0xff]  ;;  %v2200_v50 = vld [vmem:[#allocation4 + $0x10] sm:$0xff] }
 0x380   :  { %2220 = vmatpush.msra.mxu2 %v2211_v61  ;;  %v2199_v19 = vld [vmem:[#allocation4 + $0x8] sm:$0xff]  ;;  %v2198_v52 = vld [vmem:[#allocation4] sm:$0xff] }
 0x381   :  { %v2506_v26 = vld [vmem:[#allocation17] ss:$0 sm:$0xff] }
 0x382   :  { %2221 = vmatpush.msra.mxu2 %v2210_v25 }
 0x384   :  { %2222 = vmatpush.msra.mxu2 %v2209_v39 }
 0x386   :  { %2223 = vmatpush.msra.mxu2 %v2208_v35 }
 0x388   :  { %2224 = vmatpush.msra.mxu2 %v2207_v22 }
 0x38a   :  { %2225 = vmatpush.msra.mxu2 %v2206_v49 }
 0x38c   :  { %2226 = vmatpush.msra.mxu2 %v2205_v17 }
 0x38e   :  { %2227 = vmatpush.msra.mxu2 %v2204_v31 }
 0x390   :  { %2228 = vmatpush.msra.mxu2 %v2203_v24 }
 0x392   :  { %2229 = vmatpush.msra.mxu2 %v2202_v37 }
 0x394   :  { %2230 = vmatpush.msra.mxu2 %v2201_v41 }
 0x396   :  { %2231 = vmatpush.msra.mxu2 %v2200_v50 }
 0x398   :  { %2232 = vmatpush.msra.mxu2 %v2199_v19 }
 0x39a   :  { %2233 = vmatpush.msra.mxu2 %v2198_v52 }
 0x39b   :  { %2234 = vmatmul.f32.vlgmr.msra.gmra.mxu2 %v2194_v23 }
 0x41e   :  { %v2235_v56 = vpop.f32.mrf.mxu2 }
 0x41f   :  { %v2236_v53 = vadd.f32 %v2506_v26, %v2235_v56 }
 0x421   :  { %v2238_v16 = vmax.f32 %v2236_v53, 0.0 }
 0x422   :  { %2789 = dma.done.wait [#allocation7 + $0x3], 2048 }
 0x423   :  { %2790 = vsyncadd [#allocation7 + $0x3], 4294965248  ;;  %v2256_v20 = vld [vmem:[#allocation5 + $0x78] sm:$0xff]  ;;  %v2255_v54 = vld [vmem:[#allocation5 + $0x70] sm:$0xff]  ;;  %2304 = vmatpush.msrb.mxu3 %v2993_v15 }
 0x424   :  { %2261 = vmatpush.msra.mxu0 %v2256_v20  ;;  %v2254_v33 = vld [vmem:[#allocation5 + $0x68] sm:$0xff]  ;;  %v2253_v30 = vld [vmem:[#allocation5 + $0x60] sm:$0xff]  ;;  %v2252_v42 = vld [vmem:[#allocation5 + $0x58] sm:$0xff] }
 0x425   :  { %v2251_v43 = vld [vmem:[#allocation5 + $0x50] sm:$0xff]  ;;  %v2250_v32 = vld [vmem:[#allocation5 + $0x48] sm:$0xff]  ;;  %v2249_v46 = vld [vmem:[#allocation5 + $0x40] sm:$0xff] }
 0x426   :  { %2262 = vmatpush.msra.mxu0 %v2255_v54  ;;  %v2248_v36 = vld [vmem:[#allocation5 + $0x38] sm:$0xff]  ;;  %v2247_v38 = vld [vmem:[#allocation5 + $0x30] sm:$0xff]  ;;  %v2246_v55 = vld [vmem:[#allocation5 + $0x28] sm:$0xff] }
 0x427   :  { %v2245_v60 = vld [vmem:[#allocation5 + $0x20] sm:$0xff]  ;;  %v2244_v27 = vld [vmem:[#allocation5 + $0x18] sm:$0xff]  ;;  %v2243_v34 = vld [vmem:[#allocation5 + $0x10] sm:$0xff] }
 0x428   :  { %2263 = vmatpush.msra.mxu0 %v2254_v33  ;;  %v2242_v59 = vld [vmem:[#allocation5 + $0x8] sm:$0xff]  ;;  %v2241_v44 = vld [vmem:[#allocation5] sm:$0xff] }
 0x429   :  { %v2507_v29 = vld [vmem:[#allocation18] ss:$0 sm:$0xff] }
 0x42a   :  { %2264 = vmatpush.msra.mxu0 %v2253_v30 }
 0x42c   :  { %2265 = vmatpush.msra.mxu0 %v2252_v42 }
 0x42e   :  { %2266 = vmatpush.msra.mxu0 %v2251_v43 }
 0x430   :  { %2267 = vmatpush.msra.mxu0 %v2250_v32 }
 0x432   :  { %2268 = vmatpush.msra.mxu0 %v2249_v46 }
 0x434   :  { %2269 = vmatpush.msra.mxu0 %v2248_v36 }
 0x436   :  { %2270 = vmatpush.msra.mxu0 %v2247_v38 }
 0x438   :  { %2271 = vmatpush.msra.mxu0 %v2246_v55 }
 0x43a   :  { %2272 = vmatpush.msra.mxu0 %v2245_v60 }
 0x43c   :  { %2273 = vmatpush.msra.mxu0 %v2244_v27 }
 0x43e   :  { %2274 = vmatpush.msra.mxu0 %v2243_v34 }
 0x440   :  { %2275 = vmatpush.msra.mxu0 %v2242_v59 }
 0x442   :  { %2276 = vmatpush.msra.mxu0 %v2241_v44 }
 0x443   :  { %2277 = vmatmul.f32.vlgmr.msra.gmra.mxu0 %v2238_v16 }
 0x4c0   :  { %v2278_v63 = vpop.f32.mrf.mxu0 }
 0x4c1   :  { %v2279_v45 = vadd.f32 %v2507_v29, %v2278_v63 }
 0x4c3   :  { %v2281_v51 = vmax.f32 %v2279_v45, 0.0 }
 0x4c4   :  { %2791 = dma.done.wait [#allocation7 + $0x4], 2048 }
 0x4c5   :  { %2792 = vsyncadd [#allocation7 + $0x4], 4294965248  ;;  %2305 = vmatpush.msrb.mxu3 %v2985_v14  ;;  %s2814_s1 = smov [#allocation21]   ;;  %s2333_s23 = sshll.u32 %s3464_s13, 4  ;;  %vm2324_vm8 = vcmask 58368   ;;  %s2334_s23 = int_to_ptr.hbm [resolvable:$true] %s2333_s23 }
 0x4c6   :  { %s2331_s29 = sshll.u32 %s2814_s1, 4  ;;  %s2332_s29 = int_to_ptr.vmem [resolvable:$true] %s2331_s29 }
 0x4c7   :  { %2306 = vmatpush.msrb.mxu3 %v2980_v13 }
 0x4c9   :  { %2307 = vmatpush.msrb.mxu3 %v2975_v12 }
 0x4cb   :  { %2308 = vmatpush.msrb.mxu3 %v2970_v11 }
 0x4cd   :  { %2309 = vmatpush.msrb.mxu3 %v2965_v10 }
 0x4cf   :  { %2310 = vmatpush.msrb.mxu3 %v2960_v9  ;;  %v2508_v9 = vld [vmem:[#allocation20] ss:$0 sm:$0xff] }
 0x4d1   :  { %2311 = vmatpush.msrb.mxu3 %v2955_v8 }
 0x4d3   :  { %2312 = vmatpush.msrb.mxu3 %v2950_v7 }
 0x4d5   :  { %2313 = vmatpush.msrb.mxu3 %v2945_v6 }
 0x4d7   :  { %2314 = vmatpush.msrb.mxu3 %v2937_v5 }
 0x4d9   :  { %2315 = vmatpush.msrb.mxu3 %v2932_v4 }
 0x4db   :  { %2316 = vmatpush.msrb.mxu3 %v2927_v3 }
 0x4dd   :  { %2317 = vmatpush.msrb.mxu3 %v2922_v2 }
 0x4df   :  { %2318 = vmatpush.msrb.mxu3 %v2917_v1 }
 0x4e1   :  { %2319 = vmatpush.msrb.mxu3 %v2912_v0 }
 0x4e2   :  { %2320 = vmatmul.f32.vlgmr.msrb.gmra.mxu3 %v2281_v51 }
 0x565   :  { %v2321_v6 = vpop.f32.mrf.mxu3 }
 0x566   :  { %v2322_v5 = vadd.f32 %v2508_v9, %v2321_v6 }
 0x568   :  { %2325 = vst.msk [vmem:[#allocation21] sm:$0x3] %vm2324_vm8, %v2322_v5 }
 0x569   :  { %2336 = dma.vmem_to_hbm [thread:$0]  %s2332_s29, 32, %s2334_s23, [#allocation10]  }
 0x56a   :  { %2793 = dma.done.wait [#allocation10], 32  }
 0x56b   :  { %2794 = vsyncadd [#allocation10], 4294967264 }
 0x56c   :  { %2341 = vsyncpa [#allocation9], 1 }
 0x56d   :  { %2342 = vsyncpa [#allocation16], 1 }
 0x56e   :  { %2343 = vsyncpa [#allocation19], 1 }
 0x56f   :  { %2344 = vsyncpa [#allocation10], 1 }
 0x570   :  { %2345 = vsyncpa [#allocation11], 1 }
 0x571   :  { %2346 = vsyncpa [#allocation13], 1 }
 0x572   :  { %2347 = vsyncmov [#allocation7] }
 0x575   :  { %s2348_s8 = vpop.sfrf %2347 }
 0x576   :  { %p2479_p0 = scmp.ne.s32.totalorder %s2348_s8, 0 }
 0x578   :  { %2352 = shalt.err (%p2479_p0)  }
 0x579   :  { %2354 = vsyncmov [#allocation7 + $0x1] }
 0x57c   :  { %s2355_s13 = vpop.sfrf %2354 }
 0x57d   :  { %p2480_p1 = scmp.ne.s32.totalorder %s2355_s13, 0 }
 0x57f   :  { %2359 = shalt.err (%p2480_p1)  }
 0x580   :  { %2361 = vsyncmov [#allocation7 + $0x2] }
 0x583   :  { %s2362_s17 = vpop.sfrf %2361 }
 0x584   :  { %p2481_p2 = scmp.ne.s32.totalorder %s2362_s17, 0 }
 0x586   :  { %2366 = shalt.err (%p2481_p2)  }
 0x587   :  { %2368 = vsyncmov [#allocation7 + $0x3] }
 0x58a   :  { %s2369_s22 = vpop.sfrf %2368 }
 0x58b   :  { %p2482_p3 = scmp.ne.s32.totalorder %s2369_s22, 0 }
 0x58d   :  { %2373 = shalt.err (%p2482_p3)  }
 0x58e   :  { %2375 = vsyncmov [#allocation7 + $0x4] }
 0x591   :  { %s2376_s3 = vpop.sfrf %2375 }
 0x592   :  { %p2483_p4 = scmp.ne.s32.totalorder %s2376_s3, 0 }
 0x594   :  { %2380 = shalt.err (%p2483_p4)  }

</bundles_post_ra>
